<compile_context>
chip_gen: v6e
topology: v6e:2x2x1
jax: 0.10.0
libtpu: 0.0.40
codegen_flags: <defaults>
</compile_context>

<pallas_src>
import jax
import jax.numpy as jnp
from jax.experimental import pallas as pl
from jax.experimental.pallas import tpu as pltpu

CHANNELS = 3
CIN_PAD = 8          # pad layer-1 input channels 3 -> 8 so K = 4*4*8 = 128
EPS = 1e-5           # nn.BatchNorm2d default eps
NEG_SLOPE = 0.2      # LeakyReLU(0.2)

# Sized to the actual working set (<3 MiB with double buffering); well under
# v7x's 64 MiB physical / 32 MiB scoped-default VMEM.
_COMPILER_PARAMS = pltpu.CompilerParams(
    dimension_semantics=("arbitrary",),          # K is a reduction axis
    vmem_limit_bytes=24 * 1024 * 1024,
)


# ---------------------------------------------------------------------------
# Pallas kernels
# ---------------------------------------------------------------------------
def _conv_bn_lrelu_kernel(a_ref, w_ref, gamma_ref, beta_ref, o_ref, acc_ref):
    """One K-tile of the im2col conv; BN + LeakyReLU epilogue on the last tile.

    a_ref:   [M, tk]  bf16   (im2col rows for this K tile)
    w_ref:   [tk, C]  bf16   (conv weight tile)
    o_ref:   [M, C]   bf16
    acc_ref: [M, C]   f32    (accumulator, persistent across the K grid)
    """
    k = pl.program_id(0)

    @pl.when(k == 0)
    def _init():
        acc_ref[...] = jnp.zeros_like(acc_ref)

    # bf16 x bf16 -> f32 accumulate on the MXU.
    acc_ref[...] += jnp.dot(a_ref[...], w_ref[...],
                            preferred_element_type=jnp.float32)

    @pl.when(k == pl.num_programs(0) - 1)
    def _finalize():
        acc = acc_ref[...]
        # BatchNorm2d training semantics: per-channel batch statistics over
        # the full M = N*OH*OW (M is not tiled, so stats are exact), biased
        # variance, eps inside the rsqrt.  Epilogue stays in f32.
        mean = jnp.mean(acc, axis=0, keepdims=True)
        var = jnp.mean((acc - mean) ** 2, axis=0, keepdims=True)
        xhat = (acc - mean) * jax.lax.rsqrt(var + EPS)
        y = xhat * gamma_ref[...] + beta_ref[...]
        # LeakyReLU(0.2)
        o_ref[...] = jnp.where(y >= 0.0, y, NEG_SLOPE * y).astype(o_ref.dtype)


def _conv1_sigmoid_kernel(a_ref, w_ref, o_ref):
    """Final Cout=1 conv: VPU broadcast-multiply + lane reduction + sigmoid.

    a_ref: [M, K] bf16, w_ref: [1, K] bf16, o_ref: [M, 1] f32.
    """
    a = a_ref[...].astype(jnp.float32)
    w = w_ref[...].astype(jnp.float32)
    s = jnp.sum(a * w, axis=-1, keepdims=True)              # [M, 1]
    # Exact sigmoid (only 2 outputs; an approx reciprocal would gain nothing).
    o_ref[...] = 1.0 / (1.0 + jnp.exp(-s))


# ---------------------------------------------------------------------------
# pallas_call wrappers
# ---------------------------------------------------------------------------
def _conv_bn_lrelu(a, w, gamma, beta):
    m, k_total = a.shape
    cout = w.shape[1]
    tk = 512 if k_total % 512 == 0 else k_total     # layer 1: K=128 -> 1 step
    nk = k_total // tk
    return pl.pallas_call(
        _conv_bn_lrelu_kernel,
        out_shape=jax.ShapeDtypeStruct((m, cout), jnp.bfloat16),
        grid_spec=pltpu.PrefetchScalarGridSpec(
            num_scalar_prefetch=0,
            grid=(nk,),
            in_specs=[
                pl.BlockSpec((m, tk), lambda k: (0, k)),
                pl.BlockSpec((tk, cout), lambda k: (k, 0)),
                pl.BlockSpec((1, cout), lambda k: (0, 0)),
                pl.BlockSpec((1, cout), lambda k: (0, 0)),
            ],
            out_specs=pl.BlockSpec((m, cout), lambda k: (0, 0)),
            scratch_shapes=[pltpu.VMEM((m, cout), jnp.float32)],
        ),
        compiler_params=_COMPILER_PARAMS,
    )(a, w, gamma, beta)


def _conv1_sigmoid(a, w):
    m = a.shape[0]
    return pl.pallas_call(
        _conv1_sigmoid_kernel,
        out_shape=jax.ShapeDtypeStruct((m, 1), jnp.float32),
        in_specs=[pl.BlockSpec(memory_space=pltpu.MemorySpace.VMEM)] * 2,
        out_specs=pl.BlockSpec(memory_space=pltpu.MemorySpace.VMEM),
    )(a, w)


# ---------------------------------------------------------------------------
# Plain-JAX glue: im2col patch extraction and weight reshaping
# ---------------------------------------------------------------------------
def _im2col(x_nhwc, kh, kw, stride, pad):
    # TODO(synk): move the patch extraction in-kernel (strided VMEM reads) to
    # remove the KH*KW/stride^2 = 4x activation inflation once batches grow.
    x = jnp.pad(x_nhwc, ((0, 0), (pad, pad), (pad, pad), (0, 0))) if pad else x_nhwc
    n, h, w, c = x.shape
    oh = (h - kh) // stride + 1
    ow = (w - kw) // stride + 1
    cols = []
    for i in range(kh):
        for j in range(kw):
            cols.append(x[:, i:i + stride * oh:stride, j:j + stride * ow:stride, :])
    p = jnp.stack(cols, axis=3)                        # [N, OH, OW, KH*KW, C]
    return p.reshape(n * oh * ow, kh * kw * c), (n, oh, ow)


def _weight_matrix(w_oihw):
    # PyTorch conv weight [Cout, Cin, KH, KW] -> [KH*KW*Cin, Cout]
    cout, cin, kh, kw = w_oihw.shape
    return jnp.transpose(w_oihw, (2, 3, 1, 0)).reshape(kh * kw * cin, cout)


# ---------------------------------------------------------------------------
# Parameter construction (deterministic, DCGAN-style N(0, 0.02) init).
# All weight reshapes / casts happen ONCE here, not per forward pass.
# ---------------------------------------------------------------------------
def init_params(key):
    conv_shapes = [
        (128, CHANNELS, 4, 4),
        (256, 128, 4, 4),
        (512, 256, 4, 4),
        (1, 512, 4, 4),
    ]
    keys = jax.random.split(key, len(conv_shapes))
    raw = [0.02 * jax.random.normal(k, s, dtype=jnp.float32)
           for k, s in zip(keys, conv_shapes)]

    # Layer-1: zero-pad Cin 3 -> 8 so K = 4*4*8 = 128 (lane-dense im2col).
    w0 = jnp.pad(raw[0], ((0, 0), (0, CIN_PAD - CHANNELS), (0, 0), (0, 0)))

    return {
        "conv_w": [
            _weight_matrix(w0).astype(jnp.bfloat16),       # [128,  128]
            _weight_matrix(raw[1]).astype(jnp.bfloat16),   # [2048, 256]
            _weight_matrix(raw[2]).astype(jnp.bfloat16),   # [4096, 512]
        ],
        # Final Cout=1 conv stored as a [1, K] row vector for the VPU path.
        "conv_w_final": _weight_matrix(raw[3]).T.astype(jnp.bfloat16),  # [1, 8192]
        "bn_gamma": [jnp.ones((1, c), jnp.float32) for c in (128, 256, 512)],
        "bn_beta": [jnp.zeros((1, c), jnp.float32) for c in (128, 256, 512)],
    }


# ---------------------------------------------------------------------------
# Forward pass (input: NCHW like PyTorch)
# ---------------------------------------------------------------------------
def discriminator_forward(params, x_nchw):
    # NCHW -> NHWC; bf16 activations feed the bf16 MXU path.
    x = jnp.transpose(x_nchw, (0, 2, 3, 1)).astype(jnp.bfloat16)
    # Pad input channels 3 -> 8 (matches the zero-padded layer-1 weight).
    x = jnp.pad(x, ((0, 0), (0, 0), (0, 0), (0, CIN_PAD - x.shape[-1])))

    # Three Conv(4, stride 2, pad 1) + BN + LeakyReLU(0.2) blocks.
    # TODO(synk): for larger batches on v7x, add a parallel M grid and switch
    # BN to a two-pass (sum / sumsq) reduction so batch stats stay exact.
    for li in range(3):
        a, (n, oh, ow) = _im2col(x, 4, 4, stride=2, pad=1)
        out = _conv_bn_lrelu(a, params["conv_w"][li],
                             params["bn_gamma"][li], params["bn_beta"][li])
        x = out.reshape(n, oh, ow, out.shape[-1])

    # Final Conv(4, stride 1, pad 0) + Sigmoid (Cout = 1).
    a, (n, oh, ow) = _im2col(x, 4, 4, stride=1, pad=0)       # [N, 8192]
    out = _conv1_sigmoid(a, params["conv_w_final"])           # [N, 1] f32
    y = out.reshape(n, oh, ow, 1)
    return jnp.transpose(y, (0, 3, 1, 2))                     # NCHW (N, 1, 1, 1)


# ---------------------------------------------------------------------------
if __name__ == "__main__":
    key = jax.random.PRNGKey(0)
    pkey, xkey = jax.random.split(key)
    params = init_params(pkey)

    # 32x32 input -> 16 -> 8 -> 4 -> final 4x4 valid conv -> 1x1
    x = jax.random.normal(xkey, (2, CHANNELS, 32, 32), dtype=jnp.float32)

    y = jax.jit(discriminator_forward)(params, x)
    y = jax.block_until_ready(y)

    assert y.shape == (2, 1, 1, 1), y.shape
    assert bool(jnp.all((y > 0.0) & (y < 1.0))), "sigmoid output out of range"
    print("KERNEL_OK")
</pallas_src>

<mosaic_0001>
module attributes {stable_mosaic.version = 11 : i64} {
  func.func @_conv_bn_lrelu_kernel(%arg0: i32, %arg1: memref<512x128xbf16, #tpu.memory_space<vmem>>, %arg2: memref<128x128xbf16, #tpu.memory_space<vmem>>, %arg3: memref<1x128xf32, #tpu.memory_space<vmem>>, %arg4: memref<1x128xf32, #tpu.memory_space<vmem>>, %arg5: memref<512x128xbf16, #tpu.memory_space<vmem>>, %arg6: memref<512x128xf32, #tpu.memory_space<vmem>>) attributes {dimension_semantics = [#tpu.dimension_semantics<arbitrary>], iteration_bounds = array<i64: 1>, scalar_prefetch = 0 : i64, scratch_operands = 1 : i64, tpu.core_type = #tpu.core_type<tc>, window_params = [{transform_indices = @transform_0, window_bounds = array<i64: 512, 128>}, {transform_indices = @transform_1, window_bounds = array<i64: 128, 128>}, {pipeline_mode = #tpu.pipeline_mode<synchronous>, transform_indices = @transform_2, window_bounds = array<i64: 1, 128>}, {pipeline_mode = #tpu.pipeline_mode<synchronous>, transform_indices = @transform_3, window_bounds = array<i64: 1, 128>}, {pipeline_mode = #tpu.pipeline_mode<synchronous>, transform_indices = @transform_4, window_bounds = array<i64: 512, 128>}]} {
    %c0_i32 = arith.constant 0 : i32
    %0 = arith.cmpi eq, %arg0, %c0_i32 : i32
    %1 = arith.extui %0 : i1 to i32
    %c0_i32_0 = arith.constant 0 : i32
    %2 = arith.cmpi ne, %1, %c0_i32_0 : i32
    scf.if %2 {
      %cst_10 = arith.constant 0.000000e+00 : f32
      %12 = vector.broadcast %cst_10 : f32 to vector<512x128xf32>
      %c0_11 = arith.constant 0 : index
      %c0_12 = arith.constant 0 : index
      %13 = vector.load %arg6[%c0_11, %c0_12] : memref<512x128xf32, #tpu.memory_space<vmem>>, vector<512x128xf32>
      tpu.vector_store %arg6[%c0_11, %c0_12], %12 {strides = array<i32>} : memref<512x128xf32, #tpu.memory_space<vmem>>, vector<512x128xf32>,
    } else {
    }
    %c0 = arith.constant 0 : index
    %c0_1 = arith.constant 0 : index
    %3 = vector.load %arg6[%c0, %c0_1] : memref<512x128xf32, #tpu.memory_space<vmem>>, vector<512x128xf32>
    %c0_2 = arith.constant 0 : index
    %c0_3 = arith.constant 0 : index
    %4 = vector.load %arg1[%c0_2, %c0_3] : memref<512x128xbf16, #tpu.memory_space<vmem>>, vector<512x128xbf16>
    %c0_4 = arith.constant 0 : index
    %c0_5 = arith.constant 0 : index
    %5 = vector.load %arg2[%c0_4, %c0_5] : memref<128x128xbf16, #tpu.memory_space<vmem>>, vector<128x128xbf16>
    %cst = arith.constant dense<0.000000e+00> : vector<512x128xf32>
    %6 = tpu.matmul %4, %5, %cst {dimension_numbers = #tpu.dot_dimension_numbers<[1], [0], [0], [1], [0, 0, 1, 1], [], []>} : vector<512x128xbf16>, vector<128x128xbf16>, vector<512x128xf32> -> vector<512x128xf32>
    %7 = arith.addf %3, %6 : vector<512x128xf32>
    %c0_6 = arith.constant 0 : index
    %c0_7 = arith.constant 0 : index
    %8 = vector.load %arg6[%c0_6, %c0_7] : memref<512x128xf32, #tpu.memory_space<vmem>>, vector<512x128xf32>
    tpu.vector_store %arg6[%c0_6, %c0_7], %7 {strides = array<i32>} : memref<512x128xf32, #tpu.memory_space<vmem>>, vector<512x128xf32>,
    %c0_i32_8 = arith.constant 0 : i32
    %9 = arith.cmpi eq, %arg0, %c0_i32_8 : i32
    %10 = arith.extui %9 : i1 to i32
    %c0_i32_9 = arith.constant 0 : i32
    %11 = arith.cmpi ne, %10, %c0_i32_9 : i32
    scf.if %11 {
      %c0_10 = arith.constant 0 : index
      %c0_11 = arith.constant 0 : index
      %12 = vector.load %arg6[%c0_10, %c0_11] : memref<512x128xf32, #tpu.memory_space<vmem>>, vector<512x128xf32>
      %cst_12 = arith.constant dense<0.000000e+00> : vector<128xf32>
      %13 = vector.multi_reduction <add>, %12, %cst_12 [0] : vector<512x128xf32> to vector<128xf32>
      %14 = vector.shape_cast %13 : vector<128xf32> to vector<1x128xf32>
      %cst_13 = arith.constant 5.120000e+02 : f32
      %15 = vector.broadcast %cst_13 : f32 to vector<1x128xf32>
      %16 = arith.divf %14, %15 : vector<1x128xf32>
      %17 = vector.broadcast %16 : vector<1x128xf32> to vector<512x128xf32>
      %18 = arith.subf %12, %17 : vector<512x128xf32>
      %19 = arith.mulf %18, %18 : vector<512x128xf32>
      %cst_14 = arith.constant dense<0.000000e+00> : vector<128xf32>
      %20 = vector.multi_reduction <add>, %19, %cst_14 [0] : vector<512x128xf32> to vector<128xf32>
      %21 = vector.shape_cast %20 : vector<128xf32> to vector<1x128xf32>
      %cst_15 = arith.constant 5.120000e+02 : f32
      %22 = vector.broadcast %cst_15 : f32 to vector<1x128xf32>
      %23 = arith.divf %21, %22 : vector<1x128xf32>
      %24 = vector.broadcast %16 : vector<1x128xf32> to vector<512x128xf32>
      %25 = arith.subf %12, %24 : vector<512x128xf32>
      %cst_16 = arith.constant 9.99999974E-6 : f32
      %26 = vector.broadcast %cst_16 : f32 to vector<1x128xf32>
      %27 = arith.addf %23, %26 : vector<1x128xf32>
      %28 = math.rsqrt %27 : vector<1x128xf32>
      %29 = vector.broadcast %28 : vector<1x128xf32> to vector<512x128xf32>
      %30 = arith.mulf %25, %29 : vector<512x128xf32>
      %c0_17 = arith.constant 0 : index
      %c0_18 = arith.constant 0 : index
      %31 = vector.load %arg3[%c0_17, %c0_18] : memref<1x128xf32, #tpu.memory_space<vmem>>, vector<1x128xf32>
      %32 = vector.broadcast %31 : vector<1x128xf32> to vector<512x128xf32>
      %33 = arith.mulf %30, %32 : vector<512x128xf32>
      %c0_19 = arith.constant 0 : index
      %c0_20 = arith.constant 0 : index
      %34 = vector.load %arg4[%c0_19, %c0_20] : memref<1x128xf32, #tpu.memory_space<vmem>>, vector<1x128xf32>
      %35 = vector.broadcast %34 : vector<1x128xf32> to vector<512x128xf32>
      %36 = arith.addf %33, %35 : vector<512x128xf32>
      %cst_21 = arith.constant 0.000000e+00 : f32
      %37 = vector.broadcast %cst_21 : f32 to vector<512x128xf32>
      %38 = arith.cmpf oge, %36, %37 : vector<512x128xf32>
      %cst_22 = arith.constant 2.000000e-01 : f32
      %39 = vector.broadcast %cst_22 : f32 to vector<512x128xf32>
      %40 = arith.mulf %39, %36 : vector<512x128xf32>
      %41 = arith.select %38, %36, %40 : vector<512x128xi1>, vector<512x128xf32>
      %42 = arith.truncf %41 : vector<512x128xf32> to vector<512x128xbf16>
      %c0_23 = arith.constant 0 : index
      %c0_24 = arith.constant 0 : index
      %43 = vector.load %arg5[%c0_23, %c0_24] : memref<512x128xbf16, #tpu.memory_space<vmem>>, vector<512x128xbf16>
      tpu.vector_store %arg5[%c0_23, %c0_24], %42 {strides = array<i32>} : memref<512x128xbf16, #tpu.memory_space<vmem>>, vector<512x128xbf16>,
    } else {
    }
    return
  }
  func.func @transform_0(%arg0: i32) -> (i32, i32) {
    %c0_i32 = arith.constant 0 : i32
    %c0_i32_0 = arith.constant 0 : i32
    return %c0_i32, %arg0 : i32, i32
  }
  func.func @transform_1(%arg0: i32) -> (i32, i32) {
    %c0_i32 = arith.constant 0 : i32
    %c0_i32_0 = arith.constant 0 : i32
    return %arg0, %c0_i32 : i32, i32
  }
  func.func @transform_2(%arg0: i32) -> (i32, i32) {
    %c0_i32 = arith.constant 0 : i32
    %c0_i32_0 = arith.constant 0 : i32
    %c0_i32_1 = arith.constant 0 : i32
    return %c0_i32, %c0_i32_0 : i32, i32
  }
  func.func @transform_3(%arg0: i32) -> (i32, i32) {
    %c0_i32 = arith.constant 0 : i32
    %c0_i32_0 = arith.constant 0 : i32
    %c0_i32_1 = arith.constant 0 : i32
    return %c0_i32, %c0_i32_0 : i32, i32
  }
  func.func @transform_4(%arg0: i32) -> (i32, i32) {
    %c0_i32 = arith.constant 0 : i32
    %c0_i32_0 = arith.constant 0 : i32
    %c0_i32_1 = arith.constant 0 : i32
    return %c0_i32, %c0_i32_0 : i32, i32
  }
}

module attributes {stable_mosaic.version = 11 : i64} {
  func.func @_conv_bn_lrelu_kernel(%arg0: i32, %arg1: memref<128x512xbf16, #tpu.memory_space<vmem>>, %arg2: memref<512x256xbf16, #tpu.memory_space<vmem>>, %arg3: memref<1x256xf32, #tpu.memory_space<vmem>>, %arg4: memref<1x256xf32, #tpu.memory_space<vmem>>, %arg5: memref<128x256xbf16, #tpu.memory_space<vmem>>, %arg6: memref<128x256xf32, #tpu.memory_space<vmem>>) attributes {dimension_semantics = [#tpu.dimension_semantics<arbitrary>], iteration_bounds = array<i64: 4>, scalar_prefetch = 0 : i64, scratch_operands = 1 : i64, tpu.core_type = #tpu.core_type<tc>, window_params = [{transform_indices = @transform_0, window_bounds = array<i64: 128, 512>}, {transform_indices = @transform_1, window_bounds = array<i64: 512, 256>}, {pipeline_mode = #tpu.pipeline_mode<synchronous>, transform_indices = @transform_2, window_bounds = array<i64: 1, 256>}, {pipeline_mode = #tpu.pipeline_mode<synchronous>, transform_indices = @transform_3, window_bounds = array<i64: 1, 256>}, {pipeline_mode = #tpu.pipeline_mode<synchronous>, transform_indices = @transform_4, window_bounds = array<i64: 128, 256>}]} {
    %c0_i32 = arith.constant 0 : i32
    %0 = arith.cmpi eq, %arg0, %c0_i32 : i32
    %1 = arith.extui %0 : i1 to i32
    %c0_i32_0 = arith.constant 0 : i32
    %2 = arith.cmpi ne, %1, %c0_i32_0 : i32
    scf.if %2 {
      %cst_9 = arith.constant 0.000000e+00 : f32
      %12 = vector.broadcast %cst_9 : f32 to vector<128x256xf32>
      %c0_10 = arith.constant 0 : index
      %c0_11 = arith.constant 0 : index
      %13 = vector.load %arg6[%c0_10, %c0_11] : memref<128x256xf32, #tpu.memory_space<vmem>>, vector<128x256xf32>
      tpu.vector_store %arg6[%c0_10, %c0_11], %12 {strides = array<i32>} : memref<128x256xf32, #tpu.memory_space<vmem>>, vector<128x256xf32>,
    } else {
    }
    %c0 = arith.constant 0 : index
    %c0_1 = arith.constant 0 : index
    %3 = vector.load %arg6[%c0, %c0_1] : memref<128x256xf32, #tpu.memory_space<vmem>>, vector<128x256xf32>
    %c0_2 = arith.constant 0 : index
    %c0_3 = arith.constant 0 : index
    %4 = vector.load %arg1[%c0_2, %c0_3] : memref<128x512xbf16, #tpu.memory_space<vmem>>, vector<128x512xbf16>
    %c0_4 = arith.constant 0 : index
    %c0_5 = arith.constant 0 : index
    %5 = vector.load %arg2[%c0_4, %c0_5] : memref<512x256xbf16, #tpu.memory_space<vmem>>, vector<512x256xbf16>
    %cst = arith.constant dense<0.000000e+00> : vector<128x256xf32>
    %6 = tpu.matmul %4, %5, %cst {dimension_numbers = #tpu.dot_dimension_numbers<[1], [0], [0], [1], [0, 0, 1, 1], [], []>} : vector<128x512xbf16>, vector<512x256xbf16>, vector<128x256xf32> -> vector<128x256xf32>
    %7 = arith.addf %3, %6 : vector<128x256xf32>
    %c0_6 = arith.constant 0 : index
    %c0_7 = arith.constant 0 : index
    %8 = vector.load %arg6[%c0_6, %c0_7] : memref<128x256xf32, #tpu.memory_space<vmem>>, vector<128x256xf32>
    tpu.vector_store %arg6[%c0_6, %c0_7], %7 {strides = array<i32>} : memref<128x256xf32, #tpu.memory_space<vmem>>, vector<128x256xf32>,
    %c3_i32 = arith.constant 3 : i32
    %9 = arith.cmpi eq, %arg0, %c3_i32 : i32
    %10 = arith.extui %9 : i1 to i32
    %c0_i32_8 = arith.constant 0 : i32
    %11 = arith.cmpi ne, %10, %c0_i32_8 : i32
    scf.if %11 {
      %c0_9 = arith.constant 0 : index
      %c0_10 = arith.constant 0 : index
      %12 = vector.load %arg6[%c0_9, %c0_10] : memref<128x256xf32, #tpu.memory_space<vmem>>, vector<128x256xf32>
      %cst_11 = arith.constant dense<0.000000e+00> : vector<256xf32>
      %13 = vector.multi_reduction <add>, %12, %cst_11 [0] : vector<128x256xf32> to vector<256xf32>
      %14 = vector.shape_cast %13 : vector<256xf32> to vector<1x256xf32>
      %cst_12 = arith.constant 1.280000e+02 : f32
      %15 = vector.broadcast %cst_12 : f32 to vector<1x256xf32>
      %16 = arith.divf %14, %15 : vector<1x256xf32>
      %17 = vector.broadcast %16 : vector<1x256xf32> to vector<128x256xf32>
      %18 = arith.subf %12, %17 : vector<128x256xf32>
      %19 = arith.mulf %18, %18 : vector<128x256xf32>
      %cst_13 = arith.constant dense<0.000000e+00> : vector<256xf32>
      %20 = vector.multi_reduction <add>, %19, %cst_13 [0] : vector<128x256xf32> to vector<256xf32>
      %21 = vector.shape_cast %20 : vector<256xf32> to vector<1x256xf32>
      %cst_14 = arith.constant 1.280000e+02 : f32
      %22 = vector.broadcast %cst_14 : f32 to vector<1x256xf32>
      %23 = arith.divf %21, %22 : vector<1x256xf32>
      %24 = vector.broadcast %16 : vector<1x256xf32> to vector<128x256xf32>
      %25 = arith.subf %12, %24 : vector<128x256xf32>
      %cst_15 = arith.constant 9.99999974E-6 : f32
      %26 = vector.broadcast %cst_15 : f32 to vector<1x256xf32>
      %27 = arith.addf %23, %26 : vector<1x256xf32>
      %28 = math.rsqrt %27 : vector<1x256xf32>
      %29 = vector.broadcast %28 : vector<1x256xf32> to vector<128x256xf32>
      %30 = arith.mulf %25, %29 : vector<128x256xf32>
      %c0_16 = arith.constant 0 : index
      %c0_17 = arith.constant 0 : index
      %31 = vector.load %arg3[%c0_16, %c0_17] : memref<1x256xf32, #tpu.memory_space<vmem>>, vector<1x256xf32>
      %32 = vector.broadcast %31 : vector<1x256xf32> to vector<128x256xf32>
      %33 = arith.mulf %30, %32 : vector<128x256xf32>
      %c0_18 = arith.constant 0 : index
      %c0_19 = arith.constant 0 : index
      %34 = vector.load %arg4[%c0_18, %c0_19] : memref<1x256xf32, #tpu.memory_space<vmem>>, vector<1x256xf32>
      %35 = vector.broadcast %34 : vector<1x256xf32> to vector<128x256xf32>
      %36 = arith.addf %33, %35 : vector<128x256xf32>
      %cst_20 = arith.constant 0.000000e+00 : f32
      %37 = vector.broadcast %cst_20 : f32 to vector<128x256xf32>
      %38 = arith.cmpf oge, %36, %37 : vector<128x256xf32>
      %cst_21 = arith.constant 2.000000e-01 : f32
      %39 = vector.broadcast %cst_21 : f32 to vector<128x256xf32>
      %40 = arith.mulf %39, %36 : vector<128x256xf32>
      %41 = arith.select %38, %36, %40 : vector<128x256xi1>, vector<128x256xf32>
      %42 = arith.truncf %41 : vector<128x256xf32> to vector<128x256xbf16>
      %c0_22 = arith.constant 0 : index
      %c0_23 = arith.constant 0 : index
      %43 = vector.load %arg5[%c0_22, %c0_23] : memref<128x256xbf16, #tpu.memory_space<vmem>>, vector<128x256xbf16>
      tpu.vector_store %arg5[%c0_22, %c0_23], %42 {strides = array<i32>} : memref<128x256xbf16, #tpu.memory_space<vmem>>, vector<128x256xbf16>,
    } else {
    }
    return
  }
  func.func @transform_0(%arg0: i32) -> (i32, i32) {
    %c0_i32 = arith.constant 0 : i32
    %c0_i32_0 = arith.constant 0 : i32
    return %c0_i32, %arg0 : i32, i32
  }
  func.func @transform_1(%arg0: i32) -> (i32, i32) {
    %c0_i32 = arith.constant 0 : i32
    %c0_i32_0 = arith.constant 0 : i32
    return %arg0, %c0_i32 : i32, i32
  }
  func.func @transform_2(%arg0: i32) -> (i32, i32) {
    %c0_i32 = arith.constant 0 : i32
    %c0_i32_0 = arith.constant 0 : i32
    %c0_i32_1 = arith.constant 0 : i32
    return %c0_i32, %c0_i32_0 : i32, i32
  }
  func.func @transform_3(%arg0: i32) -> (i32, i32) {
    %c0_i32 = arith.constant 0 : i32
    %c0_i32_0 = arith.constant 0 : i32
    %c0_i32_1 = arith.constant 0 : i32
    return %c0_i32, %c0_i32_0 : i32, i32
  }
  func.func @transform_4(%arg0: i32) -> (i32, i32) {
    %c0_i32 = arith.constant 0 : i32
    %c0_i32_0 = arith.constant 0 : i32
    %c0_i32_1 = arith.constant 0 : i32
    return %c0_i32, %c0_i32_0 : i32, i32
  }
}

module attributes {stable_mosaic.version = 11 : i64} {
  func.func @_conv_bn_lrelu_kernel(%arg0: i32, %arg1: memref<32x512xbf16, #tpu.memory_space<vmem>>, %arg2: memref<512x512xbf16, #tpu.memory_space<vmem>>, %arg3: memref<1x512xf32, #tpu.memory_space<vmem>>, %arg4: memref<1x512xf32, #tpu.memory_space<vmem>>, %arg5: memref<32x512xbf16, #tpu.memory_space<vmem>>, %arg6: memref<32x512xf32, #tpu.memory_space<vmem>>) attributes {dimension_semantics = [#tpu.dimension_semantics<arbitrary>], iteration_bounds = array<i64: 8>, scalar_prefetch = 0 : i64, scratch_operands = 1 : i64, tpu.core_type = #tpu.core_type<tc>, window_params = [{transform_indices = @transform_0, window_bounds = array<i64: 32, 512>}, {transform_indices = @transform_1, window_bounds = array<i64: 512, 512>}, {pipeline_mode = #tpu.pipeline_mode<synchronous>, transform_indices = @transform_2, window_bounds = array<i64: 1, 512>}, {pipeline_mode = #tpu.pipeline_mode<synchronous>, transform_indices = @transform_3, window_bounds = array<i64: 1, 512>}, {pipeline_mode = #tpu.pipeline_mode<synchronous>, transform_indices = @transform_4, window_bounds = array<i64: 32, 512>}]} {
    %c0_i32 = arith.constant 0 : i32
    %0 = arith.cmpi eq, %arg0, %c0_i32 : i32
    %1 = arith.extui %0 : i1 to i32
    %c0_i32_0 = arith.constant 0 : i32
    %2 = arith.cmpi ne, %1, %c0_i32_0 : i32
    scf.if %2 {
      %cst_9 = arith.constant 0.000000e+00 : f32
      %12 = vector.broadcast %cst_9 : f32 to vector<32x512xf32>
      %c0_10 = arith.constant 0 : index
      %c0_11 = arith.constant 0 : index
      %13 = vector.load %arg6[%c0_10, %c0_11] : memref<32x512xf32, #tpu.memory_space<vmem>>, vector<32x512xf32>
      tpu.vector_store %arg6[%c0_10, %c0_11], %12 {strides = array<i32>} : memref<32x512xf32, #tpu.memory_space<vmem>>, vector<32x512xf32>,
    } else {
    }
    %c0 = arith.constant 0 : index
    %c0_1 = arith.constant 0 : index
    %3 = vector.load %arg6[%c0, %c0_1] : memref<32x512xf32, #tpu.memory_space<vmem>>, vector<32x512xf32>
    %c0_2 = arith.constant 0 : index
    %c0_3 = arith.constant 0 : index
    %4 = vector.load %arg1[%c0_2, %c0_3] : memref<32x512xbf16, #tpu.memory_space<vmem>>, vector<32x512xbf16>
    %c0_4 = arith.constant 0 : index
    %c0_5 = arith.constant 0 : index
    %5 = vector.load %arg2[%c0_4, %c0_5] : memref<512x512xbf16, #tpu.memory_space<vmem>>, vector<512x512xbf16>
    %cst = arith.constant dense<0.000000e+00> : vector<32x512xf32>
    %6 = tpu.matmul %4, %5, %cst {dimension_numbers = #tpu.dot_dimension_numbers<[1], [0], [0], [1], [0, 0, 1, 1], [], []>} : vector<32x512xbf16>, vector<512x512xbf16>, vector<32x512xf32> -> vector<32x512xf32>
    %7 = arith.addf %3, %6 : vector<32x512xf32>
    %c0_6 = arith.constant 0 : index
    %c0_7 = arith.constant 0 : index
    %8 = vector.load %arg6[%c0_6, %c0_7] : memref<32x512xf32, #tpu.memory_space<vmem>>, vector<32x512xf32>
    tpu.vector_store %arg6[%c0_6, %c0_7], %7 {strides = array<i32>} : memref<32x512xf32, #tpu.memory_space<vmem>>, vector<32x512xf32>,
    %c7_i32 = arith.constant 7 : i32
    %9 = arith.cmpi eq, %arg0, %c7_i32 : i32
    %10 = arith.extui %9 : i1 to i32
    %c0_i32_8 = arith.constant 0 : i32
    %11 = arith.cmpi ne, %10, %c0_i32_8 : i32
    scf.if %11 {
      %c0_9 = arith.constant 0 : index
      %c0_10 = arith.constant 0 : index
      %12 = vector.load %arg6[%c0_9, %c0_10] : memref<32x512xf32, #tpu.memory_space<vmem>>, vector<32x512xf32>
      %cst_11 = arith.constant dense<0.000000e+00> : vector<512xf32>
      %13 = vector.multi_reduction <add>, %12, %cst_11 [0] : vector<32x512xf32> to vector<512xf32>
      %14 = vector.shape_cast %13 : vector<512xf32> to vector<1x512xf32>
      %cst_12 = arith.constant 3.200000e+01 : f32
      %15 = vector.broadcast %cst_12 : f32 to vector<1x512xf32>
      %16 = arith.divf %14, %15 : vector<1x512xf32>
      %17 = vector.broadcast %16 : vector<1x512xf32> to vector<32x512xf32>
      %18 = arith.subf %12, %17 : vector<32x512xf32>
      %19 = arith.mulf %18, %18 : vector<32x512xf32>
      %cst_13 = arith.constant dense<0.000000e+00> : vector<512xf32>
      %20 = vector.multi_reduction <add>, %19, %cst_13 [0] : vector<32x512xf32> to vector<512xf32>
      %21 = vector.shape_cast %20 : vector<512xf32> to vector<1x512xf32>
      %cst_14 = arith.constant 3.200000e+01 : f32
      %22 = vector.broadcast %cst_14 : f32 to vector<1x512xf32>
      %23 = arith.divf %21, %22 : vector<1x512xf32>
      %24 = vector.broadcast %16 : vector<1x512xf32> to vector<32x512xf32>
      %25 = arith.subf %12, %24 : vector<32x512xf32>
      %cst_15 = arith.constant 9.99999974E-6 : f32
      %26 = vector.broadcast %cst_15 : f32 to vector<1x512xf32>
      %27 = arith.addf %23, %26 : vector<1x512xf32>
      %28 = math.rsqrt %27 : vector<1x512xf32>
      %29 = vector.broadcast %28 : vector<1x512xf32> to vector<32x512xf32>
      %30 = arith.mulf %25, %29 : vector<32x512xf32>
      %c0_16 = arith.constant 0 : index
      %c0_17 = arith.constant 0 : index
      %31 = vector.load %arg3[%c0_16, %c0_17] : memref<1x512xf32, #tpu.memory_space<vmem>>, vector<1x512xf32>
      %32 = vector.broadcast %31 : vector<1x512xf32> to vector<32x512xf32>
      %33 = arith.mulf %30, %32 : vector<32x512xf32>
      %c0_18 = arith.constant 0 : index
      %c0_19 = arith.constant 0 : index
      %34 = vector.load %arg4[%c0_18, %c0_19] : memref<1x512xf32, #tpu.memory_space<vmem>>, vector<1x512xf32>
      %35 = vector.broadcast %34 : vector<1x512xf32> to vector<32x512xf32>
      %36 = arith.addf %33, %35 : vector<32x512xf32>
      %cst_20 = arith.constant 0.000000e+00 : f32
      %37 = vector.broadcast %cst_20 : f32 to vector<32x512xf32>
      %38 = arith.cmpf oge, %36, %37 : vector<32x512xf32>
      %cst_21 = arith.constant 2.000000e-01 : f32
      %39 = vector.broadcast %cst_21 : f32 to vector<32x512xf32>
      %40 = arith.mulf %39, %36 : vector<32x512xf32>
      %41 = arith.select %38, %36, %40 : vector<32x512xi1>, vector<32x512xf32>
      %42 = arith.truncf %41 : vector<32x512xf32> to vector<32x512xbf16>
      %c0_22 = arith.constant 0 : index
      %c0_23 = arith.constant 0 : index
      %43 = vector.load %arg5[%c0_22, %c0_23] : memref<32x512xbf16, #tpu.memory_space<vmem>>, vector<32x512xbf16>
      tpu.vector_store %arg5[%c0_22, %c0_23], %42 {strides = array<i32>} : memref<32x512xbf16, #tpu.memory_space<vmem>>, vector<32x512xbf16>,
    } else {
    }
    return
  }
  func.func @transform_0(%arg0: i32) -> (i32, i32) {
    %c0_i32 = arith.constant 0 : i32
    %c0_i32_0 = arith.constant 0 : i32
    return %c0_i32, %arg0 : i32, i32
  }
  func.func @transform_1(%arg0: i32) -> (i32, i32) {
    %c0_i32 = arith.constant 0 : i32
    %c0_i32_0 = arith.constant 0 : i32
    return %arg0, %c0_i32 : i32, i32
  }
  func.func @transform_2(%arg0: i32) -> (i32, i32) {
    %c0_i32 = arith.constant 0 : i32
    %c0_i32_0 = arith.constant 0 : i32
    %c0_i32_1 = arith.constant 0 : i32
    return %c0_i32, %c0_i32_0 : i32, i32
  }
  func.func @transform_3(%arg0: i32) -> (i32, i32) {
    %c0_i32 = arith.constant 0 : i32
    %c0_i32_0 = arith.constant 0 : i32
    %c0_i32_1 = arith.constant 0 : i32
    return %c0_i32, %c0_i32_0 : i32, i32
  }
  func.func @transform_4(%arg0: i32) -> (i32, i32) {
    %c0_i32 = arith.constant 0 : i32
    %c0_i32_0 = arith.constant 0 : i32
    %c0_i32_1 = arith.constant 0 : i32
    return %c0_i32, %c0_i32_0 : i32, i32
  }
}

module attributes {stable_mosaic.version = 11 : i64} {
  func.func @_conv1_sigmoid_kernel(%arg0: memref<2x8192xbf16, #tpu.memory_space<vmem>>, %arg1: memref<1x8192xbf16, #tpu.memory_space<vmem>>, %arg2: memref<2x1xf32, #tpu.memory_space<vmem>>) attributes {dimension_semantics = [], scalar_prefetch = 0 : i64, scratch_operands = 0 : i64, tpu.core_type = #tpu.core_type<tc>} {
    %c0 = arith.constant 0 : index
    %c0_0 = arith.constant 0 : index
    %0 = vector.load %arg0[%c0, %c0_0] : memref<2x8192xbf16, #tpu.memory_space<vmem>>, vector<2x8192xbf16>
    %1 = arith.extf %0 : vector<2x8192xbf16> to vector<2x8192xf32>
    %c0_1 = arith.constant 0 : index
    %c0_2 = arith.constant 0 : index
    %2 = vector.load %arg1[%c0_1, %c0_2] : memref<1x8192xbf16, #tpu.memory_space<vmem>>, vector<1x8192xbf16>
    %3 = arith.extf %2 : vector<1x8192xbf16> to vector<1x8192xf32>
    %4 = vector.broadcast %3 : vector<1x8192xf32> to vector<2x8192xf32>
    %5 = arith.mulf %1, %4 : vector<2x8192xf32>
    %cst = arith.constant dense<0.000000e+00> : vector<2xf32>
    %6 = vector.multi_reduction <add>, %5, %cst [1] : vector<2x8192xf32> to vector<2xf32>
    %7 = vector.shape_cast %6 : vector<2xf32> to vector<2x1xf32>
    %cst_3 = arith.constant 0.000000e+00 : f32
    %8 = vector.broadcast %cst_3 : f32 to vector<2x1xf32>
    %9 = arith.subf %8, %7 : vector<2x1xf32>
    %10 = math.exp %9 : vector<2x1xf32>
    %cst_4 = arith.constant 1.000000e+00 : f32
    %11 = vector.broadcast %cst_4 : f32 to vector<2x1xf32>
    %12 = arith.addf %11, %10 : vector<2x1xf32>
    %cst_5 = arith.constant 1.000000e+00 : f32
    %13 = vector.broadcast %cst_5 : f32 to vector<2x1xf32>
    %14 = arith.divf %13, %12 : vector<2x1xf32>
    %c0_6 = arith.constant 0 : index
    %c0_7 = arith.constant 0 : index
    %15 = vector.load %arg2[%c0_6, %c0_7] : memref<2x1xf32, #tpu.memory_space<vmem>>, vector<2x1xf32>
    tpu.vector_store %arg2[%c0_6, %c0_7], %14 {strides = array<i32>} : memref<2x1xf32, #tpu.memory_space<vmem>>, vector<2x1xf32>,
    return
  }
}

</mosaic_0001>

<bundles_post_ra>
// kernel: discriminator_forward.4
= control target key start
LH: loop header
LB: loop body
LE: loop exit
PB: predicated region body
PF: predicated region fallthrough
CT: control target
= control target key end

     0   :  { %s4509_s1 = inlined_call_operand.vmem [shape: bf16[128,128], index: 1, kind: input, shape index: {}]   ;;  %s4510_s0 = inlined_call_operand.vmem [shape: bf16[512,128], index: 0, kind: input, shape index: {}]   ;;  %s4511_s2 = inlined_call_operand.vmem [shape: f32[1,128], index: 2, kind: input, shape index: {}]   ;;  %s4512_s3 = inlined_call_operand.vmem [shape: f32[1,128], index: 3, kind: input, shape index: {}]   ;;  %s4513_s4 = inlined_call_operand.vmem [shape: bf16[512,128], index: 4, kind: output, shape index: {}]  }
   0x1   :  { %v2444_v0 = vld [vmem:[%s4509_s1 + $0x38] sm:$0xff]   ;;  %v2445_v1 = vld [vmem:[%s4509_s1 + $0x30] sm:$0xff]   ;;  %v2446_v2 = vld [vmem:[%s4509_s1 + $0x28] sm:$0xff]  }
   0x2   :  { %2348 = vmatprep.subr.bf16.mxu0 %v2444_v0  ;;  %2428 = vmatprep.subr.bf16.mxu1 %v2444_v0  ;;  %v2447_v3 = vld [vmem:[%s4509_s1 + $0x20] sm:$0xff]   ;;  %v2448_v5 = vld [vmem:[%s4509_s1 + $0x18] sm:$0xff]   ;;  %v2449_v6 = vld [vmem:[%s4509_s1 + $0x10] sm:$0xff]  }
   0x3   :  { %2349 = vmatpush3.bf16.msra.mxu0 %v2444_v0  ;;  %2436 = vmatpush3.bf16.msra.mxu1 %v2444_v0  ;;  %v2452_v4 = vld [vmem:[%s4510_s0] sm:$0xff]   ;;  %v2450_v7 = vld [vmem:[%s4509_s1 + $0x8] sm:$0xff]   ;;  %v2454_v11 = vld [vmem:[%s4510_s0 + $0x10] sm:$0xff]  }
   0x4   :  { %2350 = vmatprep.subr.bf16.mxu0 %v2445_v1  ;;  %2429 = vmatprep.subr.bf16.mxu1 %v2445_v1  ;;  %v2451_v8 = vld [vmem:[%s4509_s1] sm:$0xff]   ;;  %v2453_v10 = vld [vmem:[%s4510_s0 + $0x8] sm:$0xff]   ;;  %v2470_v13 = vld [vmem:[%s4510_s0 + $0x90] sm:$0xff]  }
   0x5   :  { %2364 = vmatprep.mubr.bf16.mxu0 %v2452_v4  ;;  %v2468_v9 = vld [vmem:[%s4510_s0 + $0x80] sm:$0xff]   ;;  %v2469_v12 = vld [vmem:[%s4510_s0 + $0x88] sm:$0xff]   ;;  %v2455_v14 = vld [vmem:[%s4510_s0 + $0x18] sm:$0xff]  }
   0x6   :  { %2396 = vmatprep.mubr.bf16.mxu1 %v2468_v9  ;;  %v2456_v15 = vld [vmem:[%s4510_s0 + $0x20] sm:$0xff]   ;;  %v2471_v16 = vld [vmem:[%s4510_s0 + $0x98] sm:$0xff]   ;;  %v2457_v18 = vld [vmem:[%s4510_s0 + $0x28] sm:$0xff]  }
   0x7   :  { %2351 = vmatpush3.bf16.msra.mxu0 %v2445_v1  ;;  %2437 = vmatpush3.bf16.msra.mxu1 %v2445_v1  ;;  %v2472_v17 = vld [vmem:[%s4510_s0 + $0xa0] sm:$0xff]   ;;  %v2473_v19 = vld [vmem:[%s4510_s0 + $0xa8] sm:$0xff]   ;;  %v2458_v20 = vld [vmem:[%s4510_s0 + $0x30] sm:$0xff]  }
   0x8   :  { %2352 = vmatprep.subr.bf16.mxu0 %v2446_v2  ;;  %2430 = vmatprep.subr.bf16.mxu1 %v2446_v2  ;;  %v2474_v21 = vld [vmem:[%s4510_s0 + $0xb0] sm:$0xff]   ;;  %v2459_v22 = vld [vmem:[%s4510_s0 + $0x38] sm:$0xff]   ;;  %v2460_v24 = vld [vmem:[%s4510_s0 + $0x40] sm:$0xff]  }
   0x9   :  { %v2475_v23 = vld [vmem:[%s4510_s0 + $0xb8] sm:$0xff]   ;;  %v2476_v25 = vld [vmem:[%s4510_s0 + $0xc0] sm:$0xff]   ;;  %v2461_v26 = vld [vmem:[%s4510_s0 + $0x48] sm:$0xff]  }
   0xa   :  { %v2477_v27 = vld [vmem:[%s4510_s0 + $0xc8] sm:$0xff]   ;;  %v2462_v28 = vld [vmem:[%s4510_s0 + $0x50] sm:$0xff]   ;;  %v2463_v30 = vld [vmem:[%s4510_s0 + $0x58] sm:$0xff]  }
   0xb   :  { %2353 = vmatpush3.bf16.msra.mxu0 %v2446_v2  ;;  %2438 = vmatpush3.bf16.msra.mxu1 %v2446_v2  ;;  %v2478_v29 = vld [vmem:[%s4510_s0 + $0xd0] sm:$0xff]   ;;  %v2479_v31 = vld [vmem:[%s4510_s0 + $0xd8] sm:$0xff]   ;;  %v2464_v32 = vld [vmem:[%s4510_s0 + $0x60] sm:$0xff]  }
   0xc   :  { %2354 = vmatprep.subr.bf16.mxu0 %v2447_v3  ;;  %2431 = vmatprep.subr.bf16.mxu1 %v2447_v3  ;;  %v2480_v33 = vld [vmem:[%s4510_s0 + $0xe0] sm:$0xff]   ;;  %v2465_v34 = vld [vmem:[%s4510_s0 + $0x68] sm:$0xff]   ;;  %v2466_v36 = vld [vmem:[%s4510_s0 + $0x70] sm:$0xff]  }
   0xd   :  { %v2481_v35 = vld [vmem:[%s4510_s0 + $0xe8] sm:$0xff]   ;;  %v2482_v37 = vld [vmem:[%s4510_s0 + $0xf0] sm:$0xff]   ;;  %v2467_v38 = vld [vmem:[%s4510_s0 + $0x78] sm:$0xff]  }
   0xe   :  { %v2483_v39 = vld [vmem:[%s4510_s0 + $0xf8] sm:$0xff]  }
   0xf   :  { %2355 = vmatpush3.bf16.msra.mxu0 %v2447_v3  ;;  %2439 = vmatpush3.bf16.msra.mxu1 %v2447_v3 }
  0x10   :  { %2356 = vmatprep.subr.bf16.mxu0 %v2448_v5  ;;  %2432 = vmatprep.subr.bf16.mxu1 %v2448_v5 }
  0x13   :  { %2357 = vmatpush3.bf16.msra.mxu0 %v2448_v5  ;;  %2440 = vmatpush3.bf16.msra.mxu1 %v2448_v5 }
  0x14   :  { %2358 = vmatprep.subr.bf16.mxu0 %v2449_v6  ;;  %2433 = vmatprep.subr.bf16.mxu1 %v2449_v6 }
  0x17   :  { %2359 = vmatpush3.bf16.msra.mxu0 %v2449_v6  ;;  %2441 = vmatpush3.bf16.msra.mxu1 %v2449_v6 }
  0x18   :  { %2360 = vmatprep.subr.bf16.mxu0 %v2450_v7  ;;  %2434 = vmatprep.subr.bf16.mxu1 %v2450_v7 }
  0x1b   :  { %2361 = vmatpush3.bf16.msra.mxu0 %v2450_v7  ;;  %2442 = vmatpush3.bf16.msra.mxu1 %v2450_v7 }
  0x1c   :  { %2362 = vmatprep.subr.bf16.mxu0 %v2451_v8  ;;  %2435 = vmatprep.subr.bf16.mxu1 %v2451_v8 }
  0x1f   :  { %2363 = vmatpush3.bf16.msra.mxu0 %v2451_v8  ;;  %2443 = vmatpush3.bf16.msra.mxu1 %v2451_v8 }
  0x22   :  { %2365 = vmatmul.mubr.bf16.vlgmr.msra.gmra.mxu0 %v2453_v10  ;;  %2397 = vmatmul.mubr.bf16.vlgmr.msra.gmra.mxu1 %v2469_v12 }
  0x23   :  { %2368 = vmatprep.mubr.bf16.mxu0 %v2454_v11  ;;  %2400 = vmatprep.mubr.bf16.mxu1 %v2470_v13 }
  0x2a   :  { %2369 = vmatmul.mubr.bf16.gmra.mxu0 %v2455_v14  ;;  %2401 = vmatmul.mubr.bf16.gmra.mxu1 %v2471_v16 }
  0x2b   :  { %2372 = vmatprep.mubr.bf16.mxu0 %v2456_v15  ;;  %2404 = vmatprep.mubr.bf16.mxu1 %v2472_v17 }
  0x32   :  { %2373 = vmatmul.mubr.bf16.gmra.mxu0 %v2457_v18  ;;  %2405 = vmatmul.mubr.bf16.gmra.mxu1 %v2473_v19 }
  0x33   :  { %2376 = vmatprep.mubr.bf16.mxu0 %v2458_v20  ;;  %2408 = vmatprep.mubr.bf16.mxu1 %v2474_v21 }
  0x3a   :  { %2377 = vmatmul.mubr.bf16.gmra.mxu0 %v2459_v22  ;;  %2409 = vmatmul.mubr.bf16.gmra.mxu1 %v2475_v23 }
  0x3b   :  { %2380 = vmatprep.mubr.bf16.mxu0 %v2460_v24  ;;  %2412 = vmatprep.mubr.bf16.mxu1 %v2476_v25 }
  0x42   :  { %2381 = vmatmul.mubr.bf16.gmra.mxu0 %v2461_v26  ;;  %2413 = vmatmul.mubr.bf16.gmra.mxu1 %v2477_v27 }
  0x43   :  { %2384 = vmatprep.mubr.bf16.mxu0 %v2462_v28  ;;  %2416 = vmatprep.mubr.bf16.mxu1 %v2478_v29 }
  0x4a   :  { %2385 = vmatmul.mubr.bf16.gmra.mxu0 %v2463_v30  ;;  %2417 = vmatmul.mubr.bf16.gmra.mxu1 %v2479_v31 }
  0x4b   :  { %2388 = vmatprep.mubr.bf16.mxu0 %v2464_v32  ;;  %2420 = vmatprep.mubr.bf16.mxu1 %v2480_v33 }
  0x52   :  { %2389 = vmatmul.mubr.bf16.gmra.mxu0 %v2465_v34  ;;  %2421 = vmatmul.mubr.bf16.gmra.mxu1 %v2481_v35 }
  0x53   :  { %2392 = vmatprep.mubr.bf16.mxu0 %v2466_v36  ;;  %2424 = vmatprep.mubr.bf16.mxu1 %v2482_v37 }
  0x5a   :  { %2393 = vmatmul.mubr.bf16.gmra.mxu0 %v2467_v38  ;;  %2425 = vmatmul.mubr.bf16.gmra.mxu1 %v2483_v39 }
  0xe2   :  { %v2631_v40 = vpop.f32.mrf.mxu0  ;;  %v2635_v42 = vpop.f32.mrf.mxu1 }
  0xe4   :  { %v2633_v41 = vpop.f32.mrf.mxu0  ;;  %v2641_v45 = vpop.f32.mrf.mxu1 }
  0xe6   :  { %v2637_v43 = vpop.f32.mrf.mxu0  ;;  %v2650_v50 = vpop.f32.mrf.mxu1 }
  0xe8   :  { %v2639_v44 = vpop.f32.mrf.mxu0  ;;  %v2658_v55 = vpop.f32.mrf.mxu1 }
  0xe9   :  { %v954_v46 = vadd.f32 %v2639_v44, %v2633_v41 }
  0xea   :  { %v2645_v47 = vpop.f32.mrf.mxu0  ;;  %v2666_v60 = vpop.f32.mrf.mxu1 }
  0xeb   :  { %v955_v48 = vadd.f32 %v2631_v40, %v954_v46 }
  0xec   :  { %v2648_v49 = vpop.f32.mrf.mxu0  ;;  %v2674_v1 = vpop.f32.mrf.mxu1 }
  0xed   :  { %v956_v51 = vadd.f32 %v2637_v43, %v955_v48 }
  0xee   :  { %v2653_v52 = vpop.f32.mrf.mxu0  ;;  %v2682_v6 = vpop.f32.mrf.mxu1 }
  0xef   :  { %v957_v53 = vadd.f32 %v956_v51, %v2648_v49  ;;  %4581 = vst [vmem:[#allocation3_spill] sm:$0xff] %v2682_v6 }
  0xf0   :  { %v2656_v54 = vpop.f32.mrf.mxu0  ;;  %v2690_v11 = vpop.f32.mrf.mxu1 }
  0xf1   :  { %v958_v56 = vadd.f32 %v957_v53, %v2656_v54 }
  0xf2   :  { %v2661_v57 = vpop.f32.mrf.mxu0  ;;  %v2698_v16 = vpop.f32.mrf.mxu1 }
  0xf3   :  { %v959_v58 = vadd.f32 %v2645_v47, %v958_v56 }
  0xf4   :  { %v2664_v59 = vpop.f32.mrf.mxu0  ;;  %v2706_v21 = vpop.f32.mrf.mxu1 }
  0xf5   :  { %v960_v61 = vadd.f32 %v2653_v52, %v959_v58 }
  0xf6   :  { %v2669_v62 = vpop.f32.mrf.mxu0  ;;  %v2714_v26 = vpop.f32.mrf.mxu1 }
  0xf7   :  { %v961_v63 = vadd.f32 %v960_v61, %v2664_v59  ;;  %4582 = vst [vmem:[#allocation4_spill] sm:$0xff] %v2714_v26 }
  0xf8   :  { %v2672_v0 = vpop.f32.mrf.mxu0  ;;  %v2722_v31 = vpop.f32.mrf.mxu1 }
  0xf9   :  { %v962_v2 = vadd.f32 %v961_v63, %v2672_v0  ;;  %4583 = vst [vmem:[#allocation5_spill] sm:$0xff] %v2722_v31 }
  0xfa   :  { %v2677_v3 = vpop.f32.mrf.mxu0  ;;  %v2730_v36 = vpop.f32.mrf.mxu1 }
  0xfb   :  { %v963_v4 = vadd.f32 %v2661_v57, %v962_v2 }
  0xfc   :  { %v2680_v5 = vpop.f32.mrf.mxu0  ;;  %v2738_v48 = vpop.f32.mrf.mxu1 }
  0xfd   :  { %v964_v7 = vadd.f32 %v2669_v62, %v963_v4 }
  0xfe   :  { %v2685_v8 = vpop.f32.mrf.mxu0  ;;  %v2746_v61 = vpop.f32.mrf.mxu1 }
  0xff   :  { %v965_v9 = vadd.f32 %v964_v7, %v2680_v5  ;;  %4584 = vst [vmem:[#allocation6_spill] sm:$0xff] %v2746_v61 }
 0x100   :  { %v2688_v10 = vpop.f32.mrf.mxu0 }
 0x101   :  { %v966_v12 = vadd.f32 %v965_v9, %v2688_v10  ;;  %v2754_v9 = vpop.f32.mrf.mxu1 }
 0x102   :  { %v2693_v13 = vpop.f32.mrf.mxu0  ;;  %4585 = vst [vmem:[#allocation7_spill] sm:$0xff] %v2754_v9 }
 0x103   :  { %v967_v14 = vadd.f32 %v2677_v3, %v966_v12 }
 0x104   :  { %v2696_v15 = vpop.f32.mrf.mxu0 }
 0x105   :  { %v968_v17 = vadd.f32 %v2685_v8, %v967_v14 }
 0x106   :  { %v2701_v18 = vpop.f32.mrf.mxu0 }
 0x107   :  { %v969_v19 = vadd.f32 %v968_v17, %v2696_v15  ;;  %v2758_v17 = vpop.f32.mrf.mxu1 }
 0x108   :  { %v2704_v20 = vpop.f32.mrf.mxu0  ;;  %4586 = vst [vmem:[#allocation8_spill] sm:$0xff] %v2758_v17 }
 0x109   :  { %v970_v22 = vadd.f32 %v969_v19, %v2704_v20 }
 0x10a   :  { %v2709_v23 = vpop.f32.mrf.mxu0 }
 0x10b   :  { %v971_v24 = vadd.f32 %v2693_v13, %v970_v22 }
 0x10c   :  { %v2712_v25 = vpop.f32.mrf.mxu0 }
 0x10d   :  { %v972_v27 = vadd.f32 %v2701_v18, %v971_v24  ;;  %v2762_v24 = vpop.f32.mrf.mxu1 }
 0x10e   :  { %v2717_v28 = vpop.f32.mrf.mxu0 }
 0x10f   :  { %v973_v29 = vadd.f32 %v972_v27, %v2712_v25 }
 0x110   :  { %v2720_v30 = vpop.f32.mrf.mxu0 }
 0x111   :  { %v974_v32 = vadd.f32 %v973_v29, %v2720_v30 }
 0x112   :  { %v2725_v33 = vpop.f32.mrf.mxu0 }
 0x113   :  { %v975_v34 = vadd.f32 %v2709_v23, %v974_v32  ;;  %v2766_v32 = vpop.f32.mrf.mxu1 }
 0x114   :  { %v2728_v35 = vpop.f32.mrf.mxu0  ;;  %4587 = vst [vmem:[#allocation9_spill] sm:$0xff] %v2766_v32 }
 0x115   :  { %v976_v37 = vadd.f32 %v2717_v28, %v975_v34 }
 0x116   :  { %v2733_v38 = vpop.f32.mrf.mxu0 }
 0x117   :  { %v977_v39 = vadd.f32 %v976_v37, %v2728_v35 }
 0x118   :  { %v2736_v46 = vpop.f32.mrf.mxu0 }
 0x119   :  { %v978_v51 = vadd.f32 %v977_v39, %v2736_v46  ;;  %v2770_v39 = vpop.f32.mrf.mxu1 }
 0x11a   :  { %v2741_v53 = vpop.f32.mrf.mxu0  ;;  %4588 = vst [vmem:[#allocation10_spill] sm:$0xff] %v2770_v39 }
 0x11b   :  { %v979_v56 = vadd.f32 %v2725_v33, %v978_v51 }
 0x11c   :  { %v2744_v58 = vpop.f32.mrf.mxu0 }
 0x11d   :  { %v980_v63 = vadd.f32 %v2733_v38, %v979_v56 }
 0x11e   :  { %v2749_v2 = vpop.f32.mrf.mxu0 }
 0x11f   :  { %v981_v4 = vadd.f32 %v980_v63, %v2744_v58  ;;  %v2774_v63 = vpop.f32.mrf.mxu1 }
 0x120   :  { %v2752_v7 = vpop.f32.mrf.mxu0  ;;  %4589 = vst [vmem:[#allocation11_spill] sm:$0xff] %v2774_v63 }
 0x121   :  { %v982_v12 = vadd.f32 %v981_v4, %v2752_v7 }
 0x123   :  { %v983_v14 = vadd.f32 %v2741_v53, %v982_v12 }
 0x125   :  { %v984_v19 = vadd.f32 %v2749_v2, %v983_v14  ;;  %v2778_v14 = vpop.f32.mrf.mxu1 }
 0x126   :  { %4590 = vst [vmem:[#allocation12_spill] sm:$0xff] %v2778_v14 }
 0x127   :  { %v985_v22 = vadd.f32 %v984_v19, %v2641_v45 }
 0x129   :  { %v986_v27 = vadd.f32 %v985_v22, %v2658_v55 }
 0x12b   :  { %v987_v29 = vadd.f32 %v2635_v42, %v986_v27  ;;  %v2782_v27 = vpop.f32.mrf.mxu1 }
 0x12c   :  { %4591 = vst [vmem:[#allocation13_spill] sm:$0xff] %v2782_v27 }
 0x12d   :  { %v988_v34 = vadd.f32 %v2650_v50, %v987_v29 }
 0x12f   :  { %v989_v37 = vadd.f32 %v988_v34, %v2674_v1 }
 0x131   :  { %v990_v51 = vadd.f32 %v989_v37, %v2690_v11  ;;  %v2786_v37 = vpop.f32.mrf.mxu1 }
 0x132   :  { %4592 = vst [vmem:[#allocation14_spill] sm:$0xff] %v2786_v37 }
 0x133   :  { %v991_v56 = vadd.f32 %v2666_v60, %v990_v51 }
 0x135   :  { %v992_v4 = vadd.f32 %v2682_v6, %v991_v56  ;;  %v2790_v6 = vpop.f32.mrf.mxu1 }
 0x137   :  { %v993_v12 = vadd.f32 %v992_v4, %v2706_v21 }
 0x139   :  { %v994_v19 = vadd.f32 %v993_v12, %v2722_v31  ;;  %v2794_v31 = vpop.f32.mrf.mxu1 }
 0x13a   :  { %4593 = vst [vmem:[#allocation15_spill] sm:$0xff] %v2794_v31 }
 0x13b   :  { %v995_v22 = vadd.f32 %v2698_v16, %v994_v19 }
 0x13d   :  { %v996_v29 = vadd.f32 %v2714_v26, %v995_v22  ;;  %v2798_v26 = vpop.f32.mrf.mxu1 }
 0x13f   :  { %v997_v34 = vadd.f32 %v996_v29, %v2738_v48 }
 0x141   :  { %v998_v51 = vadd.f32 %v997_v34, %v2754_v9  ;;  %v2802_v9 = vpop.f32.mrf.mxu1 }
 0x142   :  { %4594 = vst [vmem:[#allocation16_spill] sm:$0xff] %v2802_v9 }
 0x143   :  { %v999_v56 = vadd.f32 %v2730_v36, %v998_v51 }
 0x145   :  { %v1000_v4 = vadd.f32 %v2746_v61, %v999_v56  ;;  %v2806_v61 = vpop.f32.mrf.mxu1 }
 0x147   :  { %v1001_v12 = vadd.f32 %v1000_v4, %v2762_v24 }
 0x149   :  { %v1002_v19 = vadd.f32 %v1001_v12, %v2770_v39  ;;  %v2810_v39 = vpop.f32.mrf.mxu1 }
 0x14b   :  { %v1003_v22 = vadd.f32 %v2758_v17, %v1002_v19 }
 0x14d   :  { %v1004_v29 = vadd.f32 %v2766_v32, %v1003_v22  ;;  %v2814_v32 = vpop.f32.mrf.mxu1 }
 0x14f   :  { %v1005_v34 = vadd.f32 %v1004_v29, %v2778_v14 }
 0x151   :  { %v1006_v51 = vadd.f32 %v1005_v34, %v2786_v37  ;;  %v747_v37 = vpop.f32.mrf.mxu1 }
 0x153   :  { %v1007_v56 = vadd.f32 %v2774_v63, %v1006_v51 }
 0x155   :  { %v1008_v4 = vadd.f32 %v2782_v27, %v1007_v56 }
 0x157   :  { %v1009_v12 = vadd.f32 %v1008_v4, %v2794_v31 }
 0x159   :  { %v1010_v19 = vadd.f32 %v1009_v12, %v2802_v9 }
 0x15b   :  { %v1011_v22 = vadd.f32 %v2790_v6, %v1010_v19 }
 0x15d   :  { %v1012_v29 = vadd.f32 %v2798_v26, %v1011_v22 }
 0x15f   :  { %v1013_v34 = vadd.f32 %v1012_v29, %v2810_v39 }
 0x161   :  { %v1014_v51 = vadd.f32 %v1013_v34, %v747_v37 }
 0x163   :  { %v1015_v63 = vadd.f32 %v2806_v61, %v1014_v51 }
 0x165   :  { %v1016_v56 = vadd.f32 %v2814_v32, %v1015_v63 }
 0x167   :  { %v1017_v27 = vrot.slane %v1016_v56, 4 }
 0x169   :  { %v1018_v4 = vadd.f32 %v1017_v27, %v1016_v56 }
 0x16b   :  { %v1019_v31 = vrot.slane %v1018_v4, 2 }
 0x16d   :  { %v1020_v14 = vadd.f32 %v1019_v31, %v1018_v4 }
 0x16f   :  { %v1021_v17 = vrot.slane %v1020_v14, 1 }
 0x171   :  { %v1022_v12 = vadd.f32 %v1021_v17, %v1020_v14 }
 0x173   :  { %v2820_v9 = vmul.f32 0.001953125, %v1022_v12 }
 0x175   :  { %v2823_v19 = vsub.f32 %v747_v37, %v2820_v9  ;;  %v2827_v22 = vsub.f32 %v2633_v41, %v2820_v9  ;;  %v2831_v29 = vsub.f32 %v2639_v44, %v2820_v9  ;;  %v2835_v63 = vsub.f32 %v2631_v40, %v2820_v9 }
 0x176   :  { %v2843_v14 = vsub.f32 %v2637_v43, %v2820_v9  ;;  %v2847_v41 = vsub.f32 %v2648_v49, %v2820_v9  ;;  %v2853_v40 = vsub.f32 %v2656_v54, %v2820_v9  ;;  %v2859_v43 = vsub.f32 %v2645_v47, %v2820_v9 }
 0x177   :  { %v1089_v31 = vmul.f32 %v2827_v22, %v2827_v22  ;;  %v1090_v17 = vmul.f32 %v2831_v29, %v2831_v29  ;;  %v1091_v44 = vmul.f32 %v2835_v63, %v2835_v63  ;;  %v2865_v56 = vsub.f32 %v2653_v52, %v2820_v9 }
 0x178   :  { %v1092_v37 = vmul.f32 %v2843_v14, %v2843_v14  ;;  %v1093_v49 = vmul.f32 %v2847_v41, %v2847_v41  ;;  %v1094_v54 = vmul.f32 %v2853_v40, %v2853_v40  ;;  %v2871_v12 = vsub.f32 %v2664_v59, %v2820_v9 }
 0x179   :  { %v1153_v27 = vadd.f32 %v1090_v17, %v1089_v31  ;;  %v1095_v47 = vmul.f32 %v2859_v43, %v2859_v43  ;;  %v2877_v17 = vsub.f32 %v2672_v0, %v2820_v9  ;;  %v1096_v52 = vmul.f32 %v2865_v56, %v2865_v56 }
 0x17a   :  { %v1097_v59 = vmul.f32 %v2871_v12, %v2871_v12 }
 0x17b   :  { %v1154_v34 = vadd.f32 %v1153_v27, %v1091_v44  ;;  %v2883_v27 = vsub.f32 %v2661_v57, %v2820_v9  ;;  %v1098_v0 = vmul.f32 %v2877_v17, %v2877_v17 }
 0x17d   :  { %v1155_v51 = vadd.f32 %v1154_v34, %v1092_v37  ;;  %v2889_v34 = vsub.f32 %v2669_v62, %v2820_v9  ;;  %v1099_v57 = vmul.f32 %v2883_v27, %v2883_v27 }
 0x17f   :  { %v1156_v4 = vadd.f32 %v1155_v51, %v1093_v49  ;;  %v2895_v51 = vsub.f32 %v2680_v5, %v2820_v9  ;;  %v1100_v62 = vmul.f32 %v2889_v34, %v2889_v34 }
 0x181   :  { %v1157_v31 = vadd.f32 %v1156_v4, %v1094_v54  ;;  %v2901_v4 = vsub.f32 %v2688_v10, %v2820_v9  ;;  %v1101_v5 = vmul.f32 %v2895_v51, %v2895_v51 }
 0x183   :  { %v1158_v44 = vadd.f32 %v1157_v31, %v1095_v47  ;;  %v2907_v31 = vsub.f32 %v2677_v3, %v2820_v9  ;;  %v1102_v10 = vmul.f32 %v2901_v4, %v2901_v4 }
 0x185   :  { %v1159_v37 = vadd.f32 %v1158_v44, %v1096_v52  ;;  %v2913_v44 = vsub.f32 %v2685_v8, %v2820_v9  ;;  %v1103_v3 = vmul.f32 %v2907_v31, %v2907_v31 }
 0x187   :  { %v1160_v49 = vadd.f32 %v1159_v37, %v1097_v59  ;;  %v2919_v37 = vsub.f32 %v2696_v15, %v2820_v9  ;;  %v1104_v8 = vmul.f32 %v2913_v44, %v2913_v44 }
 0x189   :  { %v1161_v54 = vadd.f32 %v1160_v49, %v1098_v0  ;;  %v2925_v49 = vsub.f32 %v2704_v20, %v2820_v9  ;;  %v1105_v15 = vmul.f32 %v2919_v37, %v2919_v37 }
 0x18b   :  { %v1162_v47 = vadd.f32 %v1161_v54, %v1099_v57  ;;  %v2931_v54 = vsub.f32 %v2693_v13, %v2820_v9  ;;  %v1106_v20 = vmul.f32 %v2925_v49, %v2925_v49 }
 0x18d   :  { %v1163_v52 = vadd.f32 %v1162_v47, %v1100_v62  ;;  %v2937_v47 = vsub.f32 %v2701_v18, %v2820_v9  ;;  %v1107_v13 = vmul.f32 %v2931_v54, %v2931_v54 }
 0x18f   :  { %v1164_v59 = vadd.f32 %v1163_v52, %v1101_v5  ;;  %v2943_v52 = vsub.f32 %v2712_v25, %v2820_v9  ;;  %v1108_v18 = vmul.f32 %v2937_v47, %v2937_v47 }
 0x191   :  { %v1165_v0 = vadd.f32 %v1164_v59, %v1102_v10  ;;  %v2949_v59 = vsub.f32 %v2720_v30, %v2820_v9  ;;  %v1109_v25 = vmul.f32 %v2943_v52, %v2943_v52 }
 0x193   :  { %v1166_v57 = vadd.f32 %v1165_v0, %v1103_v3  ;;  %v2955_v0 = vsub.f32 %v2709_v23, %v2820_v9  ;;  %v1110_v30 = vmul.f32 %v2949_v59, %v2949_v59 }
 0x195   :  { %v1167_v62 = vadd.f32 %v1166_v57, %v1104_v8  ;;  %v2961_v57 = vsub.f32 %v2717_v28, %v2820_v9  ;;  %v1111_v23 = vmul.f32 %v2955_v0, %v2955_v0 }
 0x197   :  { %v1168_v5 = vadd.f32 %v1167_v62, %v1105_v15  ;;  %v2967_v62 = vsub.f32 %v2728_v35, %v2820_v9  ;;  %v1112_v28 = vmul.f32 %v2961_v57, %v2961_v57 }
 0x199   :  { %v1169_v10 = vadd.f32 %v1168_v5, %v1106_v20  ;;  %v2973_v5 = vsub.f32 %v2736_v46, %v2820_v9  ;;  %v1113_v35 = vmul.f32 %v2967_v62, %v2967_v62 }
 0x19b   :  { %v1170_v3 = vadd.f32 %v1169_v10, %v1107_v13  ;;  %v2979_v10 = vsub.f32 %v2725_v33, %v2820_v9  ;;  %v1114_v46 = vmul.f32 %v2973_v5, %v2973_v5 }
 0x19d   :  { %v1171_v8 = vadd.f32 %v1170_v3, %v1108_v18  ;;  %v2985_v3 = vsub.f32 %v2733_v38, %v2820_v9  ;;  %v1115_v33 = vmul.f32 %v2979_v10, %v2979_v10 }
 0x19f   :  { %v1172_v15 = vadd.f32 %v1171_v8, %v1109_v25  ;;  %v2991_v8 = vsub.f32 %v2744_v58, %v2820_v9  ;;  %v1116_v38 = vmul.f32 %v2985_v3, %v2985_v3 }
 0x1a1   :  { %v1173_v20 = vadd.f32 %v1172_v15, %v1110_v30  ;;  %v2997_v15 = vsub.f32 %v2752_v7, %v2820_v9  ;;  %v1117_v58 = vmul.f32 %v2991_v8, %v2991_v8 }
 0x1a3   :  { %v1174_v13 = vadd.f32 %v1173_v20, %v1111_v23  ;;  %v3003_v20 = vsub.f32 %v2741_v53, %v2820_v9  ;;  %v1118_v7 = vmul.f32 %v2997_v15, %v2997_v15 }
 0x1a5   :  { %v1175_v18 = vadd.f32 %v1174_v13, %v1112_v28  ;;  %v3009_v13 = vsub.f32 %v2749_v2, %v2820_v9  ;;  %v1119_v53 = vmul.f32 %v3003_v20, %v3003_v20 }
 0x1a7   :  { %v1176_v25 = vadd.f32 %v1175_v18, %v1113_v35  ;;  %4595 = vst [vmem:[#allocation17_spill] sm:$0xff] %v3009_v13  ;;  %v3015_v18 = vsub.f32 %v2641_v45, %v2820_v9  ;;  %v1120_v2 = vmul.f32 %v3009_v13, %v3009_v13 }
 0x1a9   :  { %v1177_v30 = vadd.f32 %v1176_v25, %v1114_v46  ;;  %4596 = vst [vmem:[#allocation18_spill] sm:$0xff] %v3015_v18  ;;  %v3021_v25 = vsub.f32 %v2658_v55, %v2820_v9  ;;  %v1121_v45 = vmul.f32 %v3015_v18, %v3015_v18 }
 0x1ab   :  { %v1178_v23 = vadd.f32 %v1177_v30, %v1115_v33  ;;  %4597 = vst [vmem:[#allocation19_spill] sm:$0xff] %v3021_v25  ;;  %v3027_v30 = vsub.f32 %v2635_v42, %v2820_v9  ;;  %v1122_v55 = vmul.f32 %v3021_v25, %v3021_v25 }
 0x1ad   :  { %v1179_v28 = vadd.f32 %v1178_v23, %v1116_v38  ;;  %4598 = vst [vmem:[#allocation20_spill] sm:$0xff] %v3027_v30  ;;  %v3033_v23 = vsub.f32 %v2650_v50, %v2820_v9  ;;  %v1123_v42 = vmul.f32 %v3027_v30, %v3027_v30 }
 0x1af   :  { %v1180_v35 = vadd.f32 %v1179_v28, %v1117_v58  ;;  %4599 = vst [vmem:[#allocation21_spill] sm:$0xff] %v3033_v23  ;;  %v3039_v28 = vsub.f32 %v2674_v1, %v2820_v9  ;;  %v1124_v50 = vmul.f32 %v3033_v23, %v3033_v23 }
 0x1b1   :  { %v1181_v46 = vadd.f32 %v1180_v35, %v1118_v7  ;;  %4600 = vst [vmem:[#allocation22_spill] sm:$0xff] %v3039_v28  ;;  %v3045_v35 = vsub.f32 %v2690_v11, %v2820_v9  ;;  %v1125_v1 = vmul.f32 %v3039_v28, %v3039_v28 }
 0x1b3   :  { %v1182_v33 = vadd.f32 %v1181_v46, %v1119_v53  ;;  %4601 = vst [vmem:[#allocation23_spill] sm:$0xff] %v3045_v35  ;;  %v3051_v46 = vsub.f32 %v2666_v60, %v2820_v9  ;;  %v1126_v11 = vmul.f32 %v3045_v35, %v3045_v35 }
 0x1b5   :  { %v1183_v38 = vadd.f32 %v1182_v33, %v1120_v2  ;;  %4602 = vst [vmem:[#allocation24_spill] sm:$0xff] %v3051_v46  ;;  %v4603_v33 = vld [vmem:[#allocation3_spill] sm:$0xff]  ;;  %v1127_v60 = vmul.f32 %v3051_v46, %v3051_v46 }
 0x1b7   :  { %v1184_v58 = vadd.f32 %v1183_v38, %v1121_v45  ;;  %v3057_v45 = vsub.f32 %v4603_v33, %v2820_v9  ;;  %v3075_v33 = vsub.f32 %v2698_v16, %v2820_v9 }
 0x1b9   :  { %v1185_v7 = vadd.f32 %v1184_v58, %v1122_v55  ;;  %4604 = vst [vmem:[#allocation3_spill] sm:$0xff] %v3057_v45  ;;  %v3063_v55 = vsub.f32 %v2706_v21, %v2820_v9  ;;  %4608 = vst [vmem:[#allocation26_spill] sm:$0xff] %v3075_v33  ;;  %v1131_v16 = vmul.f32 %v3075_v33, %v3075_v33 }
 0x1bb   :  { %v1186_v53 = vadd.f32 %v1185_v7, %v1123_v42  ;;  %4605 = vst [vmem:[#allocation25_spill] sm:$0xff] %v3063_v55  ;;  %v4606_v42 = vld [vmem:[#allocation5_spill] sm:$0xff]  ;;  %v1129_v21 = vmul.f32 %v3063_v55, %v3063_v55 }
 0x1bc   :  { %v3069_v7 = vsub.f32 %v4606_v42, %v2820_v9  ;;  %v3087_v42 = vsub.f32 %v2738_v48, %v2820_v9 }
 0x1bd   :  { %v1187_v2 = vadd.f32 %v1186_v53, %v1124_v50  ;;  %v1128_v50 = vmul.f32 %v3057_v45, %v3057_v45 }
 0x1be   :  { %4607 = vst [vmem:[#allocation5_spill] sm:$0xff] %v3069_v7  ;;  %4611 = vst [vmem:[#allocation27_spill] sm:$0xff] %v3087_v42  ;;  %v1133_v48 = vmul.f32 %v3087_v42, %v3087_v42 }
 0x1bf   :  { %v1188_v38 = vadd.f32 %v1187_v2, %v1125_v1  ;;  %v4609_v2 = vld [vmem:[#allocation4_spill] sm:$0xff] }
 0x1c0   :  { %v3081_v46 = vsub.f32 %v4609_v2, %v2820_v9  ;;  %v3099_v2 = vsub.f32 %v2730_v36, %v2820_v9 }
 0x1c1   :  { %v1189_v58 = vadd.f32 %v1188_v38, %v1126_v11  ;;  %v1130_v11 = vmul.f32 %v3069_v7, %v3069_v7 }
 0x1c2   :  { %4610 = vst [vmem:[#allocation4_spill] sm:$0xff] %v3081_v46  ;;  %4614 = vst [vmem:[#allocation28_spill] sm:$0xff] %v3099_v2  ;;  %v1135_v36 = vmul.f32 %v3099_v2, %v3099_v2 }
 0x1c3   :  { %v1190_v53 = vadd.f32 %v1189_v58, %v1127_v60  ;;  %v4612_v58 = vld [vmem:[#allocation7_spill] sm:$0xff] }
 0x1c4   :  { %v3093_v55 = vsub.f32 %v4612_v58, %v2820_v9  ;;  %v3111_v58 = vsub.f32 %v2762_v24, %v2820_v9 }
 0x1c5   :  { %v1191_v1 = vadd.f32 %v1190_v53, %v1128_v50  ;;  %v1132_v50 = vmul.f32 %v3081_v46, %v3081_v46 }
 0x1c6   :  { %4613 = vst [vmem:[#allocation7_spill] sm:$0xff] %v3093_v55  ;;  %4617 = vst [vmem:[#allocation29_spill] sm:$0xff] %v3111_v58  ;;  %v1137_v24 = vmul.f32 %v3111_v58, %v3111_v58 }
 0x1c7   :  { %v1192_v38 = vadd.f32 %v1191_v1, %v1129_v21  ;;  %v4615_v1 = vld [vmem:[#allocation6_spill] sm:$0xff] }
 0x1c8   :  { %v3105_v33 = vsub.f32 %v4615_v1, %v2820_v9  ;;  %v4620_v1 = vld [vmem:[#allocation8_spill] sm:$0xff] }
 0x1c9   :  { %v1193_v60 = vadd.f32 %v1192_v38, %v1130_v11  ;;  %v1134_v11 = vmul.f32 %v3093_v55, %v3093_v55  ;;  %v3123_v55 = vsub.f32 %v4620_v1, %v2820_v9  ;;  %v4624_v1 = vld [vmem:[#allocation14_spill] sm:$0xff] }
 0x1ca   :  { %4616 = vst [vmem:[#allocation6_spill] sm:$0xff] %v3105_v33 }
 0x1cb   :  { %v1194_v53 = vadd.f32 %v1193_v60, %v1131_v16  ;;  %v4618_v60 = vld [vmem:[#allocation10_spill] sm:$0xff]  ;;  %4621 = vst [vmem:[#allocation8_spill] sm:$0xff] %v3123_v55 }
 0x1cc   :  { %v3117_v42 = vsub.f32 %v4618_v60, %v2820_v9  ;;  %v4623_v60 = vld [vmem:[#allocation12_spill] sm:$0xff] }
 0x1cd   :  { %v1195_v21 = vadd.f32 %v1194_v53, %v1132_v50  ;;  %v1136_v50 = vmul.f32 %v3105_v33, %v3105_v33  ;;  %v1077_v46 = vsub.f32 %v4623_v60, %v2820_v9  ;;  %v1078_v33 = vsub.f32 %v4624_v1, %v2820_v9  ;;  %v4627_v60 = vld [vmem:[#allocation15_spill] sm:$0xff] }
 0x1ce   :  { %4619 = vst [vmem:[#allocation10_spill] sm:$0xff] %v3117_v42  ;;  %v1081_v28 = vsub.f32 %v4627_v60, %v2820_v9 }
 0x1cf   :  { %v1196_v38 = vadd.f32 %v1195_v21, %v1133_v48  ;;  %v4622_v21 = vld [vmem:[#allocation9_spill] sm:$0xff] }
 0x1d0   :  { %v1076_v2 = vsub.f32 %v4622_v21, %v2820_v9  ;;  %v1141_v21 = vmul.f32 %v1077_v46, %v1077_v46 }
 0x1d1   :  { %v1197_v16 = vadd.f32 %v1196_v38, %v1134_v11  ;;  %v1138_v11 = vmul.f32 %v3117_v42, %v3117_v42  ;;  %v4626_v42 = vld [vmem:[#allocation13_spill] sm:$0xff] }
 0x1d2   :  { %v1140_v7 = vmul.f32 %v1076_v2, %v1076_v2 }
 0x1d3   :  { %v1198_v53 = vadd.f32 %v1197_v16, %v1135_v36  ;;  %v1139_v36 = vmul.f32 %v3123_v55, %v3123_v55 }
 0x1d5   :  { %v1199_v48 = vadd.f32 %v1198_v53, %v1136_v50  ;;  %v4625_v50 = vld [vmem:[#allocation11_spill] sm:$0xff] }
 0x1d6   :  { %v1079_v53 = vsub.f32 %v4625_v50, %v2820_v9  ;;  %v1145_v50 = vmul.f32 %v1081_v28, %v1081_v28 }
 0x1d7   :  { %v1200_v38 = vadd.f32 %v1199_v48, %v1137_v24  ;;  %v1080_v24 = vsub.f32 %v4626_v42, %v2820_v9  ;;  %v1142_v48 = vmul.f32 %v1078_v33, %v1078_v33  ;;  %v1084_v42 = vsub.f32 %v2798_v26, %v2820_v9 }
 0x1d8   :  { %v1143_v55 = vmul.f32 %v1079_v53, %v1079_v53  ;;  %v1150_v26 = vmul.f32 %v2823_v19, %v2823_v19 }
 0x1d9   :  { %v1201_v16 = vadd.f32 %v1200_v38, %v1138_v11  ;;  %v4628_v38 = vld [vmem:[#allocation16_spill] sm:$0xff]  ;;  %v1144_v23 = vmul.f32 %v1080_v24, %v1080_v24 }
 0x1da   :  { %v1082_v1 = vsub.f32 %v4628_v38, %v2820_v9 }
 0x1db   :  { %v1202_v58 = vadd.f32 %v1201_v16, %v1139_v36  ;;  %v1083_v16 = vsub.f32 %v2790_v6, %v2820_v9  ;;  %v1088_v6 = vsub.f32 %v2814_v32, %v2820_v9 }
 0x1dd   :  { %v1203_v45 = vadd.f32 %v1202_v58, %v1140_v7  ;;  %v1146_v58 = vmul.f32 %v1082_v1, %v1082_v1  ;;  %v1147_v60 = vmul.f32 %v1083_v16, %v1083_v16 }
 0x1df   :  { %v1204_v35 = vadd.f32 %v1203_v45, %v1141_v21  ;;  %v1085_v21 = vsub.f32 %v2810_v39, %v2820_v9 }
 0x1e1   :  { %v1205_v11 = vadd.f32 %v1204_v35, %v1142_v48  ;;  %v1148_v48 = vmul.f32 %v1084_v42, %v1084_v42 }
 0x1e3   :  { %v1206_v36 = vadd.f32 %v1205_v11, %v1143_v55  ;;  %v1087_v55 = vsub.f32 %v2806_v61, %v2820_v9  ;;  %v1149_v11 = vmul.f32 %v1085_v21, %v1085_v21 }
 0x1e5   :  { %v1207_v7 = vadd.f32 %v1206_v36, %v1144_v23  ;;  %v1151_v36 = vmul.f32 %v1087_v55, %v1087_v55 }
 0x1e7   :  { %v1208_v45 = vadd.f32 %v1207_v7, %v1145_v50  ;;  %v1152_v7 = vmul.f32 %v1088_v6, %v1088_v6 }
 0x1e9   :  { %v1209_v35 = vadd.f32 %v1208_v45, %v1146_v58 }
 0x1eb   :  { %v1210_v30 = vadd.f32 %v1209_v35, %v1147_v60 }
 0x1ed   :  { %v1211_v38 = vadd.f32 %v1210_v30, %v1148_v48 }
 0x1ef   :  { %v1212_v23 = vadd.f32 %v1211_v38, %v1149_v11 }
 0x1f1   :  { %v1213_v50 = vadd.f32 %v1212_v23, %v1150_v26  ;;  %v4638_v26 = vld [vmem:[#allocation17_spill] sm:$0xff]  ;;  %v4639_v23 = vld [vmem:[#allocation18_spill] sm:$0xff] }
 0x1f3   :  { %v1214_v39 = vadd.f32 %v1213_v50, %v1151_v36  ;;  %v4640_v36 = vld [vmem:[#allocation19_spill] sm:$0xff]  ;;  %v4641_v50 = vld [vmem:[#allocation20_spill] sm:$0xff] }
 0x1f5   :  { %v1215_v25 = vadd.f32 %v1214_v39, %v1152_v7  ;;  %v4642_v7 = vld [vmem:[#allocation21_spill] sm:$0xff]  ;;  %v4643_v39 = vld [vmem:[#allocation22_spill] sm:$0xff] }
 0x1f7   :  { %v1216_v58 = vrot.slane %v1215_v25, 4 }
 0x1f9   :  { %v1217_v45 = vadd.f32 %v1216_v58, %v1215_v25  ;;  %v4644_v58 = vld [vmem:[#allocation23_spill] sm:$0xff] }
 0x1fb   :  { %v1218_v60 = vrot.slane %v1217_v45, 2 }
 0x1fd   :  { %v1219_v35 = vadd.f32 %v1218_v60, %v1217_v45  ;;  %v4645_v45 = vld [vmem:[#allocation24_spill] sm:$0xff] }
 0x1ff   :  { %v1220_v18 = vrot.slane %v1219_v35, 1 }
 0x201   :  { %v1221_v61 = vadd.f32 %v1220_v18, %v1219_v35  ;;  %v4646_v35 = vld [vmem:[#allocation3_spill] sm:$0xff] }
 0x203   :  { %v1222_v13 = vmul.f32 0.001953125, %v1221_v61 }
 0x205   :  { %v1223_v30 = vadd.f32 1e-05, %v1222_v13 }
 0x207   :  { %2484 = vrsqrt.f32 %v1223_v30  ;;  %v4647_v30 = vld [vmem:[#allocation25_spill] sm:$0xff] }
 0x214   :  { %v3157_v48 = vpop.eup %2484 }
 0x215   :  { %v3160_v9 = vmul.f32 %v3157_v48, %v1076_v2  ;;  %v3163_v32 = vmul.f32 %v3157_v48, %v1077_v46  ;;  %v3166_v11 = vmul.f32 %v3157_v48, %v1078_v33  ;;  %v3169_v25 = vmul.f32 %v3157_v48, %v1079_v53 }
 0x216   :  { %v3172_v38 = vmul.f32 %v3157_v48, %v1080_v24  ;;  %v3175_v13 = vmul.f32 %v3157_v48, %v1081_v28  ;;  %v3178_v18 = vmul.f32 %v3157_v48, %v1082_v1  ;;  %v3181_v2 = vmul.f32 %v3157_v48, %v1083_v16 }
 0x217   :  { %v3184_v46 = vmul.f32 %v3157_v48, %v1084_v42  ;;  %v3187_v33 = vmul.f32 %v3157_v48, %v1085_v21  ;;  %v3191_v53 = vmul.f32 %v3157_v48, %v2823_v19  ;;  %v3194_v24 = vmul.f32 %v3157_v48, %v1087_v55 }
 0x218   :  { %4629 = vst [vmem:[#allocation9_spill] sm:$0xff] %v3172_v38  ;;  %4630 = vst [vmem:[#allocation12_spill] sm:$0xff] %v3175_v13  ;;  %v3197_v28 = vmul.f32 %v3157_v48, %v1088_v6  ;;  %v1225_v1 = vmul.f32 %v3157_v48, %v2827_v22  ;;  %v1226_v16 = vmul.f32 %v3157_v48, %v2831_v29  ;;  %v4656_v13 = vld [vmem:[#allocation10_spill] sm:$0xff]  ;;  %v4657_v38 = vld [vmem:[#allocation8_spill] sm:$0xff] }
 0x219   :  { %4631 = vst [vmem:[#allocation14_spill] sm:$0xff] %v3178_v18  ;;  %4632 = vst [vmem:[#allocation11_spill] sm:$0xff] %v3181_v2  ;;  %v1227_v42 = vmul.f32 %v3157_v48, %v2835_v63  ;;  %v1228_v21 = vmul.f32 %v3157_v48, %v2843_v14  ;;  %v1229_v19 = vmul.f32 %v3157_v48, %v2847_v41  ;;  %v4655_v2 = vld [vmem:[#allocation29_spill] sm:$0xff] }
 0x21a   :  { %4633 = vst [vmem:[#allocation13_spill] sm:$0xff] %v3184_v46  ;;  %4634 = vst [vmem:[#allocation15_spill] sm:$0xff] %v3187_v33  ;;  %v1230_v55 = vmul.f32 %v3157_v48, %v2853_v40  ;;  %v1231_v6 = vmul.f32 %v3157_v48, %v2859_v43  ;;  %v1232_v22 = vmul.f32 %v3157_v48, %v2865_v56  ;;  %v4654_v33 = vld [vmem:[#allocation6_spill] sm:$0xff] }
 0x21b   :  { %4635 = vst [vmem:[#allocation16_spill] sm:$0xff] %v3191_v53  ;;  %4636 = vst [vmem:[#allocation30_spill] sm:$0xff] %v3194_v24  ;;  %v1233_v29 = vmul.f32 %v3157_v48, %v2871_v12  ;;  %v1234_v63 = vmul.f32 %v3157_v48, %v2877_v17  ;;  %v1235_v14 = vmul.f32 %v3157_v48, %v2883_v27  ;;  %v4652_v24 = vld [vmem:[#allocation7_spill] sm:$0xff]  ;;  %v4653_v53 = vld [vmem:[#allocation28_spill] sm:$0xff] }
 0x21c   :  { %4637 = vst [vmem:[#allocation31_spill] sm:$0xff] %v3197_v28  ;;  %v1236_v41 = vmul.f32 %v3157_v48, %v2889_v34  ;;  %v1237_v40 = vmul.f32 %v3157_v48, %v2895_v51  ;;  %v1238_v43 = vmul.f32 %v3157_v48, %v2901_v4  ;;  %v1239_v56 = vmul.f32 %v3157_v48, %v2907_v31  ;;  %v4651_v28 = vld [vmem:[#allocation27_spill] sm:$0xff] }
 0x21d   :  { %v1240_v12 = vmul.f32 %v3157_v48, %v2913_v44  ;;  %v1241_v17 = vmul.f32 %v3157_v48, %v2919_v37  ;;  %v1242_v27 = vmul.f32 %v3157_v48, %v2925_v49  ;;  %v1243_v34 = vmul.f32 %v3157_v48, %v2931_v54 }
 0x21e   :  { %v1244_v51 = vmul.f32 %v3157_v48, %v2937_v47  ;;  %v1245_v4 = vmul.f32 %v3157_v48, %v2943_v52  ;;  %v1246_v31 = vmul.f32 %v3157_v48, %v2949_v59  ;;  %v1247_v44 = vmul.f32 %v3157_v48, %v2955_v0 }
 0x21f   :  { %v1248_v37 = vmul.f32 %v3157_v48, %v2961_v57  ;;  %v1249_v49 = vmul.f32 %v3157_v48, %v2967_v62  ;;  %v1250_v54 = vmul.f32 %v3157_v48, %v2973_v5  ;;  %v1251_v47 = vmul.f32 %v3157_v48, %v2979_v10 }
 0x220   :  { %v1252_v52 = vmul.f32 %v3157_v48, %v2985_v3  ;;  %v1253_v59 = vmul.f32 %v3157_v48, %v2991_v8  ;;  %v1254_v0 = vmul.f32 %v3157_v48, %v2997_v15  ;;  %v1255_v57 = vmul.f32 %v3157_v48, %v3003_v20 }
 0x221   :  { %v1256_v62 = vmul.f32 %v3157_v48, %v4638_v26  ;;  %v1257_v5 = vmul.f32 %v3157_v48, %v4639_v23  ;;  %v1258_v10 = vmul.f32 %v3157_v48, %v4640_v36  ;;  %v1259_v3 = vmul.f32 %v3157_v48, %v4641_v50  ;;  %v4648_v23 = vld [vmem:[#allocation5_spill] sm:$0xff]  ;;  %v3286_v50 = vld [vmem:[%s4511_s2] ss:$0 sm:$0xff] }
 0x222   :  { %v1260_v8 = vmul.f32 %v3157_v48, %v4642_v7  ;;  %v1261_v15 = vmul.f32 %v3157_v48, %v4643_v39  ;;  %v1262_v20 = vmul.f32 %v3157_v48, %v4644_v58  ;;  %v1263_v60 = vmul.f32 %v3157_v48, %v4645_v45  ;;  %v4649_v7 = vld [vmem:[#allocation26_spill] sm:$0xff]  ;;  %v4650_v58 = vld [vmem:[#allocation4_spill] sm:$0xff] }
 0x223   :  { %v1264_v61 = vmul.f32 %v3157_v48, %v4646_v35  ;;  %v1265_v26 = vmul.f32 %v3157_v48, %v4647_v30  ;;  %v1266_v36 = vmul.f32 %v3157_v48, %v4648_v23  ;;  %v1267_v39 = vmul.f32 %v3157_v48, %v4649_v7 }
 0x224   :  { %v1268_v45 = vmul.f32 %v3157_v48, %v4650_v58  ;;  %v1269_v35 = vmul.f32 %v3157_v48, %v4651_v28  ;;  %v1270_v30 = vmul.f32 %v3157_v48, %v4652_v24  ;;  %v1271_v23 = vmul.f32 %v3157_v48, %v4653_v53 }
 0x225   :  { %v1272_v46 = vmul.f32 %v3157_v48, %v4654_v33  ;;  %v1273_v18 = vmul.f32 %v3157_v48, %v4655_v2  ;;  %v1274_v7 = vmul.f32 %v3157_v48, %v4656_v13  ;;  %v1275_v58 = vmul.f32 %v3157_v48, %v4657_v38 }
 0x226   :  { %v3307_v28 = vmul.f32 %v3286_v50, %v1225_v1  ;;  %v3310_v24 = vmul.f32 %v3286_v50, %v1226_v16  ;;  %v3313_v53 = vmul.f32 %v3286_v50, %v1227_v42  ;;  %v3316_v33 = vmul.f32 %v3286_v50, %v1228_v21 }
 0x227   :  { %v3319_v2 = vmul.f32 %v3286_v50, %v1229_v19  ;;  %v3322_v13 = vmul.f32 %v3286_v50, %v1230_v55  ;;  %v3325_v48 = vmul.f32 %v3286_v50, %v1231_v6  ;;  %v3328_v38 = vmul.f32 %v3286_v50, %v1232_v22 }
 0x228   :  { %v3331_v1 = vmul.f32 %v3286_v50, %v1233_v29  ;;  %v3334_v16 = vmul.f32 %v3286_v50, %v1234_v63  ;;  %v3337_v42 = vmul.f32 %v3286_v50, %v1235_v14  ;;  %v3340_v21 = vmul.f32 %v3286_v50, %v1236_v41 }
 0x229   :  { %v3343_v19 = vmul.f32 %v3286_v50, %v1237_v40  ;;  %v3346_v55 = vmul.f32 %v3286_v50, %v1238_v43  ;;  %v3349_v6 = vmul.f32 %v3286_v50, %v1239_v56  ;;  %v3352_v22 = vmul.f32 %v3286_v50, %v1240_v12 }
 0x22a   :  { %v3355_v29 = vmul.f32 %v3286_v50, %v1241_v17  ;;  %v3358_v63 = vmul.f32 %v3286_v50, %v1242_v27  ;;  %v3361_v14 = vmul.f32 %v3286_v50, %v1243_v34  ;;  %v3364_v41 = vmul.f32 %v3286_v50, %v1244_v51 }
 0x22b   :  { %v3367_v40 = vmul.f32 %v3286_v50, %v1245_v4  ;;  %v3370_v43 = vmul.f32 %v3286_v50, %v1246_v31  ;;  %v3373_v56 = vmul.f32 %v3286_v50, %v1247_v44  ;;  %v3376_v12 = vmul.f32 %v3286_v50, %v1248_v37 }
 0x22c   :  { %v3379_v17 = vmul.f32 %v3286_v50, %v1249_v49  ;;  %v3382_v27 = vmul.f32 %v3286_v50, %v1250_v54  ;;  %v3385_v34 = vmul.f32 %v3286_v50, %v1251_v47  ;;  %v3388_v51 = vmul.f32 %v3286_v50, %v1252_v52 }
 0x22d   :  { %v3391_v4 = vmul.f32 %v3286_v50, %v1253_v59  ;;  %v3394_v31 = vmul.f32 %v3286_v50, %v1254_v0  ;;  %v3397_v44 = vmul.f32 %v3286_v50, %v1255_v57  ;;  %v3400_v37 = vmul.f32 %v3286_v50, %v1256_v62 }
 0x22e   :  { %v3403_v49 = vmul.f32 %v3286_v50, %v1257_v5  ;;  %v3406_v54 = vmul.f32 %v3286_v50, %v1258_v10  ;;  %v3409_v47 = vmul.f32 %v3286_v50, %v1259_v3  ;;  %v3412_v52 = vmul.f32 %v3286_v50, %v1260_v8 }
 0x22f   :  { %v3415_v59 = vmul.f32 %v3286_v50, %v1261_v15  ;;  %v3418_v0 = vmul.f32 %v3286_v50, %v1262_v20  ;;  %v3421_v57 = vmul.f32 %v3286_v50, %v1263_v60  ;;  %v3424_v62 = vmul.f32 %v3286_v50, %v1264_v61 }
 0x230   :  { %v3427_v5 = vmul.f32 %v3286_v50, %v1265_v26  ;;  %v3430_v10 = vmul.f32 %v3286_v50, %v1266_v36  ;;  %v3433_v3 = vmul.f32 %v3286_v50, %v1267_v39  ;;  %v3436_v8 = vmul.f32 %v3286_v50, %v1268_v45 }
 0x231   :  { %v3439_v15 = vmul.f32 %v3286_v50, %v1269_v35  ;;  %v3442_v20 = vmul.f32 %v3286_v50, %v1270_v30  ;;  %v3445_v60 = vmul.f32 %v3286_v50, %v1271_v23  ;;  %v3448_v61 = vmul.f32 %v3286_v50, %v1272_v46  ;;  %v3478_v30 = vld [vmem:[%s4512_s3] ss:$0 sm:$0xff]  ;;  %v4662_v23 = vld [vmem:[#allocation9_spill] sm:$0xff] }
 0x232   :  { %v3451_v26 = vmul.f32 %v3286_v50, %v1273_v18  ;;  %v3454_v36 = vmul.f32 %v3286_v50, %v1274_v7  ;;  %v3457_v39 = vmul.f32 %v3286_v50, %v1275_v58  ;;  %v3461_v45 = vmul.f32 %v3286_v50, %v3160_v9  ;;  %v4664_v7 = vld [vmem:[#allocation12_spill] sm:$0xff]  ;;  %v4666_v58 = vld [vmem:[#allocation14_spill] sm:$0xff] }
 0x233   :  { %v3465_v35 = vmul.f32 %v3286_v50, %v3163_v32  ;;  %v3469_v46 = vmul.f32 %v3286_v50, %v3166_v11  ;;  %v3473_v18 = vmul.f32 %v3286_v50, %v3169_v25  ;;  %v3482_v9 = vmul.f32 %v3286_v50, %v4662_v23 }
 0x234   :  { %4658 = vst [vmem:[#allocation17_spill] sm:$0xff] %v3461_v45  ;;  %v3486_v32 = vmul.f32 %v3286_v50, %v4664_v7  ;;  %v3490_v11 = vmul.f32 %v3286_v50, %v4666_v58  ;;  %v4670_v45 = vld [vmem:[#allocation15_spill] sm:$0xff] }
 0x235   :  { %4659 = vst [vmem:[#allocation18_spill] sm:$0xff] %v3465_v35  ;;  %4660 = vst [vmem:[#allocation19_spill] sm:$0xff] %v3469_v46  ;;  %v4668_v46 = vld [vmem:[#allocation11_spill] sm:$0xff]  ;;  %v3502_v23 = vmul.f32 %v3286_v50, %v4670_v45  ;;  %v3522_v45 = vadd.f32 %v3478_v30, %v3310_v24  ;;  %v3542_v24 = vadd.f32 %v3478_v30, %v3325_v48 }
 0x236   :  { %4661 = vst [vmem:[#allocation20_spill] sm:$0xff] %v3473_v18  ;;  %4663 = vst [vmem:[#allocation21_spill] sm:$0xff] %v3482_v9  ;;  %v3494_v25 = vmul.f32 %v3286_v50, %v4668_v46  ;;  %v4669_v18 = vld [vmem:[#allocation13_spill] sm:$0xff]  ;;  %v4671_v9 = vld [vmem:[#allocation16_spill] sm:$0xff]  ;;  %v3562_v48 = vadd.f32 %v3478_v30, %v3340_v21  ;;  %v3582_v21 = vadd.f32 %v3478_v30, %v3355_v29 }
 0x237   :  { %4665 = vst [vmem:[#allocation22_spill] sm:$0xff] %v3486_v32  ;;  %4667 = vst [vmem:[#allocation23_spill] sm:$0xff] %v3490_v11  ;;  %v3498_v35 = vmul.f32 %v3286_v50, %v4669_v18  ;;  %v3506_v7 = vmul.f32 %v3286_v50, %v4671_v9  ;;  %v4672_v32 = vld [vmem:[#allocation30_spill] sm:$0xff]  ;;  %v4673_v11 = vld [vmem:[#allocation31_spill] sm:$0xff]  ;;  %v3518_v18 = vadd.f32 %v3478_v30, %v3307_v28  ;;  %vm1432_vm1 = vcmp.ge.f32.partialorder %v3522_v45, 0.0 }
 0x238   :  { %v3510_v58 = vmul.f32 %v3286_v50, %v4672_v32  ;;  %v3514_v46 = vmul.f32 %v3286_v50, %v4673_v11  ;;  %v3526_v9 = vadd.f32 %v3478_v30, %v3313_v53  ;;  %v3530_v32 = vadd.f32 %v3478_v30, %v3316_v33 }
 0x239   :  { %v3534_v50 = vadd.f32 %v3478_v30, %v3319_v2  ;;  %v3538_v28 = vadd.f32 %v3478_v30, %v3322_v13  ;;  %v3546_v53 = vadd.f32 %v3478_v30, %v3328_v38  ;;  %v3550_v33 = vadd.f32 %v3478_v30, %v3331_v1 }
 0x23a   :  { %v3554_v2 = vadd.f32 %v3478_v30, %v3334_v16  ;;  %v3558_v13 = vadd.f32 %v3478_v30, %v3337_v42  ;;  %v3566_v38 = vadd.f32 %v3478_v30, %v3343_v19  ;;  %v3570_v1 = vadd.f32 %v3478_v30, %v3346_v55 }
 0x23b   :  { %v3574_v16 = vadd.f32 %v3478_v30, %v3349_v6  ;;  %v3578_v42 = vadd.f32 %v3478_v30, %v3352_v22  ;;  %v3586_v19 = vadd.f32 %v3478_v30, %v3358_v63  ;;  %v3590_v55 = vadd.f32 %v3478_v30, %v3361_v14  ;;  %v4680_v11 = vld [vmem:[#allocation17_spill] sm:$0xff] }
 0x23c   :  { %v3594_v6 = vadd.f32 %v3478_v30, %v3364_v41  ;;  %v3598_v22 = vadd.f32 %v3478_v30, %v3367_v40  ;;  %v3602_v29 = vadd.f32 %v3478_v30, %v3370_v43  ;;  %v3606_v63 = vadd.f32 %v3478_v30, %v3373_v56 }
 0x23d   :  { %v3610_v14 = vadd.f32 %v3478_v30, %v3376_v12  ;;  %v3614_v41 = vadd.f32 %v3478_v30, %v3379_v17  ;;  %v3618_v40 = vadd.f32 %v3478_v30, %v3382_v27  ;;  %v3622_v43 = vadd.f32 %v3478_v30, %v3385_v34 }
 0x23e   :  { %v3626_v56 = vadd.f32 %v3478_v30, %v3388_v51  ;;  %v3630_v12 = vadd.f32 %v3478_v30, %v3391_v4  ;;  %v3634_v17 = vadd.f32 %v3478_v30, %v3394_v31  ;;  %v3638_v27 = vadd.f32 %v3478_v30, %v3397_v44 }
 0x23f   :  { %v3642_v34 = vadd.f32 %v3478_v30, %v3400_v37  ;;  %v3646_v51 = vadd.f32 %v3478_v30, %v3403_v49  ;;  %v3650_v4 = vadd.f32 %v3478_v30, %v3406_v54  ;;  %v3654_v31 = vadd.f32 %v3478_v30, %v3409_v47 }
 0x240   :  { %v3658_v44 = vadd.f32 %v3478_v30, %v3412_v52  ;;  %v3662_v37 = vadd.f32 %v3478_v30, %v3415_v59  ;;  %v3666_v49 = vadd.f32 %v3478_v30, %v3418_v0  ;;  %v3670_v54 = vadd.f32 %v3478_v30, %v3421_v57 }
 0x241   :  { %v3674_v47 = vadd.f32 %v3478_v30, %v3424_v62  ;;  %v3678_v52 = vadd.f32 %v3478_v30, %v3427_v5  ;;  %v3682_v59 = vadd.f32 %v3478_v30, %v3430_v10  ;;  %v3686_v0 = vadd.f32 %v3478_v30, %v3433_v3 }
 0x242   :  { %v3690_v57 = vadd.f32 %v3478_v30, %v3436_v8  ;;  %v3694_v62 = vadd.f32 %v3478_v30, %v3439_v15  ;;  %v3698_v5 = vadd.f32 %v3478_v30, %v3442_v20  ;;  %v3702_v10 = vadd.f32 %v3478_v30, %v3445_v60 }
 0x243   :  { %4674 = vst [vmem:[#allocation24_spill] sm:$0xff] %v3682_v59  ;;  %v3706_v3 = vadd.f32 %v3478_v30, %v3448_v61  ;;  %v3710_v8 = vadd.f32 %v3478_v30, %v3451_v26  ;;  %v3714_v15 = vadd.f32 %v3478_v30, %v3454_v36  ;;  %v3718_v20 = vadd.f32 %v3478_v30, %v3457_v39 }
 0x244   :  { %4675 = vst [vmem:[#allocation3_spill] sm:$0xff] %v3702_v10  ;;  %v3722_v60 = vadd.f32 %v3478_v30, %v4680_v11  ;;  %v4682_v10 = vld [vmem:[#allocation18_spill] sm:$0xff]  ;;  %vm1431_vm0 = vcmp.ge.f32.partialorder %v3518_v18, 0.0  ;;  %vm1433_vm2 = vcmp.ge.f32.partialorder %v3526_v9, 0.0  ;;  %vm1434_vm3 = vcmp.ge.f32.partialorder %v3530_v32, 0.0 }
 0x245   :  { %4676 = vst [vmem:[#allocation25_spill] sm:$0xff] %v3706_v3  ;;  %4677 = vst [vmem:[#allocation5_spill] sm:$0xff] %v3710_v8  ;;  %v3726_v61 = vadd.f32 %v3478_v30, %v4682_v10  ;;  %v4684_v3 = vld [vmem:[#allocation19_spill] sm:$0xff]  ;;  %v4686_v8 = vld [vmem:[#allocation20_spill] sm:$0xff]  ;;  %vm1435_vm4 = vcmp.ge.f32.partialorder %v3534_v50, 0.0  ;;  %vm1436_vm5 = vcmp.ge.f32.partialorder %v3538_v28, 0.0 }
 0x246   :  { %4678 = vst [vmem:[#allocation26_spill] sm:$0xff] %v3714_v15  ;;  %4679 = vst [vmem:[#allocation4_spill] sm:$0xff] %v3718_v20  ;;  %v3730_v26 = vadd.f32 %v3478_v30, %v4684_v3  ;;  %v3734_v36 = vadd.f32 %v3478_v30, %v4686_v8  ;;  %v4688_v15 = vld [vmem:[#allocation21_spill] sm:$0xff]  ;;  %v4690_v20 = vld [vmem:[#allocation22_spill] sm:$0xff]  ;;  %v3750_v3 = vadd.f32 %v3478_v30, %v3494_v25  ;;  %vm1437_vm6 = vcmp.ge.f32.partialorder %v3542_v24, 0.0 }
 0x247   :  { %4681 = vst [vmem:[#allocation27_spill] sm:$0xff] %v3722_v60  ;;  %4683 = vst [vmem:[#allocation7_spill] sm:$0xff] %v3726_v61  ;;  %v3738_v39 = vadd.f32 %v3478_v30, %v4688_v15  ;;  %v3742_v11 = vadd.f32 %v3478_v30, %v4690_v20  ;;  %v4692_v60 = vld [vmem:[#allocation23_spill] sm:$0xff]  ;;  %v3754_v8 = vadd.f32 %v3478_v30, %v3498_v35  ;;  %vm1438_vm7 = vcmp.ge.f32.partialorder %v3546_v53, 0.0 }
 0x248   :  { %4685 = vst [vmem:[#allocation28_spill] sm:$0xff] %v3730_v26  ;;  %4687 = vst [vmem:[#allocation6_spill] sm:$0xff] %v3734_v36  ;;  %v3746_v10 = vadd.f32 %v3478_v30, %v4692_v60  ;;  %v3758_v15 = vadd.f32 %v3478_v30, %v3502_v23  ;;  %v3762_v20 = vadd.f32 %v3478_v30, %v3506_v7  ;;  %vm1439_vm8 = vcmp.ge.f32.partialorder %v3550_v33, 0.0 }
 0x249   :  { %4689 = vst [vmem:[#allocation29_spill] sm:$0xff] %v3738_v39  ;;  %4691 = vst [vmem:[#allocation10_spill] sm:$0xff] %v3742_v11  ;;  %v3775_v35 = vadd.f32 %v3478_v30, %v3510_v58  ;;  %vm1440_vm9 = vcmp.ge.f32.partialorder %v3554_v2, 0.0  ;;  %v1495_v25 = vmul.f32 0.2, %v3518_v18  ;;  %v3783_v60 = vadd.f32 %v3478_v30, %v3514_v46 }
 0x24a   :  { %4693 = vst [vmem:[#allocation8_spill] sm:$0xff] %v3746_v10  ;;  %4694 = vst [vmem:[#allocation9_spill] sm:$0xff] %v3750_v3  ;;  %v1496_v23 = vmul.f32 0.2, %v3522_v45  ;;  %v1497_v7 = vmul.f32 0.2, %v3526_v9 }
 0x24b   :  { %4695 = vst [vmem:[#allocation12_spill] sm:$0xff] %v3754_v8  ;;  %4696 = vst [vmem:[#allocation14_spill] sm:$0xff] %v3758_v15  ;;  %vm1441_vm10 = vcmp.ge.f32.partialorder %v3558_v13, 0.0  ;;  %v1499_v15 = vmul.f32 0.2, %v3534_v50  ;;  %vm1442_vm11 = vcmp.ge.f32.partialorder %v3562_v48, 0.0  ;;  %v3796_v30 = vsel %vm1431_vm0, %v3518_v18, %v1495_v25 }
 0x24c   :  { %4697 = vst [vmem:[#allocation11_spill] sm:$0xff] %v3762_v20  ;;  %4698 = vst [vmem:[#allocation13_spill] sm:$0xff] %v3775_v35  ;;  %v1498_v20 = vmul.f32 0.2, %v3530_v32  ;;  %v1500_v58 = vmul.f32 0.2, %v3538_v28  ;;  %v3807_v11 = vsel %vm1432_vm1, %v3522_v45, %v1496_v23 }
 0x24d   :  { %4699 = vst [vmem:[#allocation15_spill] sm:$0xff] %v3783_v60  ;;  %v1501_v35 = vmul.f32 0.2, %v3542_v24  ;;  %v1502_v8 = vmul.f32 0.2, %v3546_v53  ;;  %4700 = vst [vmem:[#allocation16_spill] sm:$0xff] %v3796_v30  ;;  %v3822_v30 = vsel %vm1433_vm2, %v3526_v9, %v1497_v7 }
 0x24e   :  { %v1503_v3 = vmul.f32 0.2, %v3550_v33  ;;  %vm1443_vm12 = vcmp.ge.f32.partialorder %v3566_v38, 0.0  ;;  %v1504_v46 = vmul.f32 0.2, %v3554_v2  ;;  %4701 = vst [vmem:[#allocation30_spill] sm:$0xff] %v3807_v11  ;;  %v3837_v36 = vsel %vm1434_vm3, %v3530_v32, %v1498_v20 }
 0x24f   :  { %v1505_v60 = vmul.f32 0.2, %v3558_v13  ;;  %v3802_v10 = vmul.f32 0.2, %v3562_v48  ;;  %vm1444_vm13 = vcmp.ge.f32.partialorder %v3570_v1, 0.0  ;;  %4702 = vst [vmem:[#allocation31_spill] sm:$0xff] %v3822_v30 }
 0x250   :  { %v3811_v39 = vmul.f32 0.2, %v3566_v38  ;;  %v3814_v18 = vmul.f32 0.2, %v3570_v1  ;;  %v3817_v25 = vmul.f32 0.2, %v3574_v16 }
 0x251   :  { %vm1445_vm14 = vcmp.ge.f32.partialorder %v3574_v16, 0.0  ;;  %v3826_v45 = vmul.f32 0.2, %v3578_v42  ;;  %v3829_v23 = vmul.f32 0.2, %v3582_v21  ;;  %4704 = vst [vmem:[#allocation18_spill] sm:$0xff] %v3837_v36 }
 0x252   :  { %v3832_v11 = vmul.f32 0.2, %v3586_v19  ;;  %vm1446_vm15 = vcmp.ge.f32.partialorder %v3578_v42, 0.0  ;;  %v3841_v9 = vmul.f32 0.2, %v3590_v55  ;;  %vm1447_vm0 = vcmp.ge.f32.partialorder %v3582_v21, 0.0 }
 0x253   :  { %v3844_v7 = vmul.f32 0.2, %v3594_v6  ;;  %v3847_v30 = vmul.f32 0.2, %v3598_v22  ;;  %v3856_v32 = vmul.f32 0.2, %v3602_v29 }
 0x254   :  { %4703 = vst [vmem:[#allocation17_spill] sm:$0xff] %v3832_v11  ;;  %v3852_v11 = vsel %vm1435_vm4, %v3534_v50, %v1499_v15  ;;  %v3859_v20 = vmul.f32 0.2, %v3606_v63  ;;  %v3862_v36 = vmul.f32 0.2, %v3610_v14  ;;  %vm1448_vm1 = vcmp.ge.f32.partialorder %v3586_v19, 0.0 }
 0x255   :  { %4705 = vst [vmem:[#allocation19_spill] sm:$0xff] %v3847_v30  ;;  %4706 = vst [vmem:[#allocation20_spill] sm:$0xff] %v3852_v11  ;;  %v3867_v30 = vsel %vm1436_vm5, %v3538_v28, %v1500_v58  ;;  %v3871_v50 = vmul.f32 0.2, %v3614_v41  ;;  %v3874_v15 = vmul.f32 0.2, %v3618_v40 }
 0x256   :  { %4707 = vst [vmem:[#allocation21_spill] sm:$0xff] %v3862_v36  ;;  %4708 = vst [vmem:[#allocation22_spill] sm:$0xff] %v3867_v30  ;;  %v3877_v11 = vmul.f32 0.2, %v3622_v43  ;;  %v3882_v36 = vsel %vm1437_vm6, %v3542_v24, %v1501_v35  ;;  %vm1449_vm2 = vcmp.ge.f32.partialorder %v3590_v55, 0.0  ;;  %vm1450_vm3 = vcmp.ge.f32.partialorder %v3594_v6, 0.0 }
 0x257   :  { %4710 = vst [vmem:[#allocation32_spill] sm:$0xff] %v3882_v36  ;;  %v3886_v28 = vmul.f32 0.2, %v3626_v56  ;;  %v3889_v58 = vmul.f32 0.2, %v3630_v12  ;;  %vm1453_vm6 = vcmp.ge.f32.partialorder %v3606_v63, 0.0 }
 0x258   :  { %4709 = vst [vmem:[#allocation23_spill] sm:$0xff] %v3877_v11  ;;  %v3892_v30 = vmul.f32 0.2, %v3634_v17  ;;  %v3897_v11 = vsel %vm1438_vm7, %v3546_v53, %v1502_v8  ;;  %v3903_v24 = vmul.f32 0.2, %v3638_v27  ;;  %v3914_v53 = vsel %vm1439_vm8, %v3550_v33, %v1503_v3 }
 0x259   :  { %4711 = vst [vmem:[#allocation33_spill] sm:$0xff] %v3897_v11  ;;  %v3906_v35 = vmul.f32 0.2, %v3642_v34  ;;  %v3909_v36 = vmul.f32 0.2, %v3646_v51  ;;  %4713 = vst [vmem:[#allocation35_spill] sm:$0xff] %v3914_v53  ;;  %v3932_v33 = vsel %vm1440_vm9, %v3554_v2, %v1504_v46  ;;  %v3950_v2 = vsel %vm1441_vm10, %v3558_v13, %v1505_v60 }
 0x25a   :  { %v3921_v8 = vmul.f32 0.2, %v3650_v4  ;;  %v3924_v11 = vmul.f32 0.2, %v3654_v31  ;;  %4715 = vst [vmem:[#allocation37_spill] sm:$0xff] %v3932_v33  ;;  %vm1457_vm8 = vcmp.ge.f32.partialorder %v3622_v43, 0.0  ;;  %v3969_v13 = vsel %vm1442_vm11, %v3562_v48, %v3802_v10 }
 0x25b   :  { %4712 = vst [vmem:[#allocation34_spill] sm:$0xff] %v3909_v36  ;;  %v3927_v36 = vmul.f32 0.2, %v3658_v44  ;;  %v3939_v3 = vmul.f32 0.2, %v3662_v37  ;;  %4717 = vst [vmem:[#allocation39_spill] sm:$0xff] %v3950_v2  ;;  %v3988_v48 = vsel %vm1443_vm12, %v3566_v38, %v3811_v39  ;;  %v4007_v38 = vsel %vm1444_vm13, %v3570_v1, %v3814_v18 }
 0x25c   :  { %v3942_v53 = vmul.f32 0.2, %v3666_v49  ;;  %vm1461_vm9 = vcmp.ge.f32.partialorder %v3638_v27, 0.0  ;;  %v3957_v46 = vmul.f32 0.2, %v3674_v47  ;;  %4719 = vst [vmem:[#allocation41_spill] sm:$0xff] %v3969_v13  ;;  %v4026_v1 = vsel %vm1445_vm14, %v3574_v16, %v3817_v25 }
 0x25d   :  { %4714 = vst [vmem:[#allocation36_spill] sm:$0xff] %v3927_v36  ;;  %v3945_v36 = vmul.f32 0.2, %v3670_v54  ;;  %v3960_v33 = vmul.f32 0.2, %v3678_v52  ;;  %vm1465_vm10 = vcmp.ge.f32.partialorder %v3654_v31, 0.0  ;;  %v4045_v16 = vsel %vm1446_vm15, %v3578_v42, %v3826_v45 }
 0x25e   :  { %v3976_v60 = vmul.f32 0.2, %v3686_v0  ;;  %v3979_v2 = vmul.f32 0.2, %v3690_v57  ;;  %4723 = vst [vmem:[#allocation45_spill] sm:$0xff] %v3988_v48  ;;  %vm1469_vm11 = vcmp.ge.f32.partialorder %v3670_v54, 0.0  ;;  %v4058_v42 = vsel %vm1447_vm0, %v3582_v21, %v3829_v23 }
 0x25f   :  { %4716 = vst [vmem:[#allocation38_spill] sm:$0xff] %v3945_v36  ;;  %v3963_v36 = vmul.f32 0.2, %v3682_v59  ;;  %v3995_v10 = vmul.f32 0.2, %v3698_v5  ;;  %v4725_v13 = vld [vmem:[#allocation3_spill] sm:$0xff] }
 0x260   :  { %4720 = vst [vmem:[#allocation42_spill] sm:$0xff] %v3976_v60  ;;  %4721 = vst [vmem:[#allocation43_spill] sm:$0xff] %v3979_v2  ;;  %v3998_v2 = vmul.f32 0.2, %v4725_v13  ;;  %vm1473_vm12 = vcmp.ge.f32.partialorder %v3686_v0, 0.0  ;;  %v4730_v39 = vld [vmem:[#allocation5_spill] sm:$0xff] }
 0x261   :  { %4718 = vst [vmem:[#allocation40_spill] sm:$0xff] %v3963_v36  ;;  %v3982_v36 = vmul.f32 0.2, %v3694_v62  ;;  %4724 = vst [vmem:[#allocation46_spill] sm:$0xff] %v3995_v10  ;;  %v4014_v48 = vmul.f32 0.2, %v4730_v39 }
 0x262   :  { %4726 = vst [vmem:[#allocation3_spill] sm:$0xff] %v3998_v2  ;;  %4729 = vst [vmem:[#allocation47_spill] sm:$0xff] %v4007_v38  ;;  %v4731_v2 = vld [vmem:[#allocation26_spill] sm:$0xff]  ;;  %vm1477_vm13 = vcmp.ge.f32.partialorder %v4725_v13, 0.0  ;;  %v4736_v18 = vld [vmem:[#allocation27_spill] sm:$0xff]  ;;  %vm4755_vm7 = vcmp.ge.f32.partialorder %v3598_v22, 0.0 }
 0x263   :  { %4722 = vst [vmem:[#allocation44_spill] sm:$0xff] %v3982_v36  ;;  %v4727_v36 = vld [vmem:[#allocation25_spill] sm:$0xff]  ;;  %v4017_v10 = vmul.f32 0.2, %v4731_v2  ;;  %4735 = vst [vmem:[#allocation50_spill] sm:$0xff] %v4026_v1  ;;  %v4741_v25 = vld [vmem:[#allocation6_spill] sm:$0xff] }
 0x264   :  { %v4001_v60 = vmul.f32 0.2, %v4727_v36  ;;  %v4033_v38 = vmul.f32 0.2, %v4736_v18  ;;  %4740 = vst [vmem:[#allocation54_spill] sm:$0xff] %v4045_v16  ;;  %v4743_v2 = vld [vmem:[#allocation10_spill] sm:$0xff] }
 0x265   :  { %4732 = vst [vmem:[#allocation48_spill] sm:$0xff] %v4017_v10  ;;  %v4036_v10 = vmul.f32 0.2, %v3726_v61  ;;  %v1549_v1 = vmul.f32 0.2, %v4741_v25  ;;  %4744 = vst [vmem:[#allocation55_spill] sm:$0xff] %v4058_v42 }
 0x266   :  { %4728 = vst [vmem:[#allocation25_spill] sm:$0xff] %v4001_v60  ;;  %v4733_v60 = vld [vmem:[#allocation4_spill] sm:$0xff]  ;;  %4737 = vst [vmem:[#allocation51_spill] sm:$0xff] %v4033_v38  ;;  %vm1485_vm15 = vcmp.ge.f32.partialorder %v4741_v25, 0.0  ;;  %v4748_v39 = vld [vmem:[#allocation17_spill] sm:$0xff] }
 0x267   :  { %v4020_v59 = vmul.f32 0.2, %v4733_v60  ;;  %4738 = vst [vmem:[#allocation52_spill] sm:$0xff] %v4036_v10  ;;  %vm1481_vm14 = vcmp.ge.f32.partialorder %v4733_v60, 0.0  ;;  %v4742_v10 = vld [vmem:[#allocation29_spill] sm:$0xff]  ;;  %v4745_v45 = vld [vmem:[#allocation8_spill] sm:$0xff]  ;;  %v4071_v21 = vsel %vm1448_vm1, %v3586_v19, %v4748_v39  ;;  %v4084_v19 = vsel %vm1449_vm2, %v3590_v55, %v3841_v9 }
 0x268   :  { %v1550_v38 = vmul.f32 0.2, %v4742_v10  ;;  %v1552_v16 = vmul.f32 0.2, %v4745_v45  ;;  %v4747_v18 = vld [vmem:[#allocation12_spill] sm:$0xff]  ;;  %v4750_v23 = vld [vmem:[#allocation14_spill] sm:$0xff]  ;;  %v4111_v9 = vsel %vm1453_vm6, %v3606_v63, %v3859_v20 }
 0x269   :  { %4734 = vst [vmem:[#allocation49_spill] sm:$0xff] %v4020_v59  ;;  %v4039_v59 = vmul.f32 0.2, %v3730_v26  ;;  %v4746_v26 = vld [vmem:[#allocation9_spill] sm:$0xff]  ;;  %v1554_v60 = vmul.f32 0.2, %v4747_v18 }
 0x26a   :  { %v1553_v61 = vmul.f32 0.2, %v4746_v26  ;;  %4749 = vst [vmem:[#allocation9_spill] sm:$0xff] %v4071_v21  ;;  %vm1489_vm0 = vcmp.ge.f32.partialorder %v4746_v26, 0.0  ;;  %vm1491_vm4 = vcmp.ge.f32.partialorder %v4750_v23, 0.0  ;;  %v4751_v42 = vld [vmem:[#allocation11_spill] sm:$0xff] }
 0x26b   :  { %4739 = vst [vmem:[#allocation53_spill] sm:$0xff] %v4039_v59  ;;  %v1551_v59 = vmul.f32 0.2, %v4743_v2  ;;  %v1555_v45 = vmul.f32 0.2, %v4750_v23  ;;  %v4752_v10 = vld [vmem:[#allocation13_spill] sm:$0xff]  ;;  %v4093_v23 = vsel %vm1450_vm3, %v3594_v6, %v3844_v7 }
 0x26c   :  { %v1556_v2 = vmul.f32 0.2, %v4751_v42  ;;  %v1557_v25 = vmul.f32 0.2, %v4752_v10  ;;  %vm1493_vm1 = vcmp.ge.f32.partialorder %v4752_v10, 0.0  ;;  %v4753_v39 = vld [vmem:[#allocation15_spill] sm:$0xff] }
 0x26d   :  { %vm1494_vm5 = vcmp.ge.f32.partialorder %v4753_v39, 0.0  ;;  %v1558_v21 = vmul.f32 0.2, %v4753_v39  ;;  %v4754_v42 = vld [vmem:[#allocation19_spill] sm:$0xff]  ;;  %vm4756_vm2 = vcmp.ge.f32.partialorder %v3602_v29, 0.0  ;;  %v4757_v6 = vld [vmem:[#allocation21_spill] sm:$0xff] }
 0x26e   :  { %v4099_v18 = vsel %vm4755_vm7, %v3598_v22, %v4754_v42  ;;  %v4105_v55 = vsel %vm4756_vm2, %v3602_v29, %v3856_v32  ;;  %vm4758_vm3 = vcmp.ge.f32.partialorder %v3610_v14, 0.0  ;;  %vm4759_vm7 = vcmp.ge.f32.partialorder %v3614_v41, 0.0  ;;  %v4761_v63 = vld [vmem:[#allocation23_spill] sm:$0xff] }
 0x26f   :  { %v4117_v7 = vsel %vm4758_vm3, %v3610_v14, %v4757_v6  ;;  %v4123_v22 = vsel %vm4759_vm7, %v3614_v41, %v3871_v50  ;;  %vm4760_vm2 = vcmp.ge.f32.partialorder %v3618_v40, 0.0  ;;  %v4135_v32 = vsel %vm1457_vm8, %v3622_v43, %v4761_v63  ;;  %v4777_v50 = vld [vmem:[#allocation24_spill] sm:$0xff] }
 0x270   :  { %v4129_v29 = vsel %vm4760_vm2, %v3618_v40, %v3874_v15  ;;  %vm4762_vm6 = vcmp.ge.f32.partialorder %v3626_v56, 0.0  ;;  %vm4763_vm3 = vcmp.ge.f32.partialorder %v3630_v12, 0.0  ;;  %vm4764_vm7 = vcmp.ge.f32.partialorder %v3634_v17, 0.0  ;;  %v4795_v6 = vld [vmem:[#allocation4_spill] sm:$0xff] }
 0x271   :  { %v4141_v14 = vsel %vm4762_vm6, %v3626_v56, %v3886_v28  ;;  %v4147_v41 = vsel %vm4763_vm3, %v3630_v12, %v3889_v58  ;;  %v4153_v40 = vsel %vm4764_vm7, %v3634_v17, %v3892_v30  ;;  %v4159_v43 = vsel %vm1461_vm9, %v3638_v27, %v3903_v24  ;;  %v4766_v12 = vld [vmem:[#allocation34_spill] sm:$0xff] }
 0x272   :  { %vm4765_vm8 = vcmp.ge.f32.partialorder %v3642_v34, 0.0  ;;  %vm4767_vm2 = vcmp.ge.f32.partialorder %v3646_v51, 0.0  ;;  %vm4768_vm6 = vcmp.ge.f32.partialorder %v3650_v4, 0.0  ;;  %v4183_v27 = vsel %vm1465_vm10, %v3654_v31, %v3924_v11  ;;  %v4773_v31 = vld [vmem:[#allocation38_spill] sm:$0xff] }
 0x273   :  { %v4165_v56 = vsel %vm4765_vm8, %v3642_v34, %v3906_v35  ;;  %v4171_v20 = vsel %vm4767_vm2, %v3646_v51, %v4766_v12  ;;  %v4177_v17 = vsel %vm4768_vm6, %v3650_v4, %v3921_v8  ;;  %v4769_v34 = vld [vmem:[#allocation36_spill] sm:$0xff]  ;;  %vm4770_vm9 = vcmp.ge.f32.partialorder %v3658_v44, 0.0  ;;  %v4784_v35 = vld [vmem:[#allocation46_spill] sm:$0xff]  ;;  %v4797_v12 = vld [vmem:[#allocation27_spill] sm:$0xff] }
 0x274   :  { %v4189_v30 = vsel %vm4770_vm9, %v3658_v44, %v4769_v34  ;;  %vm4771_vm3 = vcmp.ge.f32.partialorder %v3662_v37, 0.0  ;;  %vm4772_vm7 = vcmp.ge.f32.partialorder %v3666_v49, 0.0  ;;  %v4207_v11 = vsel %vm1469_vm11, %v3670_v54, %v4773_v31  ;;  %v4779_v54 = vld [vmem:[#allocation42_spill] sm:$0xff]  ;;  %v4800_v31 = vld [vmem:[#allocation7_spill] sm:$0xff] }
 0x275   :  { %v4195_v51 = vsel %vm4771_vm3, %v3662_v37, %v3939_v3  ;;  %v4201_v4 = vsel %vm4772_vm7, %v3666_v49, %v3942_v53  ;;  %vm4774_vm10 = vcmp.ge.f32.partialorder %v3674_v47, 0.0  ;;  %vm4775_vm8 = vcmp.ge.f32.partialorder %v3678_v52, 0.0  ;;  %v4776_v49 = vld [vmem:[#allocation40_spill] sm:$0xff] }
 0x276   :  { %v4213_v44 = vsel %vm4774_vm10, %v3674_v47, %v3957_v46  ;;  %v4219_v37 = vsel %vm4775_vm8, %v3678_v52, %v3960_v33  ;;  %vm4778_vm2 = vcmp.ge.f32.partialorder %v4777_v50, 0.0  ;;  %v4231_v28 = vsel %vm1473_vm12, %v3686_v0, %v4779_v54  ;;  %v4780_v47 = vld [vmem:[#allocation43_spill] sm:$0xff]  ;;  %v4782_v52 = vld [vmem:[#allocation44_spill] sm:$0xff]  ;;  %v4792_v46 = vld [vmem:[#allocation26_spill] sm:$0xff] }
 0x277   :  { %v4225_v15 = vsel %vm4778_vm2, %v4777_v50, %v4776_v49  ;;  %vm4781_vm11 = vcmp.ge.f32.partialorder %v3690_v57, 0.0  ;;  %vm4783_vm6 = vcmp.ge.f32.partialorder %v3694_v62, 0.0  ;;  %vm4785_vm9 = vcmp.ge.f32.partialorder %v3698_v5, 0.0  ;;  %v4786_v0 = vld [vmem:[#allocation3_spill] sm:$0xff]  ;;  %v4802_v50 = vld [vmem:[#allocation53_spill] sm:$0xff]  ;;  %v4803_v54 = vld [vmem:[#allocation28_spill] sm:$0xff] }
 0x278   :  { %v4237_v58 = vsel %vm4781_vm11, %v3690_v57, %v4780_v47  ;;  %v4243_v24 = vsel %vm4783_vm6, %v3694_v62, %v4782_v52  ;;  %v4249_v53 = vsel %vm4785_vm9, %v3698_v5, %v4784_v35  ;;  %v4255_v8 = vsel %vm1477_vm13, %v4725_v13, %v4786_v0  ;;  %v4787_v57 = vld [vmem:[#allocation25_spill] sm:$0xff]  ;;  %v4791_v5 = vld [vmem:[#allocation48_spill] sm:$0xff]  ;;  %v4805_v52 = vld [vmem:[#allocation6_spill] sm:$0xff] }
 0x279   :  { %vm4788_vm12 = vcmp.ge.f32.partialorder %v4727_v36, 0.0  ;;  %v4789_v62 = vld [vmem:[#allocation5_spill] sm:$0xff]  ;;  %vm4793_vm7 = vcmp.ge.f32.partialorder %v4792_v46, 0.0  ;;  %vm4798_vm13 = vcmp.ge.f32.partialorder %v4797_v12, 0.0  ;;  %vm4801_vm10 = vcmp.ge.f32.partialorder %v4800_v31, 0.0 }
 0x27a   :  { %v4261_v33 = vsel %vm4788_vm12, %v4727_v36, %v4787_v57  ;;  %vm4790_vm3 = vcmp.ge.f32.partialorder %v4789_v62, 0.0  ;;  %v4273_v42 = vsel %vm4793_vm7, %v4792_v46, %v4791_v5  ;;  %v4794_v13 = vld [vmem:[#allocation49_spill] sm:$0xff]  ;;  %v4796_v36 = vld [vmem:[#allocation51_spill] sm:$0xff]  ;;  %vm4804_vm8 = vcmp.ge.f32.partialorder %v4803_v54, 0.0  ;;  %v4810_v46 = vld [vmem:[#allocation8_spill] sm:$0xff] }
 0x27b   :  { %v4267_v3 = vsel %vm4790_vm3, %v4789_v62, %v4014_v48  ;;  %v4279_v63 = vsel %vm1481_vm14, %v4795_v6, %v4794_v13  ;;  %v4285_v34 = vsel %vm4798_vm13, %v4797_v12, %v4796_v36  ;;  %v4799_v48 = vld [vmem:[#allocation52_spill] sm:$0xff]  ;;  %v4297_v47 = vsel %vm4804_vm8, %v4803_v54, %v4802_v50  ;;  %v4806_v0 = vld [vmem:[#allocation29_spill] sm:$0xff]  ;;  %v4808_v62 = vld [vmem:[#allocation10_spill] sm:$0xff] }
 0x27c   :  { %v4291_v49 = vsel %vm4801_vm10, %v4800_v31, %v4799_v48  ;;  %v4302_v35 = vsel %vm1485_vm15, %v4805_v52, %v1549_v1  ;;  %vm4807_vm14 = vcmp.ge.f32.partialorder %v4806_v0, 0.0  ;;  %vm4809_vm2 = vcmp.ge.f32.partialorder %v4808_v62, 0.0  ;;  %v4812_v6 = vld [vmem:[#allocation12_spill] sm:$0xff]  ;;  %v4814_v36 = vld [vmem:[#allocation14_spill] sm:$0xff]  ;;  %v4815_v12 = vld [vmem:[#allocation11_spill] sm:$0xff] }
 0x27d   :  { %v4307_v57 = vsel %vm4807_vm14, %v4806_v0, %v1550_v38  ;;  %v4312_v5 = vsel %vm4809_vm2, %v4808_v62, %v1551_v59  ;;  %vm4811_vm11 = vcmp.ge.f32.partialorder %v4810_v46, 0.0  ;;  %v4322_v1 = vsel %vm1489_vm0, %v4746_v26, %v1553_v61  ;;  %v4820_v48 = vld [vmem:[#allocation30_spill] sm:$0xff]  ;;  %v4823_v52 = vld [vmem:[#allocation20_spill] sm:$0xff] }
 0x27e   :  { %v4317_v13 = vsel %vm4811_vm11, %v4810_v46, %v1552_v16  ;;  %vm4813_vm15 = vcmp.ge.f32.partialorder %v4812_v6, 0.0  ;;  %v4332_v59 = vsel %vm1491_vm4, %v4814_v36, %v1555_v45  ;;  %vm4816_vm6 = vcmp.ge.f32.partialorder %v4815_v12, 0.0  ;;  %v4821_v45 = vld [vmem:[#allocation31_spill] sm:$0xff]  ;;  %v4822_v50 = vld [vmem:[#allocation18_spill] sm:$0xff]  ;;  %v4825_v62 = vld [vmem:[#allocation32_spill] sm:$0xff] }
 0x27f   :  { %v4327_v38 = vsel %vm4813_vm15, %v4812_v6, %v1554_v60  ;;  %v4337_v16 = vsel %vm4816_vm6, %v4815_v12, %v1556_v2  ;;  %v4342_v61 = vsel %vm1493_vm1, %v4752_v10, %v1557_v25  ;;  %v4347_v26 = vsel %vm1494_vm5, %v4753_v39, %v1558_v21  ;;  %v4819_v60 = vld [vmem:[#allocation16_spill] sm:$0xff]  ;;  %v4824_v0 = vld [vmem:[#allocation22_spill] sm:$0xff]  ;;  %v4826_v46 = vld [vmem:[#allocation33_spill] sm:$0xff] }
 0x280   :  { %4817 = vst [vmem:[#allocation17_spill] sm:$0xff] %v4337_v16  ;;  %4818 = vst [vmem:[#allocation13_spill] sm:$0xff] %v4342_v61  ;;  %v2120_v31 = vpack.c.bf16 %v4820_v48, %v4819_v60  ;;  %v2125_v54 = vpack.c.bf16 %v4822_v50, %v4821_v45  ;;  %v2130_v2 = vpack.c.bf16 %v4824_v0, %v4823_v52  ;;  %v4827_v36 = vld [vmem:[#allocation35_spill] sm:$0xff]  ;;  %v4828_v10 = vld [vmem:[#allocation37_spill] sm:$0xff] }
 0x281   :  { %v2135_v6 = vpack.c.bf16 %v4826_v46, %v4825_v62  ;;  %v2140_v25 = vpack.c.bf16 %v4828_v10, %v4827_v36  ;;  %v4829_v12 = vld [vmem:[#allocation39_spill] sm:$0xff]  ;;  %v4830_v61 = vld [vmem:[#allocation41_spill] sm:$0xff]  ;;  %v4833_v48 = vld [vmem:[#allocation50_spill] sm:$0xff] }
 0x282   :  { %v2145_v16 = vpack.c.bf16 %v4830_v61, %v4829_v12  ;;  %2121 = vst [vmem:[%s4513_s4] sm:$0xff] %v2120_v31   ;;  %2277 = vst [vmem:[%s4513_s4 + $0x8] sm:$0xff] %v2125_v54   ;;  %v4831_v21 = vld [vmem:[#allocation45_spill] sm:$0xff]  ;;  %v4832_v39 = vld [vmem:[#allocation47_spill] sm:$0xff]  ;;  %v2165_v61 = vpack.c.bf16 %v4093_v23, %v4084_v19  ;;  %v2170_v31 = vpack.c.bf16 %v4105_v55, %v4099_v18 }
 0x283   :  { %v2150_v60 = vpack.c.bf16 %v4832_v39, %v4831_v21  ;;  %v4834_v45 = vld [vmem:[#allocation54_spill] sm:$0xff]  ;;  %v4835_v52 = vld [vmem:[#allocation55_spill] sm:$0xff]  ;;  %v4836_v0 = vld [vmem:[#allocation9_spill] sm:$0xff]  ;;  %2278 = vst [vmem:[%s4513_s4 + $0x10] sm:$0xff] %v2130_v2   ;;  %v2175_v23 = vpack.c.bf16 %v4117_v7, %v4111_v9  ;;  %v2180_v19 = vpack.c.bf16 %v4129_v29, %v4123_v22  ;;  %v2185_v54 = vpack.c.bf16 %v4141_v14, %v4135_v32 }
 0x284   :  { %v2155_v50 = vpack.c.bf16 %v4834_v45, %v4833_v48  ;;  %v2160_v62 = vpack.c.bf16 %v4836_v0, %v4835_v52  ;;  %2279 = vst [vmem:[%s4513_s4 + $0x18] sm:$0xff] %v2135_v6   ;;  %2280 = vst [vmem:[%s4513_s4 + $0x20] sm:$0xff] %v2140_v25   ;;  %v2190_v18 = vpack.c.bf16 %v4153_v40, %v4147_v41 }
 0x285   :  { %2281 = vst [vmem:[%s4513_s4 + $0x28] sm:$0xff] %v2145_v16   ;;  %2282 = vst [vmem:[%s4513_s4 + $0x30] sm:$0xff] %v2150_v60   ;;  %v2195_v55 = vpack.c.bf16 %v4165_v56, %v4159_v43  ;;  %v2200_v9 = vpack.c.bf16 %v4177_v17, %v4171_v20  ;;  %v2205_v7 = vpack.c.bf16 %v4189_v30, %v4183_v27 }
 0x286   :  { %2283 = vst [vmem:[%s4513_s4 + $0x38] sm:$0xff] %v2155_v50   ;;  %2284 = vst [vmem:[%s4513_s4 + $0x40] sm:$0xff] %v2160_v62   ;;  %v2210_v22 = vpack.c.bf16 %v4201_v4, %v4195_v51  ;;  %v2215_v29 = vpack.c.bf16 %v4213_v44, %v4207_v11  ;;  %v2220_v32 = vpack.c.bf16 %v4225_v15, %v4219_v37 }
 0x287   :  { %2285 = vst [vmem:[%s4513_s4 + $0x48] sm:$0xff] %v2165_v61   ;;  %2286 = vst [vmem:[%s4513_s4 + $0x50] sm:$0xff] %v2170_v31   ;;  %v2225_v14 = vpack.c.bf16 %v4237_v58, %v4231_v28  ;;  %v2230_v41 = vpack.c.bf16 %v4249_v53, %v4243_v24  ;;  %v2235_v40 = vpack.c.bf16 %v4261_v33, %v4255_v8  ;;  %v4837_v51 = vld [vmem:[#allocation17_spill] sm:$0xff] }
 0x288   :  { %2287 = vst [vmem:[%s4513_s4 + $0x58] sm:$0xff] %v2175_v23   ;;  %2288 = vst [vmem:[%s4513_s4 + $0x60] sm:$0xff] %v2180_v19   ;;  %v2240_v43 = vpack.c.bf16 %v4273_v42, %v4267_v3  ;;  %v2245_v56 = vpack.c.bf16 %v4285_v34, %v4279_v63  ;;  %v2250_v20 = vpack.c.bf16 %v4297_v47, %v4291_v49  ;;  %v4838_v11 = vld [vmem:[#allocation13_spill] sm:$0xff] }
 0x289   :  { %2289 = vst [vmem:[%s4513_s4 + $0x68] sm:$0xff] %v2185_v54   ;;  %2290 = vst [vmem:[%s4513_s4 + $0x70] sm:$0xff] %v2190_v18   ;;  %v2255_v17 = vpack.c.bf16 %v4307_v57, %v4302_v35  ;;  %v2260_v27 = vpack.c.bf16 %v4317_v13, %v4312_v5  ;;  %v2265_v30 = vpack.c.bf16 %v4327_v38, %v4322_v1 }
 0x28a   :  { %2291 = vst [vmem:[%s4513_s4 + $0x78] sm:$0xff] %v2195_v55   ;;  %2292 = vst [vmem:[%s4513_s4 + $0x80] sm:$0xff] %v2200_v9   ;;  %v2270_v4 = vpack.c.bf16 %v4837_v51, %v4332_v59  ;;  %v2275_v44 = vpack.c.bf16 %v4347_v26, %v4838_v11 }
 0x28b   :  { %2293 = vst [vmem:[%s4513_s4 + $0x88] sm:$0xff] %v2205_v7   ;;  %2294 = vst [vmem:[%s4513_s4 + $0x90] sm:$0xff] %v2210_v22  }
 0x28c   :  { %2295 = vst [vmem:[%s4513_s4 + $0x98] sm:$0xff] %v2215_v29   ;;  %2296 = vst [vmem:[%s4513_s4 + $0xa0] sm:$0xff] %v2220_v32  }
 0x28d   :  { %2297 = vst [vmem:[%s4513_s4 + $0xa8] sm:$0xff] %v2225_v14   ;;  %2298 = vst [vmem:[%s4513_s4 + $0xb0] sm:$0xff] %v2230_v41  }
 0x28e   :  { %2299 = vst [vmem:[%s4513_s4 + $0xb8] sm:$0xff] %v2235_v40   ;;  %2300 = vst [vmem:[%s4513_s4 + $0xc0] sm:$0xff] %v2240_v43  }
 0x28f   :  { %2301 = vst [vmem:[%s4513_s4 + $0xc8] sm:$0xff] %v2245_v56   ;;  %2302 = vst [vmem:[%s4513_s4 + $0xd0] sm:$0xff] %v2250_v20  }
 0x290   :  { %2303 = vst [vmem:[%s4513_s4 + $0xd8] sm:$0xff] %v2255_v17   ;;  %2304 = vst [vmem:[%s4513_s4 + $0xe0] sm:$0xff] %v2260_v27  }
 0x291   :  { %2305 = vst [vmem:[%s4513_s4 + $0xe8] sm:$0xff] %v2265_v30   ;;  %2306 = vst [vmem:[%s4513_s4 + $0xf0] sm:$0xff] %v2270_v4  }
 0x292   :  { %2307 = vst [vmem:[%s4513_s4 + $0xf8] sm:$0xff] %v2275_v44  }

// kernel: discriminator_forward.5
= control target key start
LH: loop header
LB: loop body
LE: loop exit
PB: predicated region body
PF: predicated region fallthrough
CT: control target
= control target key end

     0   :  { %s2160_s15 = smov 0   ;;  %s2162_s16 = smov 0   ;;  %s2869_s0 = inlined_call_operand.vmem [shape: bf16[128,2048], index: 0, kind: input, shape index: {}]   ;;  %s2870_s1 = inlined_call_operand.vmem [shape: bf16[2048,256], index: 1, kind: input, shape index: {}]   ;;  %s2871_s2 = inlined_call_operand.vmem [shape: f32[1,256], index: 2, kind: input, shape index: {}]   ;;  %s2872_s3 = inlined_call_operand.vmem [shape: f32[1,256], index: 3, kind: input, shape index: {}]   ;;  %s2873_s4 = inlined_call_operand.vmem [shape: bf16[128,256], index: 4, kind: output, shape index: {}]  }
   0x1   :  { %s2164_s17 = smov 0  }
   0x2 LB: > { %s2176_s18 = sadd.s32 4294967295, %s2132_s17   ;;  %s2179_s19 = sadd.s32 1, %s2132_s17   ;;  %s2132_s17 = sphi %s2164_s17, %s2876_s17   ;;  %s2128_s16 = sphi %s2162_s16, %s2875_s16   ;;  %s2124_s15 = sphi %s2160_s15, %s2874_s15  }
   0x3   : > { %s18_s20 = ssub.s32 %s2132_s17, %s2179_s19  ;;  %s21_s21 = sadd.s32 1, %s2128_s16 }
   0x4   : > { %p19_p0 = scmp.eq.s32.totalorder %s18_s20, 0  ;;  %p28_p1 = scmp.ne.s32.totalorder %s2128_s16, %s2124_s15 }
   0x5   : > { %p29_p2 = scmp.eq.s32.totalorder %s2132_s17, 0  ;;  %p1794_p4 = scmp.ge.s32.totalorder %s2132_s17, 4 }
   0x6   : > { %s2188_s22 = scalar_select %p19_p0, %s2128_s16, %s21_s21  }
   0x7   : > { %p30_p3 = por %p29_p2, %p28_p1  ;;  %149 = sbr.rel (%p1794_p4) target bundleno = 32 (0x20), region = 24 }
   0xc   : > { %152 = sbr.rel (!%p30_p3) target bundleno = 32 (0x20), region = 28  ;;  %s154_s23 = sand.u32 (%p30_p3), 1, %s2128_s16  }
   0xd   : > { %s1919_s24 = sshll.u32 (%p30_p3), %s2132_s17, 4  ;;  %s1795_s25 = sshll.u32 (%p30_p3), %s154_s23, 8 }
   0xe   : > { %s2196_s28 = scalar_lea.vmem (%p30_p3), %s2869_s0, %s1919_s24  ;;  %s2201_s29 = scalar_lea.vmem (%p30_p3), [#allocation3], %s1795_s25 }
   0xf   : > { %v172_v0 = vld [vmem:[%s2196_s28] sm:$0xff] (%p30_p3)  ;;  %v174_v1 = vld [vmem:[%s2196_s28 + $0x8] sm:$0xff] (%p30_p3) }
  0x10   : > { %v176_v2 = vld [vmem:[%s2196_s28 + $0x40] sm:$0xff] (%p30_p3)  ;;  %173 = vst [vmem:[%s2201_s29] sm:$0xff] (%p30_p3), %v172_v0  ;;  %175 = vst [vmem:[%s2201_s29 + $0x8] sm:$0xff] (%p30_p3), %v174_v1  ;;  %v178_v3 = vld [vmem:[%s2196_s28 + $0x48] sm:$0xff] (%p30_p3) }
  0x11   : > { %177 = vst [vmem:[%s2201_s29 + $0x10] sm:$0xff] %v176_v2  ;;  %v180_v4 = vld [vmem:[%s2196_s28 + $0x80] sm:$0xff]  ;;  %v182_v5 = vld [vmem:[%s2196_s28 + $0x88] sm:$0xff]  ;;  %179 = vst [vmem:[%s2201_s29 + $0x18] sm:$0xff] %v178_v3 }
  0x12   : > { %181 = vst [vmem:[%s2201_s29 + $0x20] sm:$0xff] %v180_v4  ;;  %183 = vst [vmem:[%s2201_s29 + $0x28] sm:$0xff] %v182_v5  ;;  %v184_v6 = vld [vmem:[%s2196_s28 + $0xc0] sm:$0xff]  ;;  %v186_v7 = vld [vmem:[%s2196_s28 + $0xc8] sm:$0xff] }
  0x13   : > { %v188_v8 = vld [vmem:[%s2196_s28 + $0x100] sm:$0xff]  ;;  %185 = vst [vmem:[%s2201_s29 + $0x30] sm:$0xff] %v184_v6  ;;  %187 = vst [vmem:[%s2201_s29 + $0x38] sm:$0xff] %v186_v7  ;;  %v190_v9 = vld [vmem:[%s2196_s28 + $0x108] sm:$0xff] }
  0x14   : > { %189 = vst [vmem:[%s2201_s29 + $0x40] sm:$0xff] %v188_v8  ;;  %v192_v10 = vld [vmem:[%s2196_s28 + $0x140] sm:$0xff]  ;;  %v194_v11 = vld [vmem:[%s2196_s28 + $0x148] sm:$0xff]  ;;  %191 = vst [vmem:[%s2201_s29 + $0x48] sm:$0xff] %v190_v9 }
  0x15   : > { %193 = vst [vmem:[%s2201_s29 + $0x50] sm:$0xff] %v192_v10  ;;  %195 = vst [vmem:[%s2201_s29 + $0x58] sm:$0xff] %v194_v11  ;;  %v196_v12 = vld [vmem:[%s2196_s28 + $0x180] sm:$0xff]  ;;  %v198_v13 = vld [vmem:[%s2196_s28 + $0x188] sm:$0xff] }
  0x16   : > { %v200_v14 = vld [vmem:[%s2196_s28 + $0x1c0] sm:$0xff]  ;;  %197 = vst [vmem:[%s2201_s29 + $0x60] sm:$0xff] %v196_v12  ;;  %199 = vst [vmem:[%s2201_s29 + $0x68] sm:$0xff] %v198_v13  ;;  %v202_v15 = vld [vmem:[%s2196_s28 + $0x1c8] sm:$0xff] }
  0x17   : > { %201 = vst [vmem:[%s2201_s29 + $0x70] sm:$0xff] %v200_v14  ;;  %v204_v16 = vld [vmem:[%s2196_s28 + $0x200] sm:$0xff]  ;;  %v206_v17 = vld [vmem:[%s2196_s28 + $0x208] sm:$0xff]  ;;  %203 = vst [vmem:[%s2201_s29 + $0x78] sm:$0xff] %v202_v15 }
  0x18   : > { %205 = vst [vmem:[%s2201_s29 + $0x80] sm:$0xff] %v204_v16  ;;  %207 = vst [vmem:[%s2201_s29 + $0x88] sm:$0xff] %v206_v17  ;;  %v208_v18 = vld [vmem:[%s2196_s28 + $0x240] sm:$0xff]  ;;  %v210_v19 = vld [vmem:[%s2196_s28 + $0x248] sm:$0xff] }
  0x19   : > { %v212_v20 = vld [vmem:[%s2196_s28 + $0x280] sm:$0xff]  ;;  %209 = vst [vmem:[%s2201_s29 + $0x90] sm:$0xff] %v208_v18  ;;  %211 = vst [vmem:[%s2201_s29 + $0x98] sm:$0xff] %v210_v19  ;;  %v214_v21 = vld [vmem:[%s2196_s28 + $0x288] sm:$0xff] }
  0x1a   : > { %213 = vst [vmem:[%s2201_s29 + $0xa0] sm:$0xff] %v212_v20  ;;  %v216_v22 = vld [vmem:[%s2196_s28 + $0x2c0] sm:$0xff]  ;;  %v218_v23 = vld [vmem:[%s2196_s28 + $0x2c8] sm:$0xff]  ;;  %215 = vst [vmem:[%s2201_s29 + $0xa8] sm:$0xff] %v214_v21 }
  0x1b   : > { %217 = vst [vmem:[%s2201_s29 + $0xb0] sm:$0xff] %v216_v22  ;;  %219 = vst [vmem:[%s2201_s29 + $0xb8] sm:$0xff] %v218_v23  ;;  %v220_v24 = vld [vmem:[%s2196_s28 + $0x300] sm:$0xff]  ;;  %v222_v25 = vld [vmem:[%s2196_s28 + $0x308] sm:$0xff] }
  0x1c   : > { %v224_v26 = vld [vmem:[%s2196_s28 + $0x340] sm:$0xff]  ;;  %221 = vst [vmem:[%s2201_s29 + $0xc0] sm:$0xff] %v220_v24  ;;  %223 = vst [vmem:[%s2201_s29 + $0xc8] sm:$0xff] %v222_v25  ;;  %v226_v27 = vld [vmem:[%s2196_s28 + $0x348] sm:$0xff] }
  0x1d   : > { %225 = vst [vmem:[%s2201_s29 + $0xd0] sm:$0xff] %v224_v26  ;;  %v228_v28 = vld [vmem:[%s2196_s28 + $0x380] sm:$0xff]  ;;  %v230_v29 = vld [vmem:[%s2196_s28 + $0x388] sm:$0xff]  ;;  %227 = vst [vmem:[%s2201_s29 + $0xd8] sm:$0xff] %v226_v27 }
  0x1e   : > { %229 = vst [vmem:[%s2201_s29 + $0xe0] sm:$0xff] %v228_v28  ;;  %231 = vst [vmem:[%s2201_s29 + $0xe8] sm:$0xff] %v230_v29  ;;  %v232_v30 = vld [vmem:[%s2196_s28 + $0x3c0] sm:$0xff]  ;;  %v234_v31 = vld [vmem:[%s2196_s28 + $0x3c8] sm:$0xff] }
  0x1f   : > { %233 = vst [vmem:[%s2201_s29 + $0xf0] sm:$0xff] %v232_v30  ;;  %235 = vst [vmem:[%s2201_s29 + $0xf8] sm:$0xff] %v234_v31 }
  0x20 PF: > { %p1798_p5 = scmp.ge.s32.totalorder %s2132_s17, 1  ;;  %p250_p6 = scmp.lt.s32.totalorder %s2132_s17, 5 }
  0x22   : > { %p251_p7 = pnand %p1798_p5, %p250_p6 }
  0x23   : > { %s257_s30 = sand.u32 (!%p251_p7), 1, %s2124_s15   ;;  %s1800_s5 = sshll.u32 (!%p251_p7), %s2176_s18, 6 }
  0x24   : > { %254 = sbr.rel (%p251_p7) target bundleno = 556 (0x22c), region = 55  ;;  %s1799_s6 = sshll.u32 (!%p251_p7), %s257_s30, 8 }
  0x25   : > { %p285_p8 = scmp.lt.s32.totalorder (!%p251_p7), %s1800_s5, 255  ;;  %s2273_s11 = scalar_lea.vmem (!%p251_p7), [#allocation3], %s1799_s6 }
  0x26   : > { %p1803_p9 = scmp.ne.s32.totalorder (!%p251_p7), %s2176_s18, 0 }
  0x29   : > { %s2878_s5 = smov (!%p285_p8, %s1800_s5), 255  ;;  %294 = sbr.rel (%p1803_p9) target bundleno = 63 (0x3f), region = 63 }
  0x2a   : > { %s1920_s7 = sshll.u32 %s2878_s5, 3 }
  0x2b   : > { %s2271_s10 = scalar_lea.vmem %s2870_s1, %s1920_s7 }
  0x2e   : > { %v2134_v32 = vmov 0.0  }
  0x2f   : > { %295 = vst [vmem:[#allocation2 + $0xb0] sm:$0xff] %v2134_v32  ;;  %296 = vst [vmem:[#allocation2] sm:$0xff] %v2134_v32 }
  0x30   : > { %297 = vst [vmem:[#allocation2 + $0xd8] sm:$0xff] %v2134_v32  ;;  %298 = vst [vmem:[#allocation2 + $0x18] sm:$0xff] %v2134_v32 }
  0x31   : > { %299 = vst [vmem:[#allocation2 + $0x50] sm:$0xff] %v2134_v32  ;;  %300 = vst [vmem:[#allocation2 + $0x68] sm:$0xff] %v2134_v32 }
  0x32   : > { %301 = vst [vmem:[#allocation2 + $0x30] sm:$0xff] %v2134_v32  ;;  %302 = vst [vmem:[#allocation2 + $0x48] sm:$0xff] %v2134_v32 }
  0x33   : > { %303 = vst [vmem:[#allocation2 + $0x80] sm:$0xff] %v2134_v32  ;;  %304 = vst [vmem:[#allocation2 + $0x88] sm:$0xff] %v2134_v32 }
  0x34   : > { %305 = vst [vmem:[#allocation2 + $0xe8] sm:$0xff] %v2134_v32  ;;  %306 = vst [vmem:[#allocation2 + $0xb8] sm:$0xff] %v2134_v32 }
  0x35   : > { %307 = vst [vmem:[#allocation2 + $0x60] sm:$0xff] %v2134_v32  ;;  %308 = vst [vmem:[#allocation2 + $0xf0] sm:$0xff] %v2134_v32 }
  0x36   : > { %309 = vst [vmem:[#allocation2 + $0x8] sm:$0xff] %v2134_v32  ;;  %310 = vst [vmem:[#allocation2 + $0x78] sm:$0xff] %v2134_v32 }
  0x37   : > { %311 = vst [vmem:[#allocation2 + $0x38] sm:$0xff] %v2134_v32  ;;  %312 = vst [vmem:[#allocation2 + $0x58] sm:$0xff] %v2134_v32 }
  0x38   : > { %313 = vst [vmem:[#allocation2 + $0x40] sm:$0xff] %v2134_v32  ;;  %314 = vst [vmem:[#allocation2 + $0xc8] sm:$0xff] %v2134_v32 }
  0x39   : > { %315 = vst [vmem:[#allocation2 + $0xe0] sm:$0xff] %v2134_v32  ;;  %316 = vst [vmem:[#allocation2 + $0x90] sm:$0xff] %v2134_v32 }
  0x3a   : > { %317 = vst [vmem:[#allocation2 + $0x70] sm:$0xff] %v2134_v32  ;;  %318 = vst [vmem:[#allocation2 + $0xc0] sm:$0xff] %v2134_v32 }
  0x3b   : > { %319 = vst [vmem:[#allocation2 + $0xa8] sm:$0xff] %v2134_v32  ;;  %320 = vst [vmem:[#allocation2 + $0xd0] sm:$0xff] %v2134_v32 }
  0x3c   : > { %321 = vst [vmem:[#allocation2 + $0x10] sm:$0xff] %v2134_v32  ;;  %322 = vst [vmem:[#allocation2 + $0x28] sm:$0xff] %v2134_v32 }
  0x3d   : > { %323 = vst [vmem:[#allocation2 + $0xa0] sm:$0xff] %v2134_v32  ;;  %324 = vst [vmem:[#allocation2 + $0xf8] sm:$0xff] %v2134_v32 }
  0x3e   : > { %325 = vst [vmem:[#allocation2 + $0x20] sm:$0xff] %v2134_v32  ;;  %326 = vst [vmem:[#allocation2 + $0x98] sm:$0xff] %v2134_v32 }
  0x3f PF: > { %v1962_v33 = vld [vmem:[%s2271_s10 + $0x74] ss:$8 sps:$4 sm:$0xff]   ;;  %v1966_v35 = vld [vmem:[%s2271_s10 + $0x70] ss:$8 sps:$4 sm:$0xff]   ;;  %v1968_v37 = vld [vmem:[%s2271_s10 + $0x64] ss:$8 sps:$4 sm:$0xff]  }
  0x40   : > { %v1964_v34 = vld [vmem:[%s2271_s10 + $0x174] ss:$8 sps:$4 sm:$0xff]   ;;  %935 = vmatprep.subr.bf16.mxu0 %v1962_v33  ;;  %v1967_v36 = vld [vmem:[%s2271_s10 + $0x170] ss:$8 sps:$4 sm:$0xff]   ;;  %v1970_v38 = vld [vmem:[%s2271_s10 + $0x164] ss:$8 sps:$4 sm:$0xff]  }
  0x41   : > { %1048 = vmatprep.subr.bf16.mxu1 %v1964_v34  ;;  %936 = vmatpush1.bf16.msra.mxu0 %v1966_v35  ;;  %v1972_v39 = vld [vmem:[%s2271_s10 + $0x60] ss:$8 sps:$4 sm:$0xff]   ;;  %v1974_v41 = vld [vmem:[%s2271_s10 + $0x54] ss:$8 sps:$4 sm:$0xff]   ;;  %v1978_v43 = vld [vmem:[%s2271_s10 + $0x50] ss:$8 sps:$4 sm:$0xff]  }
  0x42   : > { %1049 = vmatpush1.bf16.msra.mxu1 %v1967_v36  ;;  %937 = vmatprep.subr.bf16.mxu0 %v1968_v37  ;;  %v1973_v40 = vld [vmem:[%s2271_s10 + $0x160] ss:$8 sps:$4 sm:$0xff]   ;;  %v1976_v42 = vld [vmem:[%s2271_s10 + $0x154] ss:$8 sps:$4 sm:$0xff]   ;;  %v1979_v44 = vld [vmem:[%s2271_s10 + $0x150] ss:$8 sps:$4 sm:$0xff]  }
  0x43   : > { %1050 = vmatprep.subr.bf16.mxu1 %v1970_v38  ;;  %v1980_v45 = vld [vmem:[%s2271_s10 + $0x44] ss:$8 sps:$4 sm:$0xff]   ;;  %v1984_v47 = vld [vmem:[%s2271_s10 + $0x40] ss:$8 sps:$4 sm:$0xff]   ;;  %v1986_v49 = vld [vmem:[%s2271_s10 + $0x34] ss:$8 sps:$4 sm:$0xff]  }
  0x44   : > { %v1982_v46 = vld [vmem:[%s2271_s10 + $0x144] ss:$8 sps:$4 sm:$0xff]   ;;  %v1985_v48 = vld [vmem:[%s2271_s10 + $0x140] ss:$8 sps:$4 sm:$0xff]   ;;  %v1988_v50 = vld [vmem:[%s2271_s10 + $0x134] ss:$8 sps:$4 sm:$0xff]  }
  0x45   : > { %938 = vmatpush1.bf16.msra.mxu0 %v1972_v39  ;;  %v1990_v51 = vld [vmem:[%s2271_s10 + $0x30] ss:$8 sps:$4 sm:$0xff]   ;;  %v1992_v53 = vld [vmem:[%s2271_s10 + $0x24] ss:$8 sps:$4 sm:$0xff]   ;;  %v1996_v55 = vld [vmem:[%s2271_s10 + $0x20] ss:$8 sps:$4 sm:$0xff]  }
  0x46   : > { %1051 = vmatpush1.bf16.msra.mxu1 %v1973_v40  ;;  %939 = vmatprep.subr.bf16.mxu0 %v1974_v41  ;;  %v1991_v52 = vld [vmem:[%s2271_s10 + $0x130] ss:$8 sps:$4 sm:$0xff]   ;;  %v1994_v54 = vld [vmem:[%s2271_s10 + $0x124] ss:$8 sps:$4 sm:$0xff]   ;;  %v1997_v56 = vld [vmem:[%s2271_s10 + $0x120] ss:$8 sps:$4 sm:$0xff]  }
  0x47   : > { %1052 = vmatprep.subr.bf16.mxu1 %v1976_v42  ;;  %v1998_v57 = vld [vmem:[%s2271_s10 + $0x14] ss:$8 sps:$4 sm:$0xff]   ;;  %v2002_v59 = vld [vmem:[%s2271_s10 + $0x10] ss:$8 sps:$4 sm:$0xff]   ;;  %v2004_v61 = vld [vmem:[%s2271_s10 + $0x4] ss:$8 sps:$4 sm:$0xff]  }
  0x48   : > { %v2000_v58 = vld [vmem:[%s2271_s10 + $0x114] ss:$8 sps:$4 sm:$0xff]   ;;  %v2003_v60 = vld [vmem:[%s2271_s10 + $0x110] ss:$8 sps:$4 sm:$0xff]   ;;  %v2006_v62 = vld [vmem:[%s2271_s10 + $0x104] ss:$8 sps:$4 sm:$0xff]  }
  0x49   : > { %940 = vmatpush1.bf16.msra.mxu0 %v1978_v43  ;;  %v2008_v63 = vld [vmem:[%s2271_s10] ss:$8 sps:$4 sm:$0xff]   ;;  %v2010_v1 = vld [vmem:[%s2271_s10 + $0xf4] ss:$8 sps:$4 sm:$0xff]   ;;  %v2014_v3 = vld [vmem:[%s2271_s10 + $0xf0] ss:$8 sps:$4 sm:$0xff]  }
  0x4a   : > { %1053 = vmatpush1.bf16.msra.mxu1 %v1979_v44  ;;  %941 = vmatprep.subr.bf16.mxu0 %v1980_v45  ;;  %v2009_v0 = vld [vmem:[%s2271_s10 + $0x100] ss:$8 sps:$4 sm:$0xff]   ;;  %v2012_v2 = vld [vmem:[%s2271_s10 + $0x1f4] ss:$8 sps:$4 sm:$0xff]   ;;  %v2015_v4 = vld [vmem:[%s2271_s10 + $0x1f0] ss:$8 sps:$4 sm:$0xff]  }
  0x4b   : > { %1054 = vmatprep.subr.bf16.mxu1 %v1982_v46  ;;  %v2016_v5 = vld [vmem:[%s2271_s10 + $0xe4] ss:$8 sps:$4 sm:$0xff]   ;;  %v2020_v7 = vld [vmem:[%s2271_s10 + $0xe0] ss:$8 sps:$4 sm:$0xff]   ;;  %v2022_v9 = vld [vmem:[%s2271_s10 + $0xd4] ss:$8 sps:$4 sm:$0xff]  }
  0x4c   : > { %v2018_v6 = vld [vmem:[%s2271_s10 + $0x1e4] ss:$8 sps:$4 sm:$0xff]   ;;  %v2021_v8 = vld [vmem:[%s2271_s10 + $0x1e0] ss:$8 sps:$4 sm:$0xff]   ;;  %v2024_v10 = vld [vmem:[%s2271_s10 + $0x1d4] ss:$8 sps:$4 sm:$0xff]  }
  0x4d   : > { %942 = vmatpush1.bf16.msra.mxu0 %v1984_v47  ;;  %v2026_v11 = vld [vmem:[%s2271_s10 + $0xd0] ss:$8 sps:$4 sm:$0xff]   ;;  %v2028_v13 = vld [vmem:[%s2271_s10 + $0xc4] ss:$8 sps:$4 sm:$0xff]   ;;  %v2032_v15 = vld [vmem:[%s2271_s10 + $0xc0] ss:$8 sps:$4 sm:$0xff]  }
  0x4e   : > { %1055 = vmatpush1.bf16.msra.mxu1 %v1985_v48  ;;  %943 = vmatprep.subr.bf16.mxu0 %v1986_v49  ;;  %v2027_v12 = vld [vmem:[%s2271_s10 + $0x1d0] ss:$8 sps:$4 sm:$0xff]   ;;  %v2030_v14 = vld [vmem:[%s2271_s10 + $0x1c4] ss:$8 sps:$4 sm:$0xff]   ;;  %v2033_v16 = vld [vmem:[%s2271_s10 + $0x1c0] ss:$8 sps:$4 sm:$0xff]  }
  0x4f   : > { %1056 = vmatprep.subr.bf16.mxu1 %v1988_v50  ;;  %v2034_v17 = vld [vmem:[%s2271_s10 + $0xb4] ss:$8 sps:$4 sm:$0xff]   ;;  %v2038_v21 = vld [vmem:[%s2271_s10 + $0xb0] ss:$8 sps:$4 sm:$0xff]   ;;  %v2040_v23 = vld [vmem:[%s2271_s10 + $0xa4] ss:$8 sps:$4 sm:$0xff]  }
  0x50   : > { %v2060_v18 = vld [vmem:[%s2273_s11 + $0x4] ss:$16 sps:$4 sm:$0xff]   ;;  %v2063_v20 = vld [vmem:[%s2273_s11 + $0xc] ss:$16 sps:$4 sm:$0xff]   ;;  %v2039_v22 = vld [vmem:[%s2271_s10 + $0x1b0] ss:$8 sps:$4 sm:$0xff]  }
  0x51   : > { %944 = vmatpush1.bf16.msra.mxu0 %v1990_v51  ;;  %v2036_v19 = vld [vmem:[%s2271_s10 + $0x1b4] ss:$8 sps:$4 sm:$0xff]   ;;  %967 = vmatprep.mubr.bf16.mxu0 %v2060_v18  ;;  %v2042_v24 = vld [vmem:[%s2271_s10 + $0x1a4] ss:$8 sps:$4 sm:$0xff]   ;;  %v2044_v25 = vld [vmem:[%s2271_s10 + $0xa0] ss:$8 sps:$4 sm:$0xff]  }
  0x52   : > { %1057 = vmatpush1.bf16.msra.mxu1 %v1991_v52  ;;  %945 = vmatprep.subr.bf16.mxu0 %v1992_v53  ;;  %v2045_v26 = vld [vmem:[%s2271_s10 + $0x1a0] ss:$8 sps:$4 sm:$0xff]   ;;  %v2046_v27 = vld [vmem:[%s2271_s10 + $0x94] ss:$8 sps:$4 sm:$0xff]   ;;  %v2050_v29 = vld [vmem:[%s2271_s10 + $0x90] ss:$8 sps:$4 sm:$0xff]  }
  0x53   : > { %1058 = vmatprep.subr.bf16.mxu1 %v1994_v54  ;;  %1080 = vmatprep.mubr.bf16.mxu1 %v2063_v20  ;;  %v2048_v28 = vld [vmem:[%s2271_s10 + $0x194] ss:$8 sps:$4 sm:$0xff]   ;;  %v2051_v30 = vld [vmem:[%s2271_s10 + $0x190] ss:$8 sps:$4 sm:$0xff]   ;;  %v2052_v31 = vld [vmem:[%s2271_s10 + $0x84] ss:$8 sps:$4 sm:$0xff]  }
  0x54   : > { %v2054_v32 = vld [vmem:[%s2271_s10 + $0x184] ss:$8 sps:$4 sm:$0xff]   ;;  %v2056_v33 = vld [vmem:[%s2271_s10 + $0x80] ss:$8 sps:$4 sm:$0xff]   ;;  %p1900_p10 = scmp.ne.s32.totalorder %s2176_s18, 3 }
  0x55   : > { %946 = vmatpush1.bf16.msra.mxu0 %v1996_v55  ;;  %v2057_v34 = vld [vmem:[%s2271_s10 + $0x180] ss:$8 sps:$4 sm:$0xff]   ;;  %v2064_v37 = vld [vmem:[%s2273_s11 + $0x24] ss:$16 sps:$4 sm:$0xff]   ;;  %v2066_v38 = vld [vmem:[%s2273_s11 + $0x2c] ss:$16 sps:$4 sm:$0xff]  }
  0x56   : > { %1059 = vmatpush1.bf16.msra.mxu1 %v1997_v56  ;;  %947 = vmatprep.subr.bf16.mxu0 %v1998_v57  ;;  %v2058_v35 = vld [vmem:[%s2273_s11] ss:$16 sps:$4 sm:$0xff]   ;;  %v2061_v36 = vld [vmem:[%s2273_s11 + $0x8] ss:$16 sps:$4 sm:$0xff]   ;;  %v2070_v41 = vld [vmem:[%s2273_s11 + $0x44] ss:$16 sps:$4 sm:$0xff]  }
  0x57   : > { %1060 = vmatprep.subr.bf16.mxu1 %v2000_v58  ;;  %v2068_v39 = vld [vmem:[%s2273_s11 + $0x20] ss:$16 sps:$4 sm:$0xff]   ;;  %v2069_v40 = vld [vmem:[%s2273_s11 + $0x28] ss:$16 sps:$4 sm:$0xff]   ;;  %v2072_v42 = vld [vmem:[%s2273_s11 + $0x4c] ss:$16 sps:$4 sm:$0xff]  }
  0x58   : > { %v2074_v43 = vld [vmem:[%s2273_s11 + $0x40] ss:$16 sps:$4 sm:$0xff]   ;;  %v2075_v44 = vld [vmem:[%s2273_s11 + $0x48] ss:$16 sps:$4 sm:$0xff]   ;;  %v2076_v45 = vld [vmem:[%s2273_s11 + $0x64] ss:$16 sps:$4 sm:$0xff]  }
  0x59   : > { %948 = vmatpush1.bf16.msra.mxu0 %v2002_v59  ;;  %v2078_v46 = vld [vmem:[%s2273_s11 + $0x6c] ss:$16 sps:$4 sm:$0xff]   ;;  %v2080_v47 = vld [vmem:[%s2273_s11 + $0x60] ss:$16 sps:$4 sm:$0xff]   ;;  %v2081_v48 = vld [vmem:[%s2273_s11 + $0x68] ss:$16 sps:$4 sm:$0xff]  }
  0x5a   : > { %1061 = vmatpush1.bf16.msra.mxu1 %v2003_v60  ;;  %949 = vmatprep.subr.bf16.mxu0 %v2004_v61  ;;  %v2082_v49 = vld [vmem:[%s2273_s11 + $0x84] ss:$16 sps:$4 sm:$0xff]   ;;  %v2084_v50 = vld [vmem:[%s2273_s11 + $0x8c] ss:$16 sps:$4 sm:$0xff]   ;;  %v2086_v51 = vld [vmem:[%s2273_s11 + $0x80] ss:$16 sps:$4 sm:$0xff]  }
  0x5b   : > { %1062 = vmatprep.subr.bf16.mxu1 %v2006_v62  ;;  %v2087_v52 = vld [vmem:[%s2273_s11 + $0x88] ss:$16 sps:$4 sm:$0xff]   ;;  %v2088_v53 = vld [vmem:[%s2273_s11 + $0xa4] ss:$16 sps:$4 sm:$0xff]   ;;  %v2090_v54 = vld [vmem:[%s2273_s11 + $0xac] ss:$16 sps:$4 sm:$0xff]  }
  0x5c   : > { %v2092_v55 = vld [vmem:[%s2273_s11 + $0xa0] ss:$16 sps:$4 sm:$0xff]   ;;  %v2093_v56 = vld [vmem:[%s2273_s11 + $0xa8] ss:$16 sps:$4 sm:$0xff]   ;;  %v2094_v57 = vld [vmem:[%s2273_s11 + $0xc4] ss:$16 sps:$4 sm:$0xff]  }
  0x5d   : > { %950 = vmatpush1.bf16.msra.mxu0 %v2008_v63  ;;  %v2096_v58 = vld [vmem:[%s2273_s11 + $0xcc] ss:$16 sps:$4 sm:$0xff]   ;;  %v2098_v59 = vld [vmem:[%s2273_s11 + $0xc0] ss:$16 sps:$4 sm:$0xff]   ;;  %v2099_v60 = vld [vmem:[%s2273_s11 + $0xc8] ss:$16 sps:$4 sm:$0xff]  }
  0x5e   : > { %1063 = vmatpush1.bf16.msra.mxu1 %v2009_v0  ;;  %951 = vmatprep.subr.bf16.mxu0 %v2010_v1  ;;  %v2100_v61 = vld [vmem:[%s2273_s11 + $0xe4] ss:$16 sps:$4 sm:$0xff]   ;;  %v2102_v62 = vld [vmem:[%s2273_s11 + $0xec] ss:$16 sps:$4 sm:$0xff]   ;;  %v2104_v63 = vld [vmem:[%s2273_s11 + $0xe0] ss:$16 sps:$4 sm:$0xff]  }
  0x5f   : > { %1064 = vmatprep.subr.bf16.mxu1 %v2012_v2  ;;  %v2105_v0 = vld [vmem:[%s2273_s11 + $0xe8] ss:$16 sps:$4 sm:$0xff]   ;;  %v327_v2 = vld [vmem:[#allocation2 + $0xb0] sm:$0xff] }
  0x61   : > { %952 = vmatpush2.bf16.msra.mxu0 %v2014_v3 }
  0x62   : > { %1065 = vmatpush2.bf16.msra.mxu1 %v2015_v4  ;;  %953 = vmatprep.subr.bf16.mxu0 %v2016_v5 }
  0x63   : > { %1066 = vmatprep.subr.bf16.mxu1 %v2018_v6  ;;  %v328_v6 = vld [vmem:[#allocation2] sm:$0xff] }
  0x65   : > { %954 = vmatpush2.bf16.msra.mxu0 %v2020_v7 }
  0x66   : > { %1067 = vmatpush2.bf16.msra.mxu1 %v2021_v8  ;;  %955 = vmatprep.subr.bf16.mxu0 %v2022_v9 }
  0x67   : > { %1068 = vmatprep.subr.bf16.mxu1 %v2024_v10 }
  0x69   : > { %956 = vmatpush2.bf16.msra.mxu0 %v2026_v11  ;;  %v329_v11 = vld [vmem:[#allocation2 + $0xd8] sm:$0xff] }
  0x6a   : > { %1069 = vmatpush2.bf16.msra.mxu1 %v2027_v12  ;;  %957 = vmatprep.subr.bf16.mxu0 %v2028_v13 }
  0x6b   : > { %1070 = vmatprep.subr.bf16.mxu1 %v2030_v14 }
  0x6d   : > { %958 = vmatpush2.bf16.msra.mxu0 %v2032_v15 }
  0x6e   : > { %1071 = vmatpush2.bf16.msra.mxu1 %v2033_v16  ;;  %959 = vmatprep.subr.bf16.mxu0 %v2034_v17  ;;  %v330_v16 = vld [vmem:[#allocation2 + $0x18] sm:$0xff] }
  0x6f   : > { %1072 = vmatprep.subr.bf16.mxu1 %v2036_v19 }
  0x71   : > { %960 = vmatpush2.bf16.msra.mxu0 %v2038_v21  ;;  %v331_v21 = vld [vmem:[#allocation2 + $0x50] sm:$0xff] }
  0x72   : > { %1073 = vmatpush2.bf16.msra.mxu1 %v2039_v22  ;;  %961 = vmatprep.subr.bf16.mxu0 %v2040_v23 }
  0x73   : > { %1074 = vmatprep.subr.bf16.mxu1 %v2042_v24 }
  0x75   : > { %962 = vmatpush2.bf16.msra.mxu0 %v2044_v25 }
  0x76   : > { %1075 = vmatpush2.bf16.msra.mxu1 %v2045_v26  ;;  %963 = vmatprep.subr.bf16.mxu0 %v2046_v27  ;;  %v332_v26 = vld [vmem:[#allocation2 + $0x68] sm:$0xff] }
  0x77   : > { %1076 = vmatprep.subr.bf16.mxu1 %v2048_v28 }
  0x79   : > { %964 = vmatpush2.bf16.msra.mxu0 %v2050_v29 }
  0x7a   : > { %1077 = vmatpush2.bf16.msra.mxu1 %v2051_v30  ;;  %965 = vmatprep.subr.bf16.mxu0 %v2052_v31  ;;  %v333_v31 = vld [vmem:[#allocation2 + $0x30] sm:$0xff] }
  0x7b   : > { %1078 = vmatprep.subr.bf16.mxu1 %v2054_v32 }
  0x7d   : > { %966 = vmatpush2.bf16.msra.mxu0 %v2056_v33 }
  0x7e   : > { %1079 = vmatpush2.bf16.msra.mxu1 %v2057_v34 }
  0x80   : > { %968 = vmatmul.mubr.bf16.vlgmr.msra.gmra.mxu0 %v2058_v35 }
  0x81   : > { %1081 = vmatmul.mubr.bf16.vlgmr.msra.gmra.mxu1 %v2061_v36  ;;  %977 = vmatprep.mubr.bf16.mxu0 %v2064_v37  ;;  %v334_v36 = vld [vmem:[#allocation2 + $0x48] sm:$0xff] }
  0x82   : > { %1090 = vmatprep.mubr.bf16.mxu1 %v2066_v38 }
  0x88   : > { %978 = vmatmul.mubr.bf16.gmra.mxu0 %v2068_v39 }
  0x89   : > { %1091 = vmatmul.mubr.bf16.gmra.mxu1 %v2069_v40  ;;  %987 = vmatprep.mubr.bf16.mxu0 %v2070_v41  ;;  %v335_v41 = vld [vmem:[#allocation2 + $0x80] sm:$0xff] }
  0x8a   : > { %1100 = vmatprep.mubr.bf16.mxu1 %v2072_v42 }
  0x90   : > { %988 = vmatmul.mubr.bf16.gmra.mxu0 %v2074_v43 }
  0x91   : > { %1101 = vmatmul.mubr.bf16.gmra.mxu1 %v2075_v44  ;;  %997 = vmatprep.mubr.bf16.mxu0 %v2076_v45 }
  0x92   : > { %1110 = vmatprep.mubr.bf16.mxu1 %v2078_v46  ;;  %v336_v46 = vld [vmem:[#allocation2 + $0x88] sm:$0xff] }
  0x98   : > { %998 = vmatmul.mubr.bf16.gmra.mxu0 %v2080_v47 }
  0x99   : > { %1111 = vmatmul.mubr.bf16.gmra.mxu1 %v2081_v48  ;;  %1007 = vmatprep.mubr.bf16.mxu0 %v2082_v49 }
  0x9a   : > { %1120 = vmatprep.mubr.bf16.mxu1 %v2084_v50 }
  0xa0   : > { %1008 = vmatmul.mubr.bf16.gmra.mxu0 %v2086_v51  ;;  %v337_v51 = vld [vmem:[#allocation2 + $0xe8] sm:$0xff] }
  0xa1   : > { %1121 = vmatmul.mubr.bf16.gmra.mxu1 %v2087_v52  ;;  %1017 = vmatprep.mubr.bf16.mxu0 %v2088_v53 }
  0xa2   : > { %1130 = vmatprep.mubr.bf16.mxu1 %v2090_v54 }
  0xa8   : > { %1018 = vmatmul.mubr.bf16.gmra.mxu0 %v2092_v55 }
  0xa9   : > { %1131 = vmatmul.mubr.bf16.gmra.mxu1 %v2093_v56  ;;  %1027 = vmatprep.mubr.bf16.mxu0 %v2094_v57  ;;  %v338_v56 = vld [vmem:[#allocation2 + $0xb8] sm:$0xff] }
  0xaa   : > { %1140 = vmatprep.mubr.bf16.mxu1 %v2096_v58 }
  0xb0   : > { %1028 = vmatmul.mubr.bf16.gmra.mxu0 %v2098_v59 }
  0xb1   : > { %1141 = vmatmul.mubr.bf16.gmra.mxu1 %v2099_v60  ;;  %1037 = vmatprep.mubr.bf16.mxu0 %v2100_v61  ;;  %v339_v61 = vld [vmem:[#allocation2 + $0x60] sm:$0xff] }
  0xb2   : > { %1150 = vmatprep.mubr.bf16.mxu1 %v2102_v62 }
  0xb8   : > { %1038 = vmatmul.mubr.bf16.gmra.mxu0 %v2104_v63 }
  0xb9   : > { %1151 = vmatmul.mubr.bf16.gmra.mxu1 %v2105_v0 }
 0x140   : > { %v969_v1 = vpop.f32.mrf.mxu0 }
 0x141   : > { %v1082_v3 = vpop.f32.mrf.mxu1 }
 0x142   : > { %v1083_v4 = vadd.f32 %v1082_v3, %v969_v1  ;;  %v971_v5 = vpop.f32.mrf.mxu0 }
 0x143   : > { %v1084_v7 = vpop.f32.mrf.mxu1 }
 0x144   : > { %v1161_v8 = vadd.f32 %v1083_v4, %v327_v2  ;;  %v1085_v9 = vadd.f32 %v1084_v7, %v971_v5  ;;  %v973_v10 = vpop.f32.mrf.mxu0  ;;  %v340_v2 = vld [vmem:[#allocation2 + $0xf0] sm:$0xff]  ;;  %v341_v7 = vld [vmem:[#allocation2 + $0x8] sm:$0xff] }
 0x145   : > { %v1086_v12 = vpop.f32.mrf.mxu1 }
 0x146   : > { %1193 = vst [vmem:[#allocation2 + $0xb0] sm:$0xff] %v1161_v8  ;;  %v1162_v13 = vadd.f32 %v1085_v9, %v328_v6  ;;  %v1087_v14 = vadd.f32 %v1086_v12, %v973_v10  ;;  %v975_v15 = vpop.f32.mrf.mxu0  ;;  %v342_v12 = vld [vmem:[#allocation2 + $0x78] sm:$0xff] }
 0x147   : > { %v1088_v17 = vpop.f32.mrf.mxu1 }
 0x148   : > { %1194 = vst [vmem:[#allocation2] sm:$0xff] %v1162_v13  ;;  %v1163_v18 = vadd.f32 %v1087_v14, %v329_v11  ;;  %v1089_v19 = vadd.f32 %v1088_v17, %v975_v15  ;;  %v979_v20 = vpop.f32.mrf.mxu0  ;;  %v343_v17 = vld [vmem:[#allocation2 + $0x38] sm:$0xff] }
 0x149   : > { %v1092_v22 = vpop.f32.mrf.mxu1 }
 0x14a   : > { %1195 = vst [vmem:[#allocation2 + $0xd8] sm:$0xff] %v1163_v18  ;;  %v1164_v23 = vadd.f32 %v1089_v19, %v330_v16  ;;  %v1093_v24 = vadd.f32 %v1092_v22, %v979_v20  ;;  %v981_v25 = vpop.f32.mrf.mxu0  ;;  %v344_v22 = vld [vmem:[#allocation2 + $0x58] sm:$0xff] }
 0x14b   : > { %v1094_v27 = vpop.f32.mrf.mxu1 }
 0x14c   : > { %1196 = vst [vmem:[#allocation2 + $0x18] sm:$0xff] %v1164_v23  ;;  %v1165_v28 = vadd.f32 %v1093_v24, %v331_v21  ;;  %v1095_v29 = vadd.f32 %v1094_v27, %v981_v25  ;;  %v983_v30 = vpop.f32.mrf.mxu0  ;;  %v345_v27 = vld [vmem:[#allocation2 + $0x40] sm:$0xff] }
 0x14d   : > { %v1096_v32 = vpop.f32.mrf.mxu1 }
 0x14e   : > { %1197 = vst [vmem:[#allocation2 + $0x50] sm:$0xff] %v1165_v28  ;;  %v1166_v33 = vadd.f32 %v1095_v29, %v332_v26  ;;  %v1097_v34 = vadd.f32 %v1096_v32, %v983_v30  ;;  %v985_v35 = vpop.f32.mrf.mxu0  ;;  %v346_v32 = vld [vmem:[#allocation2 + $0xc8] sm:$0xff] }
 0x14f   : > { %v1098_v37 = vpop.f32.mrf.mxu1 }
 0x150   : > { %1198 = vst [vmem:[#allocation2 + $0x68] sm:$0xff] %v1166_v33  ;;  %v1167_v38 = vadd.f32 %v1097_v34, %v333_v31  ;;  %v1099_v39 = vadd.f32 %v1098_v37, %v985_v35  ;;  %v989_v40 = vpop.f32.mrf.mxu0  ;;  %v347_v37 = vld [vmem:[#allocation2 + $0xe0] sm:$0xff] }
 0x151   : > { %v1102_v42 = vpop.f32.mrf.mxu1 }
 0x152   : > { %1199 = vst [vmem:[#allocation2 + $0x30] sm:$0xff] %v1167_v38  ;;  %v1168_v43 = vadd.f32 %v1099_v39, %v334_v36  ;;  %v1103_v44 = vadd.f32 %v1102_v42, %v989_v40  ;;  %v991_v45 = vpop.f32.mrf.mxu0  ;;  %v348_v42 = vld [vmem:[#allocation2 + $0x90] sm:$0xff] }
 0x153   : > { %v1104_v47 = vpop.f32.mrf.mxu1 }
 0x154   : > { %1200 = vst [vmem:[#allocation2 + $0x48] sm:$0xff] %v1168_v43  ;;  %v1169_v48 = vadd.f32 %v1103_v44, %v335_v41  ;;  %v1105_v49 = vadd.f32 %v1104_v47, %v991_v45  ;;  %v993_v50 = vpop.f32.mrf.mxu0  ;;  %v349_v47 = vld [vmem:[#allocation2 + $0x70] sm:$0xff] }
 0x155   : > { %v1106_v52 = vpop.f32.mrf.mxu1 }
 0x156   : > { %1201 = vst [vmem:[#allocation2 + $0x80] sm:$0xff] %v1169_v48  ;;  %v1170_v53 = vadd.f32 %v1105_v49, %v336_v46  ;;  %v1107_v54 = vadd.f32 %v1106_v52, %v993_v50  ;;  %v995_v55 = vpop.f32.mrf.mxu0  ;;  %v350_v52 = vld [vmem:[#allocation2 + $0xc0] sm:$0xff] }
 0x157   : > { %v1108_v57 = vpop.f32.mrf.mxu1 }
 0x158   : > { %1202 = vst [vmem:[#allocation2 + $0x88] sm:$0xff] %v1170_v53  ;;  %v1171_v58 = vadd.f32 %v1107_v54, %v337_v51  ;;  %v1109_v59 = vadd.f32 %v1108_v57, %v995_v55  ;;  %v999_v60 = vpop.f32.mrf.mxu0  ;;  %v351_v57 = vld [vmem:[#allocation2 + $0xa8] sm:$0xff] }
 0x159   : > { %v1112_v62 = vpop.f32.mrf.mxu1 }
 0x15a   : > { %1203 = vst [vmem:[#allocation2 + $0xe8] sm:$0xff] %v1171_v58  ;;  %v1172_v63 = vadd.f32 %v1109_v59, %v338_v56  ;;  %v1113_v0 = vadd.f32 %v1112_v62, %v999_v60  ;;  %v1001_v1 = vpop.f32.mrf.mxu0  ;;  %v352_v62 = vld [vmem:[#allocation2 + $0xd0] sm:$0xff] }
 0x15b   : > { %v1114_v3 = vpop.f32.mrf.mxu1 }
 0x15c   : > { %1204 = vst [vmem:[#allocation2 + $0xb8] sm:$0xff] %v1172_v63  ;;  %v1173_v4 = vadd.f32 %v1113_v0, %v339_v61  ;;  %v1115_v5 = vadd.f32 %v1114_v3, %v1001_v1  ;;  %v1003_v6 = vpop.f32.mrf.mxu0  ;;  %v353_v3 = vld [vmem:[#allocation2 + $0x10] sm:$0xff] }
 0x15d   : > { %v1116_v8 = vpop.f32.mrf.mxu1 }
 0x15e   : > { %1205 = vst [vmem:[#allocation2 + $0x60] sm:$0xff] %v1173_v4  ;;  %v1174_v9 = vadd.f32 %v1115_v5, %v340_v2  ;;  %v1117_v10 = vadd.f32 %v1116_v8, %v1003_v6  ;;  %v1005_v11 = vpop.f32.mrf.mxu0  ;;  %v354_v8 = vld [vmem:[#allocation2 + $0x28] sm:$0xff] }
 0x15f   : > { %v1118_v13 = vpop.f32.mrf.mxu1 }
 0x160   : > { %1206 = vst [vmem:[#allocation2 + $0xf0] sm:$0xff] %v1174_v9  ;;  %v1175_v14 = vadd.f32 %v1117_v10, %v341_v7  ;;  %v1119_v15 = vadd.f32 %v1118_v13, %v1005_v11  ;;  %v1009_v16 = vpop.f32.mrf.mxu0  ;;  %v355_v13 = vld [vmem:[#allocation2 + $0xa0] sm:$0xff] }
 0x161   : > { %v1122_v18 = vpop.f32.mrf.mxu1 }
 0x162   : > { %1207 = vst [vmem:[#allocation2 + $0x8] sm:$0xff] %v1175_v14  ;;  %v1176_v19 = vadd.f32 %v1119_v15, %v342_v12  ;;  %v1123_v20 = vadd.f32 %v1122_v18, %v1009_v16  ;;  %v1011_v21 = vpop.f32.mrf.mxu0  ;;  %v356_v18 = vld [vmem:[#allocation2 + $0xf8] sm:$0xff] }
 0x163   : > { %v1124_v23 = vpop.f32.mrf.mxu1 }
 0x164   : > { %1208 = vst [vmem:[#allocation2 + $0x78] sm:$0xff] %v1176_v19  ;;  %v1177_v24 = vadd.f32 %v1123_v20, %v343_v17  ;;  %v1125_v25 = vadd.f32 %v1124_v23, %v1011_v21  ;;  %v1013_v26 = vpop.f32.mrf.mxu0  ;;  %v357_v23 = vld [vmem:[#allocation2 + $0x20] sm:$0xff] }
 0x165   : > { %v1126_v28 = vpop.f32.mrf.mxu1 }
 0x166   : > { %1209 = vst [vmem:[#allocation2 + $0x38] sm:$0xff] %v1177_v24  ;;  %v1178_v29 = vadd.f32 %v1125_v25, %v344_v22  ;;  %v1127_v30 = vadd.f32 %v1126_v28, %v1013_v26  ;;  %v1015_v31 = vpop.f32.mrf.mxu0  ;;  %v358_v28 = vld [vmem:[#allocation2 + $0x98] sm:$0xff] }
 0x167   : > { %v1128_v33 = vpop.f32.mrf.mxu1 }
 0x168   : > { %1210 = vst [vmem:[#allocation2 + $0x58] sm:$0xff] %v1178_v29  ;;  %v1179_v34 = vadd.f32 %v1127_v30, %v345_v27  ;;  %v1129_v35 = vadd.f32 %v1128_v33, %v1015_v31  ;;  %v1019_v36 = vpop.f32.mrf.mxu0 }
 0x169   : > { %v1132_v38 = vpop.f32.mrf.mxu1 }
 0x16a   : > { %1211 = vst [vmem:[#allocation2 + $0x40] sm:$0xff] %v1179_v34  ;;  %v1180_v39 = vadd.f32 %v1129_v35, %v346_v32  ;;  %v1133_v40 = vadd.f32 %v1132_v38, %v1019_v36  ;;  %v1021_v41 = vpop.f32.mrf.mxu0 }
 0x16b   : > { %v1134_v43 = vpop.f32.mrf.mxu1 }
 0x16c   : > { %1212 = vst [vmem:[#allocation2 + $0xc8] sm:$0xff] %v1180_v39  ;;  %v1181_v44 = vadd.f32 %v1133_v40, %v347_v37  ;;  %v1135_v45 = vadd.f32 %v1134_v43, %v1021_v41  ;;  %v1023_v46 = vpop.f32.mrf.mxu0 }
 0x16d   : > { %v1136_v48 = vpop.f32.mrf.mxu1 }
 0x16e   : > { %1213 = vst [vmem:[#allocation2 + $0xe0] sm:$0xff] %v1181_v44  ;;  %v1182_v49 = vadd.f32 %v1135_v45, %v348_v42  ;;  %v1137_v50 = vadd.f32 %v1136_v48, %v1023_v46  ;;  %v1025_v51 = vpop.f32.mrf.mxu0 }
 0x16f   : > { %v1138_v53 = vpop.f32.mrf.mxu1 }
 0x170   : > { %1214 = vst [vmem:[#allocation2 + $0x90] sm:$0xff] %v1182_v49  ;;  %v1183_v54 = vadd.f32 %v1137_v50, %v349_v47  ;;  %v1139_v55 = vadd.f32 %v1138_v53, %v1025_v51  ;;  %v1029_v56 = vpop.f32.mrf.mxu0 }
 0x171   : > { %v1142_v58 = vpop.f32.mrf.mxu1 }
 0x172   : > { %1215 = vst [vmem:[#allocation2 + $0x70] sm:$0xff] %v1183_v54  ;;  %v1184_v59 = vadd.f32 %v1139_v55, %v350_v52  ;;  %v1143_v60 = vadd.f32 %v1142_v58, %v1029_v56  ;;  %v1031_v61 = vpop.f32.mrf.mxu0 }
 0x173   : > { %v1144_v63 = vpop.f32.mrf.mxu1 }
 0x174   : > { %1216 = vst [vmem:[#allocation2 + $0xc0] sm:$0xff] %v1184_v59  ;;  %v1185_v0 = vadd.f32 %v1143_v60, %v351_v57  ;;  %v1145_v1 = vadd.f32 %v1144_v63, %v1031_v61  ;;  %v1033_v2 = vpop.f32.mrf.mxu0 }
 0x175   : > { %v1146_v4 = vpop.f32.mrf.mxu1 }
 0x176   : > { %1217 = vst [vmem:[#allocation2 + $0xa8] sm:$0xff] %v1185_v0  ;;  %v1186_v5 = vadd.f32 %v1145_v1, %v352_v62  ;;  %v1147_v6 = vadd.f32 %v1146_v4, %v1033_v2  ;;  %v1035_v7 = vpop.f32.mrf.mxu0 }
 0x177   : > { %v1148_v9 = vpop.f32.mrf.mxu1 }
 0x178   : > { %1218 = vst [vmem:[#allocation2 + $0xd0] sm:$0xff] %v1186_v5  ;;  %v1187_v10 = vadd.f32 %v1147_v6, %v353_v3  ;;  %v1149_v11 = vadd.f32 %v1148_v9, %v1035_v7  ;;  %v1039_v12 = vpop.f32.mrf.mxu0 }
 0x179   : > { %v1152_v14 = vpop.f32.mrf.mxu1 }
 0x17a   : > { %1219 = vst [vmem:[#allocation2 + $0x10] sm:$0xff] %v1187_v10  ;;  %v1188_v15 = vadd.f32 %v1149_v11, %v354_v8  ;;  %v1153_v16 = vadd.f32 %v1152_v14, %v1039_v12  ;;  %v1041_v17 = vpop.f32.mrf.mxu0 }
 0x17b   : > { %v1154_v19 = vpop.f32.mrf.mxu1 }
 0x17c   : > { %1220 = vst [vmem:[#allocation2 + $0x28] sm:$0xff] %v1188_v15  ;;  %v1189_v20 = vadd.f32 %v1153_v16, %v355_v13  ;;  %v1155_v21 = vadd.f32 %v1154_v19, %v1041_v17  ;;  %v1043_v22 = vpop.f32.mrf.mxu0 }
 0x17d   : > { %v1156_v24 = vpop.f32.mrf.mxu1 }
 0x17e   : > { %1221 = vst [vmem:[#allocation2 + $0xa0] sm:$0xff] %v1189_v20  ;;  %v1190_v25 = vadd.f32 %v1155_v21, %v356_v18  ;;  %v1157_v26 = vadd.f32 %v1156_v24, %v1043_v22  ;;  %v1045_v27 = vpop.f32.mrf.mxu0 }
 0x17f   : > { %v1158_v29 = vpop.f32.mrf.mxu1 }
 0x180   : > { %1222 = vst [vmem:[#allocation2 + $0xf8] sm:$0xff] %v1190_v25  ;;  %v1191_v30 = vadd.f32 %v1157_v26, %v357_v23  ;;  %v1159_v31 = vadd.f32 %v1158_v29, %v1045_v27  ;;  %1228 = sbr.rel (%p1900_p10) target bundleno = 556 (0x22c), region = 67 }
 0x182   : > { %1223 = vst [vmem:[#allocation2 + $0x20] sm:$0xff] %v1191_v30  ;;  %v1192_v32 = vadd.f32 %v1159_v31, %v358_v28 }
 0x184   : > { %1224 = vst [vmem:[#allocation2 + $0x98] sm:$0xff] %v1192_v32 }
 0x185   : > { %v2373_v33 = vld [vmem:[#allocation2 + $0xb0] sm:$0xff]  ;;  %v2375_v34 = vld [vmem:[#allocation2] sm:$0xff]  ;;  %v2377_v35 = vld [vmem:[#allocation2 + $0xd8] sm:$0xff] }
 0x186   : > { %v2379_v36 = vld [vmem:[#allocation2 + $0x18] sm:$0xff]  ;;  %v2381_v37 = vld [vmem:[#allocation2 + $0x50] sm:$0xff]  ;;  %v2383_v38 = vld [vmem:[#allocation2 + $0x68] sm:$0xff]  ;;  %v1261_v39 = vadd.f32 %v2377_v35, %v2373_v33 }
 0x187   : > { %v2387_v40 = vld [vmem:[#allocation2 + $0x30] sm:$0xff]  ;;  %v1282_v41 = vadd.f32 %v2379_v36, %v2375_v34  ;;  %v2391_v42 = vld [vmem:[#allocation2 + $0x48] sm:$0xff]  ;;  %v2394_v44 = vld [vmem:[#allocation2 + $0x80] sm:$0xff] }
 0x188   : > { %v1262_v43 = vadd.f32 %v1261_v39, %v2381_v37  ;;  %v2397_v46 = vld [vmem:[#allocation2 + $0x88] sm:$0xff]  ;;  %v2403_v50 = vld [vmem:[#allocation2 + $0xb8] sm:$0xff]  ;;  %v2406_v52 = vld [vmem:[#allocation2 + $0x60] sm:$0xff] }
 0x189   : > { %v1283_v45 = vadd.f32 %v1282_v41, %v2383_v38  ;;  %v2400_v48 = vld [vmem:[#allocation2 + $0xe8] sm:$0xff]  ;;  %v2409_v54 = vld [vmem:[#allocation2 + $0xf0] sm:$0xff]  ;;  %v2415_v58 = vld [vmem:[#allocation2 + $0x78] sm:$0xff] }
 0x18a   : > { %v1263_v47 = vadd.f32 %v1262_v43, %v2387_v40  ;;  %v2412_v56 = vld [vmem:[#allocation2 + $0x8] sm:$0xff]  ;;  %v2418_v60 = vld [vmem:[#allocation2 + $0x38] sm:$0xff]  ;;  %v2424_v0 = vld [vmem:[#allocation2 + $0x40] sm:$0xff] }
 0x18b   : > { %v1284_v49 = vadd.f32 %v1283_v45, %v2391_v42  ;;  %v2421_v62 = vld [vmem:[#allocation2 + $0x58] sm:$0xff]  ;;  %v2427_v2 = vld [vmem:[#allocation2 + $0xc8] sm:$0xff]  ;;  %v2430_v4 = vld [vmem:[#allocation2 + $0xe0] sm:$0xff] }
 0x18c   : > { %v1264_v51 = vadd.f32 %v1263_v47, %v2394_v44  ;;  %v2433_v6 = vld [vmem:[#allocation2 + $0x90] sm:$0xff]  ;;  %v2439_v10 = vld [vmem:[#allocation2 + $0xc0] sm:$0xff]  ;;  %v2442_v12 = vld [vmem:[#allocation2 + $0xa8] sm:$0xff] }
 0x18d   : > { %v1285_v53 = vadd.f32 %v1284_v49, %v2397_v46  ;;  %v2436_v8 = vld [vmem:[#allocation2 + $0x70] sm:$0xff]  ;;  %v2451_v18 = vld [vmem:[#allocation2 + $0x28] sm:$0xff]  ;;  %v2454_v20 = vld [vmem:[#allocation2 + $0xa0] sm:$0xff] }
 0x18e   : > { %v1265_v55 = vadd.f32 %v1264_v51, %v2400_v48  ;;  %v2445_v14 = vld [vmem:[#allocation2 + $0xd0] sm:$0xff]  ;;  %v2457_v22 = vld [vmem:[#allocation2 + $0xf8] sm:$0xff]  ;;  %v2460_v24 = vld [vmem:[#allocation2 + $0x20] sm:$0xff] }
 0x18f   : > { %v1286_v57 = vadd.f32 %v1285_v53, %v2403_v50  ;;  %v2448_v16 = vld [vmem:[#allocation2 + $0x10] sm:$0xff]  ;;  %v2463_v26 = vld [vmem:[#allocation2 + $0x98] sm:$0xff] }
 0x190   : > { %v1266_v59 = vadd.f32 %v1265_v55, %v2406_v52 }
 0x191   : > { %v1287_v61 = vadd.f32 %v1286_v57, %v2409_v54 }
 0x192   : > { %v1267_v63 = vadd.f32 %v1266_v59, %v2412_v56 }
 0x193   : > { %v1288_v1 = vadd.f32 %v1287_v61, %v2415_v58 }
 0x194   : > { %v1268_v3 = vadd.f32 %v1267_v63, %v2418_v60 }
 0x195   : > { %v1289_v5 = vadd.f32 %v1288_v1, %v2421_v62 }
 0x196   : > { %v1269_v7 = vadd.f32 %v1268_v3, %v2424_v0 }
 0x197   : > { %v1290_v9 = vadd.f32 %v1289_v5, %v2427_v2 }
 0x198   : > { %v1270_v11 = vadd.f32 %v1269_v7, %v2430_v4 }
 0x199   : > { %v1291_v13 = vadd.f32 %v1290_v9, %v2433_v6 }
 0x19a   : > { %v1271_v15 = vadd.f32 %v1270_v11, %v2436_v8 }
 0x19b   : > { %v1292_v17 = vadd.f32 %v1291_v13, %v2439_v10 }
 0x19c   : > { %v1272_v19 = vadd.f32 %v1271_v15, %v2442_v12 }
 0x19d   : > { %v1293_v21 = vadd.f32 %v1292_v17, %v2445_v14 }
 0x19e   : > { %v1273_v23 = vadd.f32 %v1272_v19, %v2448_v16 }
 0x19f   : > { %v1294_v25 = vadd.f32 %v1293_v21, %v2451_v18 }
 0x1a0   : > { %v1274_v27 = vadd.f32 %v1273_v23, %v2454_v20 }
 0x1a1   : > { %v1295_v28 = vadd.f32 %v1294_v25, %v2457_v22 }
 0x1a2   : > { %v1275_v29 = vadd.f32 %v1274_v27, %v2460_v24 }
 0x1a3   : > { %v1296_v30 = vadd.f32 %v1295_v28, %v2463_v26 }
 0x1a4   : > { %v1276_v31 = vrot.slane %v1275_v29, 4 }
 0x1a5   : > { %v1297_v32 = vrot.slane %v1296_v30, 4 }
 0x1a6   : > { %v1277_v39 = vadd.f32 %v1276_v31, %v1275_v29 }
 0x1a7   : > { %v1298_v41 = vadd.f32 %v1297_v32, %v1296_v30 }
 0x1a8   : > { %v1278_v43 = vrot.slane %v1277_v39, 2 }
 0x1a9   : > { %v1299_v45 = vrot.slane %v1298_v41, 2 }
 0x1aa   : > { %v1279_v47 = vadd.f32 %v1278_v43, %v1277_v39 }
 0x1ab   : > { %v1300_v49 = vadd.f32 %v1299_v45, %v1298_v41 }
 0x1ac   : > { %v1280_v51 = vrot.slane %v1279_v47, 1 }
 0x1ad   : > { %v1301_v53 = vrot.slane %v1300_v49, 1 }
 0x1ae   : > { %v1281_v55 = vadd.f32 %v1280_v51, %v1279_v47 }
 0x1af   : > { %v1302_v57 = vadd.f32 %v1301_v53, %v1300_v49 }
 0x1b0   : > { %v2469_v59 = vmul.f32 0.0078125, %v1281_v55 }
 0x1b1   : > { %v2471_v61 = vmul.f32 0.0078125, %v1302_v57 }
 0x1b2   : > { %v2475_v63 = vsub.f32 %v2373_v33, %v2469_v59  ;;  %v2483_v3 = vsub.f32 %v2377_v35, %v2469_v59  ;;  %v2491_v7 = vsub.f32 %v2381_v37, %v2469_v59  ;;  %v2527_v15 = vsub.f32 %v2400_v48, %v2469_v59 }
 0x1b3   : > { %v2479_v1 = vsub.f32 %v2375_v34, %v2471_v61  ;;  %v2487_v5 = vsub.f32 %v2379_v36, %v2471_v61  ;;  %v2495_v33 = vsub.f32 %v2383_v38, %v2471_v61  ;;  %v2499_v34 = vsub.f32 %v2387_v40, %v2469_v59 }
 0x1b4   : > { %v2503_v35 = vsub.f32 %v2391_v42, %v2471_v61  ;;  %v1338_v36 = vmul.f32 %v2475_v63, %v2475_v63  ;;  %v1340_v37 = vmul.f32 %v2483_v3, %v2483_v3  ;;  %v2515_v40 = vsub.f32 %v2394_v44, %v2469_v59 }
 0x1b5   : > { %v1339_v9 = vmul.f32 %v2479_v1, %v2479_v1  ;;  %v1341_v38 = vmul.f32 %v2487_v5, %v2487_v5  ;;  %v2519_v42 = vsub.f32 %v2397_v46, %v2471_v61  ;;  %v1342_v11 = vmul.f32 %v2491_v7, %v2491_v7 }
 0x1b6   : > { %v1343_v13 = vmul.f32 %v2495_v33, %v2495_v33  ;;  %v2531_v17 = vsub.f32 %v2403_v50, %v2471_v61  ;;  %v1344_v44 = vmul.f32 %v2499_v34, %v2499_v34  ;;  %v1345_v46 = vmul.f32 %v2503_v35, %v2503_v35 }
 0x1b7   : > { %v1370_v19 = vadd.f32 %v1340_v37, %v1338_v36  ;;  %v1391_v21 = vadd.f32 %v1341_v38, %v1339_v9  ;;  %v2539_v23 = vsub.f32 %v2406_v52, %v2469_v59  ;;  %v2543_v48 = vsub.f32 %v2409_v54, %v2471_v61 }
 0x1b8   : > { %v1346_v50 = vmul.f32 %v2515_v40, %v2515_v40  ;;  %v1347_v25 = vmul.f32 %v2519_v42, %v2519_v42  ;;  %v2551_v29 = vsub.f32 %v2412_v56, %v2469_v59  ;;  %v2555_v52 = vsub.f32 %v2415_v58, %v2471_v61 }
 0x1b9   : > { %v1371_v27 = vadd.f32 %v1370_v19, %v1342_v11  ;;  %v1392_v28 = vadd.f32 %v1391_v21, %v1343_v13  ;;  %v1348_v54 = vmul.f32 %v2527_v15, %v2527_v15  ;;  %v1349_v30 = vmul.f32 %v2531_v17, %v2531_v17 }
 0x1ba   : > { %v2563_v39 = vsub.f32 %v2418_v60, %v2469_v59  ;;  %v2567_v56 = vsub.f32 %v2421_v62, %v2471_v61  ;;  %v1350_v58 = vmul.f32 %v2539_v23, %v2539_v23  ;;  %v1351_v41 = vmul.f32 %v2543_v48, %v2543_v48 }
 0x1bb   : > { %v1372_v31 = vadd.f32 %v1371_v27, %v1344_v44  ;;  %v1393_v32 = vadd.f32 %v1392_v28, %v1345_v46  ;;  %v2575_v47 = vsub.f32 %v2424_v0, %v2469_v59  ;;  %v2579_v60 = vsub.f32 %v2427_v2, %v2471_v61 }
 0x1bc   : > { %v1352_v62 = vmul.f32 %v2551_v29, %v2551_v29  ;;  %v1353_v49 = vmul.f32 %v2555_v52, %v2555_v52  ;;  %v2587_v55 = vsub.f32 %v2430_v4, %v2469_v59  ;;  %v2591_v0 = vsub.f32 %v2433_v6, %v2471_v61 }
 0x1bd   : > { %v1373_v43 = vadd.f32 %v1372_v31, %v1346_v50  ;;  %v1394_v45 = vadd.f32 %v1393_v32, %v1347_v25  ;;  %v1354_v2 = vmul.f32 %v2563_v39, %v2563_v39  ;;  %v1355_v57 = vmul.f32 %v2567_v56, %v2567_v56 }
 0x1be   : > { %v2599_v37 = vsub.f32 %v2436_v8, %v2469_v59  ;;  %v2603_v4 = vsub.f32 %v2439_v10, %v2471_v61  ;;  %v1356_v6 = vmul.f32 %v2575_v47, %v2575_v47  ;;  %v1357_v38 = vmul.f32 %v2579_v60, %v2579_v60 }
 0x1bf   : > { %v1374_v51 = vadd.f32 %v1373_v43, %v1348_v54  ;;  %v1395_v53 = vadd.f32 %v1394_v45, %v1349_v30  ;;  %v2611_v44 = vsub.f32 %v2442_v12, %v2469_v59  ;;  %v2615_v8 = vsub.f32 %v2445_v14, %v2471_v61 }
 0x1c0   : > { %v1358_v10 = vmul.f32 %v2587_v55, %v2587_v55  ;;  %v1359_v46 = vmul.f32 %v2591_v0, %v2591_v0  ;;  %v2623_v50 = vsub.f32 %v2448_v16, %v2469_v59  ;;  %v2627_v12 = vsub.f32 %v2451_v18, %v2471_v61 }
 0x1c1   : > { %v1375_v36 = vadd.f32 %v1374_v51, %v1350_v58  ;;  %v1396_v9 = vadd.f32 %v1395_v53, %v1351_v41  ;;  %v1360_v14 = vmul.f32 %v2599_v37, %v2599_v37  ;;  %v1361_v25 = vmul.f32 %v2603_v4, %v2603_v4 }
 0x1c2   : > { %v2635_v54 = vsub.f32 %v2454_v20, %v2469_v59  ;;  %v2639_v16 = vsub.f32 %v2457_v22, %v2471_v61  ;;  %v1362_v18 = vmul.f32 %v2611_v44, %v2611_v44  ;;  %v1363_v30 = vmul.f32 %v2615_v8, %v2615_v8 }
 0x1c3   : > { %v1376_v11 = vadd.f32 %v1375_v36, %v1352_v62  ;;  %v1397_v13 = vadd.f32 %v1396_v9, %v1353_v49  ;;  %v2647_v58 = vsub.f32 %v2460_v24, %v2469_v59  ;;  %v2651_v20 = vsub.f32 %v2463_v26, %v2471_v61 }
 0x1c4   : > { %v1364_v22 = vmul.f32 %v2623_v50, %v2623_v50  ;;  %v1365_v41 = vmul.f32 %v2627_v12, %v2627_v12  ;;  %v1366_v62 = vmul.f32 %v2635_v54, %v2635_v54  ;;  %v1367_v49 = vmul.f32 %v2639_v16, %v2639_v16 }
 0x1c5   : > { %v1377_v19 = vadd.f32 %v1376_v11, %v1354_v2  ;;  %v1398_v21 = vadd.f32 %v1397_v13, %v1355_v57  ;;  %v1368_v26 = vmul.f32 %v2647_v58, %v2647_v58  ;;  %v1369_v61 = vmul.f32 %v2651_v20, %v2651_v20 }
 0x1c7   : > { %v1378_v27 = vadd.f32 %v1377_v19, %v1356_v6  ;;  %v1399_v28 = vadd.f32 %v1398_v21, %v1357_v38 }
 0x1c9   : > { %v1379_v31 = vadd.f32 %v1378_v27, %v1358_v10  ;;  %v1400_v32 = vadd.f32 %v1399_v28, %v1359_v46 }
 0x1cb   : > { %v1380_v43 = vadd.f32 %v1379_v31, %v1360_v14  ;;  %v1401_v45 = vadd.f32 %v1400_v32, %v1361_v25 }
 0x1cd   : > { %v1381_v24 = vadd.f32 %v1380_v43, %v1362_v18  ;;  %v1402_v59 = vadd.f32 %v1401_v45, %v1363_v30  ;;  %v1450_v45 = vld [vmem:[%s2871_s2] sm:$0x3] }
 0x1cf   : > { %v1382_v51 = vadd.f32 %v1381_v24, %v1364_v22  ;;  %v1403_v53 = vadd.f32 %v1402_v59, %v1365_v41  ;;  %v1452_v22 = vlaneseq }
 0x1d1   : > { %v1383_v2 = vadd.f32 %v1382_v51, %v1366_v62  ;;  %v1404_v57 = vadd.f32 %v1403_v53, %v1367_v49  ;;  %v1453_v41 = vshrl.u32 %v1452_v22, 7  ;;  %v1494_v49 = vld [vmem:[%s2872_s3] sm:$0x3] }
 0x1d3   : > { %v1384_v36 = vadd.f32 %v1383_v2, %v1368_v26  ;;  %v1405_v9 = vadd.f32 %v1404_v57, %v1369_v61  ;;  %v1454_v43 = vsub.s32 0, %v1453_v41  ;;  %v1458_v62 = vsub.s32 1, %v1453_v41 }
 0x1d5   : > { %v1385_v6 = vrot.slane %v1384_v36, 4  ;;  %v1406_v38 = vrot.slane %v1405_v9, 4  ;;  %v2671_v24 = vrot.slane %v1450_v45, %v1454_v43  ;;  %v2675_v26 = vrot.slane %v1450_v45, %v1458_v62 }
 0x1d6   : > { %v2677_v61 = vrot.slane %v1494_v49, %v1454_v43  ;;  %v2679_v51 = vrot.slane %v1494_v49, %v1458_v62 }
 0x1d7   : > { %v1386_v11 = vadd.f32 %v1385_v6, %v1384_v36  ;;  %v1407_v13 = vadd.f32 %v1406_v38, %v1405_v9 }
 0x1d9   : > { %v1387_v10 = vrot.slane %v1386_v11, 2  ;;  %v1408_v46 = vrot.slane %v1407_v13, 2 }
 0x1db   : > { %v1388_v19 = vadd.f32 %v1387_v10, %v1386_v11  ;;  %v1409_v21 = vadd.f32 %v1408_v46, %v1407_v13 }
 0x1dd   : > { %v1389_v14 = vrot.slane %v1388_v19, 1  ;;  %v1410_v25 = vrot.slane %v1409_v21, 1 }
 0x1df   : > { %v1390_v27 = vadd.f32 %v1389_v14, %v1388_v19  ;;  %v1411_v28 = vadd.f32 %v1410_v25, %v1409_v21 }
 0x1e1   : > { %v1412_v18 = vmul.f32 0.0078125, %v1390_v27  ;;  %v1413_v30 = vmul.f32 0.0078125, %v1411_v28 }
 0x1e3   : > { %v1414_v31 = vadd.f32 1e-05, %v1412_v18  ;;  %v1415_v32 = vadd.f32 1e-05, %v1413_v30 }
 0x1e5   : > { %2106 = vrsqrt.f32 %v1414_v31 }
 0x1e6   : > { %2108 = vrsqrt.f32 %v1415_v32 }
 0x1f2   : > { %v2673_v59 = vpop.eup %2106 }
 0x1f3   : > { %v2681_v53 = vpop.eup %2108  ;;  %v1418_v2 = vmul.f32 %v2673_v59, %v2475_v63  ;;  %v1420_v57 = vmul.f32 %v2673_v59, %v2483_v3  ;;  %v1422_v36 = vmul.f32 %v2673_v59, %v2491_v7  ;;  %v1424_v9 = vmul.f32 %v2673_v59, %v2499_v34 }
 0x1f4   : > { %v1419_v6 = vmul.f32 %v2681_v53, %v2479_v1  ;;  %v1421_v38 = vmul.f32 %v2681_v53, %v2487_v5  ;;  %v1423_v11 = vmul.f32 %v2681_v53, %v2495_v33  ;;  %v1425_v63 = vmul.f32 %v2681_v53, %v2503_v35 }
 0x1f5   : > { %v1462_v3 = vmul.f32 %v2671_v24, %v1418_v2  ;;  %v1464_v13 = vmul.f32 %v2671_v24, %v1420_v57  ;;  %v1466_v7 = vmul.f32 %v2671_v24, %v1422_v36  ;;  %v1468_v34 = vmul.f32 %v2671_v24, %v1424_v9 }
 0x1f6   : > { %v1463_v10 = vmul.f32 %v2675_v26, %v1419_v6  ;;  %v1465_v1 = vmul.f32 %v2675_v26, %v1421_v38  ;;  %v1467_v5 = vmul.f32 %v2675_v26, %v1423_v11  ;;  %v1469_v46 = vmul.f32 %v2675_v26, %v1425_v63 }
 0x1f7   : > { %v1506_v33 = vadd.f32 %v2677_v61, %v1462_v3  ;;  %v1508_v35 = vadd.f32 %v2677_v61, %v1464_v13  ;;  %v1510_v19 = vadd.f32 %v2677_v61, %v1466_v7  ;;  %v1512_v21 = vadd.f32 %v2677_v61, %v1468_v34 }
 0x1f8   : > { %v1507_v14 = vadd.f32 %v2679_v51, %v1463_v10  ;;  %v1509_v25 = vadd.f32 %v2679_v51, %v1465_v1  ;;  %v1511_v27 = vadd.f32 %v2679_v51, %v1467_v5  ;;  %v1513_v28 = vadd.f32 %v2679_v51, %v1469_v46 }
 0x1f9   : > { %vm1538_vm0 = vcmp.ge.f32.partialorder %v1506_v33, 0.0  ;;  %v1570_v18 = vmul.f32 0.2, %v1506_v33  ;;  %vm1540_vm1 = vcmp.ge.f32.partialorder %v1508_v35, 0.0  ;;  %v1572_v30 = vmul.f32 0.2, %v1508_v35 }
 0x1fa   : > { %vm1539_vm2 = vcmp.ge.f32.partialorder %v1507_v14, 0.0  ;;  %v1571_v31 = vmul.f32 0.2, %v1507_v14  ;;  %vm1541_vm3 = vcmp.ge.f32.partialorder %v1509_v25, 0.0  ;;  %v1573_v32 = vmul.f32 0.2, %v1509_v25 }
 0x1fb   : > { %v1602_v22 = vsel %vm1538_vm0, %v1506_v33, %v1570_v18  ;;  %v1604_v41 = vsel %vm1540_vm1, %v1508_v35, %v1572_v30  ;;  %vm1542_vm4 = vcmp.ge.f32.partialorder %v1510_v19, 0.0  ;;  %vm1543_vm5 = vcmp.ge.f32.partialorder %v1511_v27, 0.0 }
 0x1fc   : > { %v1603_v43 = vsel %vm1539_vm2, %v1507_v14, %v1571_v31  ;;  %v1605_v45 = vsel %vm1541_vm3, %v1509_v25, %v1573_v32  ;;  %v1574_v62 = vmul.f32 0.2, %v1510_v19  ;;  %v1575_v49 = vmul.f32 0.2, %v1511_v27 }
 0x1fd   : > { %v1921_v2 = vpack.c.bf16 %v1603_v43, %v1602_v22  ;;  %v1922_v57 = vpack.c.bf16 %v1605_v45, %v1604_v41  ;;  %vm1544_vm6 = vcmp.ge.f32.partialorder %v1512_v21, 0.0  ;;  %vm1545_vm7 = vcmp.ge.f32.partialorder %v1513_v28, 0.0 }
 0x1fe   : > { %v1606_v36 = vsel %vm1542_vm4, %v1510_v19, %v1574_v62  ;;  %v1607_v9 = vsel %vm1543_vm5, %v1511_v27, %v1575_v49  ;;  %v1576_v6 = vmul.f32 0.2, %v1512_v21  ;;  %v1577_v38 = vmul.f32 0.2, %v1513_v28 }
 0x1ff   : > { %1730 = vst [vmem:[%s2873_s4] sm:$0xff] %v1921_v2  ;;  %1731 = vst [vmem:[%s2873_s4 + $0x8] sm:$0xff] %v1922_v57  ;;  %v1923_v11 = vpack.c.bf16 %v1607_v9, %v1606_v36  ;;  %v1426_v63 = vmul.f32 %v2673_v59, %v2515_v40  ;;  %v1427_v3 = vmul.f32 %v2681_v53, %v2519_v42 }
 0x200   : > { %v1428_v13 = vmul.f32 %v2673_v59, %v2527_v15  ;;  %v1608_v7 = vsel %vm1544_vm6, %v1512_v21, %v1576_v6  ;;  %v1609_v34 = vsel %vm1545_vm7, %v1513_v28, %v1577_v38  ;;  %v1429_v10 = vmul.f32 %v2681_v53, %v2531_v17 }
 0x201   : > { %v1430_v1 = vmul.f32 %v2673_v59, %v2539_v23  ;;  %1732 = vst [vmem:[%s2873_s4 + $0x10] sm:$0xff] %v1923_v11  ;;  %v1924_v5 = vpack.c.bf16 %v1609_v34, %v1608_v7  ;;  %v1470_v40 = vmul.f32 %v2671_v24, %v1426_v63  ;;  %v1471_v42 = vmul.f32 %v2675_v26, %v1427_v3 }
 0x202   : > { %v1472_v46 = vmul.f32 %v2671_v24, %v1428_v13  ;;  %v1473_v15 = vmul.f32 %v2675_v26, %v1429_v10  ;;  %v1431_v33 = vmul.f32 %v2681_v53, %v2543_v48  ;;  %v1432_v23 = vmul.f32 %v2673_v59, %v2551_v29 }
 0x203   : > { %v1474_v17 = vmul.f32 %v2671_v24, %v1430_v1  ;;  %1733 = vst [vmem:[%s2873_s4 + $0x18] sm:$0xff] %v1924_v5  ;;  %v1514_v35 = vadd.f32 %v2677_v61, %v1470_v40  ;;  %v1515_v19 = vadd.f32 %v2679_v51, %v1471_v42  ;;  %v1433_v14 = vmul.f32 %v2681_v53, %v2555_v52 }
 0x204   : > { %v1516_v21 = vadd.f32 %v2677_v61, %v1472_v46  ;;  %v1517_v48 = vadd.f32 %v2679_v51, %v1473_v15  ;;  %v1475_v25 = vmul.f32 %v2675_v26, %v1431_v33  ;;  %v1476_v29 = vmul.f32 %v2671_v24, %v1432_v23 }
 0x205   : > { %v1518_v27 = vadd.f32 %v2677_v61, %v1474_v17  ;;  %vm1546_vm8 = vcmp.ge.f32.partialorder %v1514_v35, 0.0  ;;  %vm1547_vm9 = vcmp.ge.f32.partialorder %v1515_v19, 0.0  ;;  %v1578_v28 = vmul.f32 0.2, %v1514_v35 }
 0x206   : > { %v1579_v18 = vmul.f32 0.2, %v1515_v19  ;;  %vm1548_vm10 = vcmp.ge.f32.partialorder %v1516_v21, 0.0  ;;  %vm1549_vm11 = vcmp.ge.f32.partialorder %v1517_v48, 0.0  ;;  %v1580_v30 = vmul.f32 0.2, %v1516_v21 }
 0x207   : > { %v1581_v31 = vmul.f32 0.2, %v1517_v48  ;;  %v1610_v32 = vsel %vm1546_vm8, %v1514_v35, %v1578_v28  ;;  %v1519_v52 = vadd.f32 %v2679_v51, %v1475_v25  ;;  %vm1550_vm12 = vcmp.ge.f32.partialorder %v1518_v27, 0.0 }
 0x208   : > { %v1611_v22 = vsel %vm1547_vm9, %v1515_v19, %v1579_v18  ;;  %v1612_v43 = vsel %vm1548_vm10, %v1516_v21, %v1580_v30  ;;  %v1582_v62 = vmul.f32 0.2, %v1518_v27  ;;  %v1477_v57 = vmul.f32 %v2675_v26, %v1433_v14 }
 0x209   : > { %v1925_v41 = vpack.c.bf16 %v1611_v22, %v1610_v32  ;;  %v1613_v45 = vsel %vm1549_vm11, %v1517_v48, %v1581_v31  ;;  %vm1551_vm13 = vcmp.ge.f32.partialorder %v1519_v52, 0.0  ;;  %v1583_v2 = vmul.f32 0.2, %v1519_v52 }
 0x20a   : > { %v1926_v49 = vpack.c.bf16 %v1613_v45, %v1612_v43  ;;  %v1614_v36 = vsel %vm1550_vm12, %v1518_v27, %v1582_v62  ;;  %v1520_v9 = vadd.f32 %v2677_v61, %v1476_v29  ;;  %v1434_v6 = vmul.f32 %v2673_v59, %v2563_v39 }
 0x20b   : > { %1734 = vst [vmem:[%s2873_s4 + $0x20] sm:$0xff] %v1925_v41  ;;  %v1435_v38 = vmul.f32 %v2681_v53, %v2567_v56  ;;  %v1615_v11 = vsel %vm1551_vm13, %v1519_v52, %v1583_v2  ;;  %v1521_v63 = vadd.f32 %v2679_v51, %v1477_v57  ;;  %v1436_v3 = vmul.f32 %v2673_v59, %v2575_v47 }
 0x20c   : > { %1735 = vst [vmem:[%s2873_s4 + $0x28] sm:$0xff] %v1926_v49  ;;  %v1437_v13 = vmul.f32 %v2681_v53, %v2579_v60  ;;  %v1927_v7 = vpack.c.bf16 %v1615_v11, %v1614_v36  ;;  %vm1552_vm14 = vcmp.ge.f32.partialorder %v1520_v9, 0.0  ;;  %v1584_v34 = vmul.f32 0.2, %v1520_v9 }
 0x20d   : > { %v1478_v39 = vmul.f32 %v2671_v24, %v1434_v6  ;;  %vm1553_vm15 = vcmp.ge.f32.partialorder %v1521_v63, 0.0  ;;  %v1585_v56 = vmul.f32 0.2, %v1521_v63  ;;  %v1479_v10 = vmul.f32 %v2675_v26, %v1435_v38 }
 0x20e   : > { %v1480_v1 = vmul.f32 %v2671_v24, %v1436_v3  ;;  %1736 = vst [vmem:[%s2873_s4 + $0x30] sm:$0xff] %v1927_v7  ;;  %v1616_v5 = vsel %vm1552_vm14, %v1520_v9, %v1584_v34  ;;  %v1481_v60 = vmul.f32 %v2675_v26, %v1437_v13  ;;  %v1438_v40 = vmul.f32 %v2673_v59, %v2587_v55 }
 0x20f   : > { %v1522_v47 = vadd.f32 %v2677_v61, %v1478_v39  ;;  %v1617_v42 = vsel %vm1553_vm15, %v1521_v63, %v1585_v56  ;;  %v1523_v46 = vadd.f32 %v2679_v51, %v1479_v10  ;;  %v1439_v33 = vmul.f32 %v2681_v53, %v2591_v0 }
 0x210   : > { %v1524_v15 = vadd.f32 %v2677_v61, %v1480_v1  ;;  %v1928_v17 = vpack.c.bf16 %v1617_v42, %v1616_v5  ;;  %v1525_v35 = vadd.f32 %v2679_v51, %v1481_v60  ;;  %v1482_v48 = vmul.f32 %v2671_v24, %v1438_v40 }
 0x211   : > { %vm1554_vm0 = vcmp.ge.f32.partialorder %v1522_v47, 0.0  ;;  %v1586_v23 = vmul.f32 0.2, %v1522_v47  ;;  %vm1555_vm1 = vcmp.ge.f32.partialorder %v1523_v46, 0.0  ;;  %v1587_v19 = vmul.f32 0.2, %v1523_v46 }
 0x212   : > { %vm1556_vm2 = vcmp.ge.f32.partialorder %v1524_v15, 0.0  ;;  %v1588_v21 = vmul.f32 0.2, %v1524_v15  ;;  %1737 = vst [vmem:[%s2873_s4 + $0x38] sm:$0xff] %v1928_v17  ;;  %vm1557_vm3 = vcmp.ge.f32.partialorder %v1525_v35, 0.0  ;;  %v1483_v27 = vmul.f32 %v2675_v26, %v1439_v33 }
 0x213   : > { %v1618_v55 = vsel %vm1554_vm0, %v1522_v47, %v1586_v23  ;;  %v1589_v14 = vmul.f32 0.2, %v1525_v35  ;;  %v1619_v25 = vsel %vm1555_vm1, %v1523_v46, %v1587_v19  ;;  %v1440_v29 = vmul.f32 %v2673_v59, %v2599_v37 }
 0x214   : > { %v1620_v0 = vsel %vm1556_vm2, %v1524_v15, %v1588_v21  ;;  %v1929_v28 = vpack.c.bf16 %v1619_v25, %v1618_v55  ;;  %v1526_v30 = vadd.f32 %v2677_v61, %v1482_v48  ;;  %v1441_v31 = vmul.f32 %v2681_v53, %v2603_v4 }
 0x215   : > { %v1621_v18 = vsel %vm1557_vm3, %v1525_v35, %v1589_v14  ;;  %v1527_v22 = vadd.f32 %v2679_v51, %v1483_v27  ;;  %v1484_v52 = vmul.f32 %v2671_v24, %v1440_v29  ;;  %v1442_v41 = vmul.f32 %v2673_v59, %v2611_v44 }
 0x216   : > { %v1930_v32 = vpack.c.bf16 %v1621_v18, %v1620_v0  ;;  %1738 = vst [vmem:[%s2873_s4 + $0x40] sm:$0xff] %v1929_v28  ;;  %vm1558_vm4 = vcmp.ge.f32.partialorder %v1526_v30, 0.0  ;;  %v1590_v37 = vmul.f32 0.2, %v1526_v30  ;;  %v1485_v43 = vmul.f32 %v2675_v26, %v1441_v31 }
 0x217   : > { %v1443_v45 = vmul.f32 %v2681_v53, %v2615_v8  ;;  %vm1559_vm5 = vcmp.ge.f32.partialorder %v1527_v22, 0.0  ;;  %v1591_v4 = vmul.f32 0.2, %v1527_v22  ;;  %v1528_v62 = vadd.f32 %v2677_v61, %v1484_v52 }
 0x218   : > { %1739 = vst [vmem:[%s2873_s4 + $0x48] sm:$0xff] %v1930_v32  ;;  %v1486_v44 = vmul.f32 %v2671_v24, %v1442_v41  ;;  %v1622_v49 = vsel %vm1558_vm4, %v1526_v30, %v1590_v37  ;;  %v1529_v2 = vadd.f32 %v2679_v51, %v1485_v43  ;;  %v1444_v36 = vmul.f32 %v2673_v59, %v2623_v50 }
 0x219   : > { %v1487_v57 = vmul.f32 %v2675_v26, %v1443_v45  ;;  %v1623_v9 = vsel %vm1559_vm5, %v1527_v22, %v1591_v4  ;;  %vm1560_vm6 = vcmp.ge.f32.partialorder %v1528_v62, 0.0  ;;  %v1592_v8 = vmul.f32 0.2, %v1528_v62 }
 0x21a   : > { %v1530_v6 = vadd.f32 %v2677_v61, %v1486_v44  ;;  %v1931_v38 = vpack.c.bf16 %v1623_v9, %v1622_v49  ;;  %vm1561_vm7 = vcmp.ge.f32.partialorder %v1529_v2, 0.0  ;;  %v1593_v11 = vmul.f32 0.2, %v1529_v2 }
 0x21b   : > { %v1531_v63 = vadd.f32 %v2679_v51, %v1487_v57  ;;  %v1624_v3 = vsel %vm1560_vm6, %v1528_v62, %v1592_v8  ;;  %v1445_v7 = vmul.f32 %v2681_v53, %v2627_v12  ;;  %v1488_v39 = vmul.f32 %v2671_v24, %v1444_v36 }
 0x21c   : > { %vm1562_vm8 = vcmp.ge.f32.partialorder %v1530_v6, 0.0  ;;  %v1594_v13 = vmul.f32 0.2, %v1530_v6  ;;  %1740 = vst [vmem:[%s2873_s4 + $0x50] sm:$0xff] %v1931_v38  ;;  %v1625_v50 = vsel %vm1561_vm7, %v1529_v2, %v1593_v11  ;;  %v1446_v5 = vmul.f32 %v2673_v59, %v2635_v54 }
 0x21d   : > { %vm1563_vm9 = vcmp.ge.f32.partialorder %v1531_v63, 0.0  ;;  %v1595_v34 = vmul.f32 0.2, %v1531_v63  ;;  %v1932_v56 = vpack.c.bf16 %v1625_v50, %v1624_v3  ;;  %v1489_v1 = vmul.f32 %v2675_v26, %v1445_v7 }
 0x21e   : > { %v1626_v10 = vsel %vm1562_vm8, %v1530_v6, %v1594_v13  ;;  %v1532_v60 = vadd.f32 %v2677_v61, %v1488_v39  ;;  %v1447_v12 = vmul.f32 %v2681_v53, %v2639_v16  ;;  %v1448_v40 = vmul.f32 %v2673_v59, %v2647_v58 }
 0x21f   : > { %v1627_v47 = vsel %vm1563_vm9, %v1531_v63, %v1595_v34  ;;  %1741 = vst [vmem:[%s2873_s4 + $0x58] sm:$0xff] %v1932_v56  ;;  %v1533_v46 = vadd.f32 %v2679_v51, %v1489_v1  ;;  %v1490_v15 = vmul.f32 %v2671_v24, %v1446_v5  ;;  %v1449_v54 = vmul.f32 %v2681_v53, %v2651_v20 }
 0x220   : > { %v1933_v42 = vpack.c.bf16 %v1627_v47, %v1626_v10  ;;  %vm1564_vm10 = vcmp.ge.f32.partialorder %v1532_v60, 0.0  ;;  %v1596_v33 = vmul.f32 0.2, %v1532_v60  ;;  %v1491_v17 = vmul.f32 %v2675_v26, %v1447_v12 }
 0x221   : > { %v1492_v16 = vmul.f32 %v2671_v24, %v1448_v40  ;;  %vm1565_vm11 = vcmp.ge.f32.partialorder %v1533_v46, 0.0  ;;  %v1597_v58 = vmul.f32 0.2, %v1533_v46  ;;  %v1534_v59 = vadd.f32 %v2677_v61, %v1490_v15 }
 0x222   : > { %1742 = vst [vmem:[%s2873_s4 + $0x60] sm:$0xff] %v1933_v42  ;;  %v1493_v23 = vmul.f32 %v2675_v26, %v1449_v54  ;;  %v1628_v35 = vsel %vm1564_vm10, %v1532_v60, %v1596_v33  ;;  %v1535_v19 = vadd.f32 %v2679_v51, %v1491_v17 }
 0x223   : > { %v1536_v20 = vadd.f32 %v2677_v61, %v1492_v16  ;;  %v1629_v53 = vsel %vm1565_vm11, %v1533_v46, %v1597_v58  ;;  %vm1566_vm12 = vcmp.ge.f32.partialorder %v1534_v59, 0.0  ;;  %v1598_v21 = vmul.f32 0.2, %v1534_v59 }
 0x224   : > { %v1537_v24 = vadd.f32 %v2679_v51, %v1493_v23  ;;  %v1934_v55 = vpack.c.bf16 %v1629_v53, %v1628_v35  ;;  %vm1567_vm13 = vcmp.ge.f32.partialorder %v1535_v19, 0.0  ;;  %v1599_v14 = vmul.f32 0.2, %v1535_v19 }
 0x225   : > { %vm1568_vm14 = vcmp.ge.f32.partialorder %v1536_v20, 0.0  ;;  %v1630_v48 = vsel %vm1566_vm12, %v1534_v59, %v1598_v21  ;;  %v1600_v25 = vmul.f32 0.2, %v1536_v20 }
 0x226   : > { %vm1569_vm15 = vcmp.ge.f32.partialorder %v1537_v24, 0.0  ;;  %v1601_v0 = vmul.f32 0.2, %v1537_v24  ;;  %1743 = vst [vmem:[%s2873_s4 + $0x68] sm:$0xff] %v1934_v55  ;;  %v1631_v26 = vsel %vm1567_vm13, %v1535_v19, %v1599_v14 }
 0x227   : > { %v1935_v27 = vpack.c.bf16 %v1631_v26, %v1630_v48  ;;  %v1632_v61 = vsel %vm1568_vm14, %v1536_v20, %v1600_v25 }
 0x228   : > { %v1633_v29 = vsel %vm1569_vm15, %v1537_v24, %v1601_v0 }
 0x229   : > { %v1936_v28 = vpack.c.bf16 %v1633_v29, %v1632_v61  ;;  %1744 = vst [vmem:[%s2873_s4 + $0x70] sm:$0xff] %v1935_v27 }
 0x22b   : > { %1745 = vst [vmem:[%s2873_s4 + $0x78] sm:$0xff] %v1936_v28 }
 0x22c PF: > { %p11_p11 = scmp.ge.s32.totalorder %s2179_s19, 6   ;;  %s2874_s15 = smov %s2128_s16 }
 0x22d   : > { %s2875_s16 = smov %s2188_s22  ;;  %s2876_s17 = smov %s2179_s19 }
 0x22e   :  { %13 = sbr.rel (!%p11_p11) target bundleno = 2 (0x2), region = 101 }

// kernel: discriminator_forward.6
= control target key start
LH: loop header
LB: loop body
LE: loop exit
PB: predicated region body
PF: predicated region fallthrough
CT: control target
= control target key end

     0   :  { %s2178_s15 = smov 0   ;;  %s2180_s16 = smov 0   ;;  %s2587_s0 = inlined_call_operand.vmem [shape: bf16[32,4096], index: 0, kind: input, shape index: {}]   ;;  %s2588_s1 = inlined_call_operand.vmem [shape: bf16[4096,512], index: 1, kind: input, shape index: {}]   ;;  %s2589_s2 = inlined_call_operand.vmem [shape: f32[1,512], index: 2, kind: input, shape index: {}]   ;;  %s2590_s3 = inlined_call_operand.vmem [shape: f32[1,512], index: 3, kind: input, shape index: {}]   ;;  %s2591_s4 = inlined_call_operand.vmem [shape: bf16[32,512], index: 4, kind: output, shape index: {}]  }
   0x1   :  { %s2182_s17 = smov 0  }
   0x2 LB: > { %s2194_s18 = sadd.s32 4294967295, %s2150_s17   ;;  %s2197_s19 = sadd.s32 1, %s2150_s17   ;;  %s2150_s17 = sphi %s2182_s17, %s2594_s17   ;;  %s2146_s16 = sphi %s2180_s16, %s2593_s16   ;;  %s2142_s15 = sphi %s2178_s15, %s2592_s15  }
   0x3   : > { %s18_s20 = ssub.s32 %s2150_s17, %s2197_s19  ;;  %s21_s21 = sadd.s32 1, %s2146_s16 }
   0x4   : > { %p19_p0 = scmp.eq.s32.totalorder %s18_s20, 0  ;;  %p28_p1 = scmp.ne.s32.totalorder %s2146_s16, %s2142_s15 }
   0x5   : > { %p29_p2 = scmp.eq.s32.totalorder %s2150_s17, 0  ;;  %p1724_p4 = scmp.ge.s32.totalorder %s2150_s17, 8 }
   0x6   : > { %s2206_s22 = scalar_select %p19_p0, %s2146_s16, %s21_s21  }
   0x7   : > { %p30_p3 = por %p29_p2, %p28_p1  ;;  %149 = sbr.rel (%p1724_p4) target bundleno = 20 (0x14), region = 24 }
   0xc   : > { %152 = sbr.rel (!%p30_p3) target bundleno = 20 (0x14), region = 28  ;;  %s154_s23 = sand.u32 (%p30_p3), 1, %s2146_s16  }
   0xd   : > { %s1881_s24 = sshll.u32 (%p30_p3), %s2150_s17, 4  ;;  %s1725_s25 = sshll.u32 (%p30_p3), %s154_s23, 6 }
   0xe   : > { %s159_s28 = scalar_lea.vmem (%p30_p3), %s2587_s0, %s1881_s24  ;;  %s156_s29 = scalar_lea.vmem (%p30_p3), [#allocation3], %s1725_s25 }
   0xf   : > { %v172_v0 = vld [vmem:[%s159_s28] sm:$0xff] (%p30_p3)  ;;  %v174_v1 = vld [vmem:[%s159_s28 + $0x8] sm:$0xff] (%p30_p3) }
  0x10   : > { %v176_v2 = vld [vmem:[%s159_s28 + $0x80] sm:$0xff] (%p30_p3)  ;;  %173 = vst [vmem:[%s156_s29] sm:$0xff] (%p30_p3), %v172_v0  ;;  %175 = vst [vmem:[%s156_s29 + $0x8] sm:$0xff] (%p30_p3), %v174_v1  ;;  %v178_v3 = vld [vmem:[%s159_s28 + $0x88] sm:$0xff] (%p30_p3) }
  0x11   : > { %177 = vst [vmem:[%s156_s29 + $0x10] sm:$0xff] %v176_v2  ;;  %v180_v4 = vld [vmem:[%s159_s28 + $0x100] sm:$0xff]  ;;  %v182_v5 = vld [vmem:[%s159_s28 + $0x108] sm:$0xff]  ;;  %179 = vst [vmem:[%s156_s29 + $0x18] sm:$0xff] %v178_v3 }
  0x12   : > { %181 = vst [vmem:[%s156_s29 + $0x20] sm:$0xff] %v180_v4  ;;  %183 = vst [vmem:[%s156_s29 + $0x28] sm:$0xff] %v182_v5  ;;  %v184_v6 = vld [vmem:[%s159_s28 + $0x180] sm:$0xff]  ;;  %v186_v7 = vld [vmem:[%s159_s28 + $0x188] sm:$0xff] }
  0x13   : > { %185 = vst [vmem:[%s156_s29 + $0x30] sm:$0xff] %v184_v6  ;;  %187 = vst [vmem:[%s156_s29 + $0x38] sm:$0xff] %v186_v7 }
  0x14 PF: > { %p1728_p5 = scmp.ge.s32.totalorder %s2150_s17, 1  ;;  %p202_p6 = scmp.lt.s32.totalorder %s2150_s17, 9 }
  0x16   : > { %p203_p7 = pnand %p1728_p5, %p202_p6 }
  0x17   : > { %s209_s30 = sand.u32 (!%p203_p7), 1, %s2142_s15   ;;  %s1730_s5 = sshll.u32 (!%p203_p7), %s2194_s18, 6 }
  0x18   : > { %206 = sbr.rel (%p203_p7) target bundleno = 480 (0x1e0), region = 55  ;;  %s1729_s6 = sshll.u32 (!%p203_p7), %s209_s30, 6 }
  0x19   : > { %p237_p8 = scmp.lt.s32.totalorder (!%p203_p7), %s1730_s5, 511  ;;  %s2223_s11 = scalar_lea.vmem (!%p203_p7), [#allocation3], %s1729_s6 }
  0x1a   : > { %p1733_p9 = scmp.ne.s32.totalorder (!%p203_p7), %s2194_s18, 0 }
  0x1d   : > { %s2596_s5 = smov (!%p237_p8, %s1730_s5), 511  ;;  %246 = sbr.rel (%p1733_p9) target bundleno = 43 (0x2b), region = 63 }
  0x1e   : > { %s1882_s7 = sshll.u32 %s2596_s5, 4 }
  0x1f   : > { %s2221_s10 = scalar_lea.vmem %s2588_s1, %s1882_s7 }
  0x22   : > { %v2152_v8 = vmov 0.0  }
  0x23   : > { %247 = vst [vmem:[#allocation2 + $0x30] sm:$0xff] %v2152_v8  ;;  %248 = vst [vmem:[#allocation2] sm:$0xff] %v2152_v8 }
  0x24   : > { %249 = vst [vmem:[#allocation2 + $0x58] sm:$0xff] %v2152_v8  ;;  %250 = vst [vmem:[#allocation2 + $0x18] sm:$0xff] %v2152_v8 }
  0x25   : > { %251 = vst [vmem:[#allocation2 + $0x50] sm:$0xff] %v2152_v8  ;;  %252 = vst [vmem:[#allocation2 + $0x68] sm:$0xff] %v2152_v8 }
  0x26   : > { %253 = vst [vmem:[#allocation2 + $0x8] sm:$0xff] %v2152_v8  ;;  %254 = vst [vmem:[#allocation2 + $0x48] sm:$0xff] %v2152_v8 }
  0x27   : > { %255 = vst [vmem:[#allocation2 + $0x40] sm:$0xff] %v2152_v8  ;;  %256 = vst [vmem:[#allocation2 + $0x20] sm:$0xff] %v2152_v8 }
  0x28   : > { %257 = vst [vmem:[#allocation2 + $0x10] sm:$0xff] %v2152_v8  ;;  %258 = vst [vmem:[#allocation2 + $0x38] sm:$0xff] %v2152_v8 }
  0x29   : > { %259 = vst [vmem:[#allocation2 + $0x60] sm:$0xff] %v2152_v8  ;;  %260 = vst [vmem:[#allocation2 + $0x70] sm:$0xff] %v2152_v8 }
  0x2a   : > { %261 = vst [vmem:[#allocation2 + $0x78] sm:$0xff] %v2152_v8  ;;  %262 = vst [vmem:[#allocation2 + $0x28] sm:$0xff] %v2152_v8 }
  0x2b PF: > { %v1916_v9 = vld [vmem:[%s2221_s10 + $0xe4] ss:$16 sps:$4 sm:$0xff]   ;;  %v1920_v11 = vld [vmem:[%s2221_s10 + $0xe0] ss:$16 sps:$4 sm:$0xff]   ;;  %v2280_v60 = vld [vmem:[%s2223_s11 + $0xc] ss:$16 sps:$4 sm:$0xff]  }
  0x2c   : > { %v1918_v10 = vld [vmem:[%s2221_s10 + $0x2e4] ss:$16 sps:$4 sm:$0xff]   ;;  %1095 = vmatprep.subr.bf16.mxu0 %v1916_v9  ;;  %v1921_v12 = vld [vmem:[%s2221_s10 + $0x2e0] ss:$16 sps:$4 sm:$0xff]   ;;  %1180 = vmatprep.mubr.bf16.mxu1 %v2280_v60  ;;  %p1870_p10 = scmp.ne.s32.totalorder %s2194_s18, 7 }
  0x2d   : > { %1148 = vmatprep.subr.bf16.mxu1 %v1918_v10  ;;  %v1922_v13 = vld [vmem:[%s2221_s10 + $0xc4] ss:$16 sps:$4 sm:$0xff]   ;;  %1096 = vmatpush1.bf16.msra.mxu0 %v1920_v11  ;;  %v1926_v15 = vld [vmem:[%s2221_s10 + $0xc0] ss:$16 sps:$4 sm:$0xff]   ;;  %v2020_v11 = vld [vmem:[%s2221_s10 + $0xec] ss:$16 sps:$4 sm:$0xff]  }
  0x2e   : > { %1149 = vmatpush1.bf16.msra.mxu1 %v1921_v12  ;;  %v1924_v14 = vld [vmem:[%s2221_s10 + $0x2c4] ss:$16 sps:$4 sm:$0xff]   ;;  %1097 = vmatprep.subr.bf16.mxu0 %v1922_v13  ;;  %v1927_v16 = vld [vmem:[%s2221_s10 + $0x2c0] ss:$16 sps:$4 sm:$0xff]   ;;  %v2023_v12 = vld [vmem:[%s2221_s10 + $0x2ec] ss:$16 sps:$4 sm:$0xff]  }
  0x2f   : > { %1150 = vmatprep.subr.bf16.mxu1 %v1924_v14  ;;  %v1928_v17 = vld [vmem:[%s2221_s10 + $0xa4] ss:$16 sps:$4 sm:$0xff]   ;;  %v1932_v19 = vld [vmem:[%s2221_s10 + $0xa0] ss:$16 sps:$4 sm:$0xff]   ;;  %v2304_v14 = vld [vmem:[%s2223_s11 + $0x8] ss:$16 sps:$4 sm:$0xff]  }
  0x30   : > { %v1930_v18 = vld [vmem:[%s2221_s10 + $0x2a4] ss:$16 sps:$4 sm:$0xff]   ;;  %v1933_v20 = vld [vmem:[%s2221_s10 + $0x2a0] ss:$16 sps:$4 sm:$0xff]  }
  0x31   : > { %1098 = vmatpush1.bf16.msra.mxu0 %v1926_v15  ;;  %v1934_v21 = vld [vmem:[%s2221_s10 + $0x84] ss:$16 sps:$4 sm:$0xff]   ;;  %v1938_v23 = vld [vmem:[%s2221_s10 + $0x80] ss:$16 sps:$4 sm:$0xff]   ;;  %v2018_v15 = vld [vmem:[%s2221_s10 + $0xe8] ss:$16 sps:$4 sm:$0xff]  }
  0x32   : > { %1151 = vmatpush1.bf16.msra.mxu1 %v1927_v16  ;;  %1099 = vmatprep.subr.bf16.mxu0 %v1928_v17  ;;  %v1936_v22 = vld [vmem:[%s2221_s10 + $0x284] ss:$16 sps:$4 sm:$0xff]   ;;  %v1939_v24 = vld [vmem:[%s2221_s10 + $0x280] ss:$16 sps:$4 sm:$0xff]   ;;  %v2021_v16 = vld [vmem:[%s2221_s10 + $0x2e8] ss:$16 sps:$4 sm:$0xff]  }
  0x33   : > { %1152 = vmatprep.subr.bf16.mxu1 %v1930_v18  ;;  %v1940_v25 = vld [vmem:[%s2221_s10 + $0x64] ss:$16 sps:$4 sm:$0xff]   ;;  %v1944_v27 = vld [vmem:[%s2221_s10 + $0x60] ss:$16 sps:$4 sm:$0xff]   ;;  %v2026_v17 = vld [vmem:[%s2221_s10 + $0xcc] ss:$16 sps:$4 sm:$0xff]  }
  0x34   : > { %v1942_v26 = vld [vmem:[%s2221_s10 + $0x264] ss:$16 sps:$4 sm:$0xff]   ;;  %v1945_v28 = vld [vmem:[%s2221_s10 + $0x260] ss:$16 sps:$4 sm:$0xff]   ;;  %v2029_v18 = vld [vmem:[%s2221_s10 + $0x2cc] ss:$16 sps:$4 sm:$0xff]  }
  0x35   : > { %1100 = vmatpush1.bf16.msra.mxu0 %v1932_v19  ;;  %v1946_v29 = vld [vmem:[%s2221_s10 + $0x44] ss:$16 sps:$4 sm:$0xff]   ;;  %v1950_v31 = vld [vmem:[%s2221_s10 + $0x40] ss:$16 sps:$4 sm:$0xff]   ;;  %v2024_v19 = vld [vmem:[%s2221_s10 + $0xc8] ss:$16 sps:$4 sm:$0xff]  }
  0x36   : > { %1153 = vmatpush1.bf16.msra.mxu1 %v1933_v20  ;;  %1101 = vmatprep.subr.bf16.mxu0 %v1934_v21  ;;  %v1948_v30 = vld [vmem:[%s2221_s10 + $0x244] ss:$16 sps:$4 sm:$0xff]   ;;  %v1951_v32 = vld [vmem:[%s2221_s10 + $0x240] ss:$16 sps:$4 sm:$0xff]   ;;  %v2027_v20 = vld [vmem:[%s2221_s10 + $0x2c8] ss:$16 sps:$4 sm:$0xff]  }
  0x37   : > { %1154 = vmatprep.subr.bf16.mxu1 %v1936_v22  ;;  %v1952_v33 = vld [vmem:[%s2221_s10 + $0x24] ss:$16 sps:$4 sm:$0xff]   ;;  %v1956_v35 = vld [vmem:[%s2221_s10 + $0x20] ss:$16 sps:$4 sm:$0xff]   ;;  %v2032_v21 = vld [vmem:[%s2221_s10 + $0xac] ss:$16 sps:$4 sm:$0xff]  }
  0x38   : > { %v1954_v34 = vld [vmem:[%s2221_s10 + $0x224] ss:$16 sps:$4 sm:$0xff]   ;;  %v1957_v36 = vld [vmem:[%s2221_s10 + $0x220] ss:$16 sps:$4 sm:$0xff]   ;;  %v2035_v22 = vld [vmem:[%s2221_s10 + $0x2ac] ss:$16 sps:$4 sm:$0xff]  }
  0x39   : > { %1102 = vmatpush1.bf16.msra.mxu0 %v1938_v23  ;;  %v1958_v37 = vld [vmem:[%s2221_s10 + $0x4] ss:$16 sps:$4 sm:$0xff]   ;;  %v1962_v39 = vld [vmem:[%s2221_s10] ss:$16 sps:$4 sm:$0xff]   ;;  %v2030_v23 = vld [vmem:[%s2221_s10 + $0xa8] ss:$16 sps:$4 sm:$0xff]  }
  0x3a   : > { %1155 = vmatpush1.bf16.msra.mxu1 %v1939_v24  ;;  %1103 = vmatprep.subr.bf16.mxu0 %v1940_v25  ;;  %v1960_v38 = vld [vmem:[%s2221_s10 + $0x204] ss:$16 sps:$4 sm:$0xff]   ;;  %v1963_v40 = vld [vmem:[%s2221_s10 + $0x200] ss:$16 sps:$4 sm:$0xff]   ;;  %v2033_v24 = vld [vmem:[%s2221_s10 + $0x2a8] ss:$16 sps:$4 sm:$0xff]  }
  0x3b   : > { %1156 = vmatprep.subr.bf16.mxu1 %v1942_v26  ;;  %v1964_v41 = vld [vmem:[%s2221_s10 + $0x1e4] ss:$16 sps:$4 sm:$0xff]   ;;  %v1968_v43 = vld [vmem:[%s2221_s10 + $0x1e0] ss:$16 sps:$4 sm:$0xff]   ;;  %v2038_v25 = vld [vmem:[%s2221_s10 + $0x8c] ss:$16 sps:$4 sm:$0xff]  }
  0x3c   : > { %v1966_v42 = vld [vmem:[%s2221_s10 + $0x3e4] ss:$16 sps:$4 sm:$0xff]   ;;  %v1969_v44 = vld [vmem:[%s2221_s10 + $0x3e0] ss:$16 sps:$4 sm:$0xff]   ;;  %v2041_v26 = vld [vmem:[%s2221_s10 + $0x28c] ss:$16 sps:$4 sm:$0xff]  }
  0x3d   : > { %1104 = vmatpush1.bf16.msra.mxu0 %v1944_v27  ;;  %v1970_v45 = vld [vmem:[%s2221_s10 + $0x1c4] ss:$16 sps:$4 sm:$0xff]   ;;  %v1974_v47 = vld [vmem:[%s2221_s10 + $0x1c0] ss:$16 sps:$4 sm:$0xff]   ;;  %v2036_v27 = vld [vmem:[%s2221_s10 + $0x88] ss:$16 sps:$4 sm:$0xff]  }
  0x3e   : > { %1157 = vmatpush1.bf16.msra.mxu1 %v1945_v28  ;;  %1105 = vmatprep.subr.bf16.mxu0 %v1946_v29  ;;  %v1972_v46 = vld [vmem:[%s2221_s10 + $0x3c4] ss:$16 sps:$4 sm:$0xff]   ;;  %v1975_v48 = vld [vmem:[%s2221_s10 + $0x3c0] ss:$16 sps:$4 sm:$0xff]   ;;  %v2039_v28 = vld [vmem:[%s2221_s10 + $0x288] ss:$16 sps:$4 sm:$0xff]  }
  0x3f   : > { %1158 = vmatprep.subr.bf16.mxu1 %v1948_v30  ;;  %v1976_v49 = vld [vmem:[%s2221_s10 + $0x1a4] ss:$16 sps:$4 sm:$0xff]   ;;  %v1980_v51 = vld [vmem:[%s2221_s10 + $0x1a0] ss:$16 sps:$4 sm:$0xff]   ;;  %v2044_v29 = vld [vmem:[%s2221_s10 + $0x6c] ss:$16 sps:$4 sm:$0xff]  }
  0x40   : > { %v1978_v50 = vld [vmem:[%s2221_s10 + $0x3a4] ss:$16 sps:$4 sm:$0xff]   ;;  %v1981_v52 = vld [vmem:[%s2221_s10 + $0x3a0] ss:$16 sps:$4 sm:$0xff]   ;;  %v2047_v30 = vld [vmem:[%s2221_s10 + $0x26c] ss:$16 sps:$4 sm:$0xff]  }
  0x41   : > { %1106 = vmatpush1.bf16.msra.mxu0 %v1950_v31  ;;  %v1982_v53 = vld [vmem:[%s2221_s10 + $0x184] ss:$16 sps:$4 sm:$0xff]   ;;  %v1986_v55 = vld [vmem:[%s2221_s10 + $0x180] ss:$16 sps:$4 sm:$0xff]   ;;  %v2042_v31 = vld [vmem:[%s2221_s10 + $0x68] ss:$16 sps:$4 sm:$0xff]  }
  0x42   : > { %1159 = vmatpush1.bf16.msra.mxu1 %v1951_v32  ;;  %1107 = vmatprep.subr.bf16.mxu0 %v1952_v33  ;;  %v1984_v54 = vld [vmem:[%s2221_s10 + $0x384] ss:$16 sps:$4 sm:$0xff]   ;;  %v1987_v56 = vld [vmem:[%s2221_s10 + $0x380] ss:$16 sps:$4 sm:$0xff]   ;;  %v2045_v32 = vld [vmem:[%s2221_s10 + $0x268] ss:$16 sps:$4 sm:$0xff]  }
  0x43   : > { %1160 = vmatprep.subr.bf16.mxu1 %v1954_v34  ;;  %v1988_v57 = vld [vmem:[%s2221_s10 + $0x164] ss:$16 sps:$4 sm:$0xff]   ;;  %v1992_v61 = vld [vmem:[%s2221_s10 + $0x160] ss:$16 sps:$4 sm:$0xff]   ;;  %v2050_v33 = vld [vmem:[%s2221_s10 + $0x4c] ss:$16 sps:$4 sm:$0xff]  }
  0x44   : > { %v2276_v58 = vld [vmem:[%s2223_s11 + $0x4] ss:$16 sps:$4 sm:$0xff]   ;;  %v1993_v62 = vld [vmem:[%s2221_s10 + $0x360] ss:$16 sps:$4 sm:$0xff]   ;;  %v2053_v34 = vld [vmem:[%s2221_s10 + $0x24c] ss:$16 sps:$4 sm:$0xff]  }
  0x45   : > { %1108 = vmatpush1.bf16.msra.mxu0 %v1956_v35  ;;  %v1990_v59 = vld [vmem:[%s2221_s10 + $0x364] ss:$16 sps:$4 sm:$0xff]   ;;  %1127 = vmatprep.mubr.bf16.mxu0 %v2276_v58  ;;  %v1998_v1 = vld [vmem:[%s2221_s10 + $0x140] ss:$16 sps:$4 sm:$0xff]  }
  0x46   : > { %1161 = vmatpush1.bf16.msra.mxu1 %v1957_v36  ;;  %1109 = vmatprep.subr.bf16.mxu0 %v1958_v37  ;;  %v1994_v63 = vld [vmem:[%s2221_s10 + $0x144] ss:$16 sps:$4 sm:$0xff]   ;;  %v1999_v2 = vld [vmem:[%s2221_s10 + $0x340] ss:$16 sps:$4 sm:$0xff]   ;;  %v2332_v36 = vld [vmem:[%s2223_s11 + $0x2c] ss:$16 sps:$4 sm:$0xff]  }
  0x47   : > { %1162 = vmatprep.subr.bf16.mxu1 %v1960_v38  ;;  %v1996_v0 = vld [vmem:[%s2221_s10 + $0x344] ss:$16 sps:$4 sm:$0xff]   ;;  %v2004_v5 = vld [vmem:[%s2221_s10 + $0x120] ss:$16 sps:$4 sm:$0xff]   ;;  %v2339_v38 = vld [vmem:[%s2223_s11 + $0x28] ss:$16 sps:$4 sm:$0xff]  }
  0x48   : > { %v2000_v3 = vld [vmem:[%s2221_s10 + $0x124] ss:$16 sps:$4 sm:$0xff]   ;;  %v2005_v6 = vld [vmem:[%s2221_s10 + $0x320] ss:$16 sps:$4 sm:$0xff]  }
  0x49   : > { %1110 = vmatpush1.bf16.msra.mxu0 %v1962_v39  ;;  %v2002_v4 = vld [vmem:[%s2221_s10 + $0x324] ss:$16 sps:$4 sm:$0xff]   ;;  %v2010_v9 = vld [vmem:[%s2221_s10 + $0x100] ss:$16 sps:$4 sm:$0xff]   ;;  %v2048_v39 = vld [vmem:[%s2221_s10 + $0x48] ss:$16 sps:$4 sm:$0xff]  }
  0x4a   : > { %1163 = vmatpush1.bf16.msra.mxu1 %v1963_v40  ;;  %1111 = vmatprep.subr.bf16.mxu0 %v1964_v41  ;;  %v2006_v7 = vld [vmem:[%s2221_s10 + $0x104] ss:$16 sps:$4 sm:$0xff]   ;;  %v2011_v10 = vld [vmem:[%s2221_s10 + $0x300] ss:$16 sps:$4 sm:$0xff]   ;;  %v2051_v40 = vld [vmem:[%s2221_s10 + $0x248] ss:$16 sps:$4 sm:$0xff]  }
  0x4b   : > { %1164 = vmatprep.subr.bf16.mxu1 %v1966_v42  ;;  %v2008_v8 = vld [vmem:[%s2221_s10 + $0x304] ss:$16 sps:$4 sm:$0xff]   ;;  %v2301_v13 = vld [vmem:[%s2223_s11] ss:$16 sps:$4 sm:$0xff]   ;;  %v2056_v41 = vld [vmem:[%s2221_s10 + $0x2c] ss:$16 sps:$4 sm:$0xff]  }
  0x4c   : > { %v2329_v35 = vld [vmem:[%s2223_s11 + $0x24] ss:$16 sps:$4 sm:$0xff]   ;;  %v2336_v37 = vld [vmem:[%s2223_s11 + $0x20] ss:$16 sps:$4 sm:$0xff]   ;;  %v2059_v42 = vld [vmem:[%s2221_s10 + $0x22c] ss:$16 sps:$4 sm:$0xff]  }
  0x4d   : > { %1112 = vmatpush2.bf16.msra.mxu0 %v1968_v43  ;;  %v2054_v43 = vld [vmem:[%s2221_s10 + $0x28] ss:$16 sps:$4 sm:$0xff]  }
  0x4e   : > { %1165 = vmatpush2.bf16.msra.mxu1 %v1969_v44  ;;  %1113 = vmatprep.subr.bf16.mxu0 %v1970_v45  ;;  %v2057_v44 = vld [vmem:[%s2221_s10 + $0x228] ss:$16 sps:$4 sm:$0xff]   ;;  %v2062_v45 = vld [vmem:[%s2221_s10 + $0xc] ss:$16 sps:$4 sm:$0xff]  }
  0x4f   : > { %1166 = vmatprep.subr.bf16.mxu1 %v1972_v46  ;;  %v2065_v46 = vld [vmem:[%s2221_s10 + $0x20c] ss:$16 sps:$4 sm:$0xff]  }
  0x51   : > { %1114 = vmatpush2.bf16.msra.mxu0 %v1974_v47  ;;  %v2060_v47 = vld [vmem:[%s2221_s10 + $0x8] ss:$16 sps:$4 sm:$0xff]  }
  0x52   : > { %1167 = vmatpush2.bf16.msra.mxu1 %v1975_v48  ;;  %1115 = vmatprep.subr.bf16.mxu0 %v1976_v49  ;;  %v2063_v48 = vld [vmem:[%s2221_s10 + $0x208] ss:$16 sps:$4 sm:$0xff]   ;;  %v2068_v49 = vld [vmem:[%s2221_s10 + $0x1ec] ss:$16 sps:$4 sm:$0xff]  }
  0x53   : > { %1168 = vmatprep.subr.bf16.mxu1 %v1978_v50  ;;  %v2071_v50 = vld [vmem:[%s2221_s10 + $0x3ec] ss:$16 sps:$4 sm:$0xff]  }
  0x55   : > { %1116 = vmatpush2.bf16.msra.mxu0 %v1980_v51  ;;  %v2066_v51 = vld [vmem:[%s2221_s10 + $0x1e8] ss:$16 sps:$4 sm:$0xff]  }
  0x56   : > { %1169 = vmatpush2.bf16.msra.mxu1 %v1981_v52  ;;  %1117 = vmatprep.subr.bf16.mxu0 %v1982_v53  ;;  %v2069_v52 = vld [vmem:[%s2221_s10 + $0x3e8] ss:$16 sps:$4 sm:$0xff]   ;;  %v2074_v53 = vld [vmem:[%s2221_s10 + $0x1cc] ss:$16 sps:$4 sm:$0xff]  }
  0x57   : > { %1170 = vmatprep.subr.bf16.mxu1 %v1984_v54  ;;  %v2077_v54 = vld [vmem:[%s2221_s10 + $0x3cc] ss:$16 sps:$4 sm:$0xff]  }
  0x59   : > { %1118 = vmatpush2.bf16.msra.mxu0 %v1986_v55  ;;  %v2072_v55 = vld [vmem:[%s2221_s10 + $0x1c8] ss:$16 sps:$4 sm:$0xff]  }
  0x5a   : > { %1171 = vmatpush2.bf16.msra.mxu1 %v1987_v56  ;;  %1119 = vmatprep.subr.bf16.mxu0 %v1988_v57  ;;  %v2075_v56 = vld [vmem:[%s2221_s10 + $0x3c8] ss:$16 sps:$4 sm:$0xff]   ;;  %v2080_v57 = vld [vmem:[%s2221_s10 + $0x1ac] ss:$16 sps:$4 sm:$0xff]  }
  0x5b   : > { %1172 = vmatprep.subr.bf16.mxu1 %v1990_v59  ;;  %v2078_v59 = vld [vmem:[%s2221_s10 + $0x1a8] ss:$16 sps:$4 sm:$0xff]  }
  0x5d   : > { %1120 = vmatpush2.bf16.msra.mxu0 %v1992_v61  ;;  %v2086_v61 = vld [vmem:[%s2221_s10 + $0x18c] ss:$16 sps:$4 sm:$0xff]  }
  0x5e   : > { %1173 = vmatpush2.bf16.msra.mxu1 %v1993_v62  ;;  %1121 = vmatprep.subr.bf16.mxu0 %v1994_v63  ;;  %v2089_v62 = vld [vmem:[%s2221_s10 + $0x38c] ss:$16 sps:$4 sm:$0xff]   ;;  %v2084_v63 = vld [vmem:[%s2221_s10 + $0x188] ss:$16 sps:$4 sm:$0xff]  }
  0x5f   : > { %1174 = vmatprep.subr.bf16.mxu1 %v1996_v0  ;;  %v2087_v0 = vld [vmem:[%s2221_s10 + $0x388] ss:$16 sps:$4 sm:$0xff]  }
  0x61   : > { %1122 = vmatpush2.bf16.msra.mxu0 %v1998_v1  ;;  %v2092_v1 = vld [vmem:[%s2221_s10 + $0x16c] ss:$16 sps:$4 sm:$0xff]  }
  0x62   : > { %1175 = vmatpush2.bf16.msra.mxu1 %v1999_v2  ;;  %1123 = vmatprep.subr.bf16.mxu0 %v2000_v3  ;;  %v2095_v2 = vld [vmem:[%s2221_s10 + $0x36c] ss:$16 sps:$4 sm:$0xff]   ;;  %v2090_v3 = vld [vmem:[%s2221_s10 + $0x168] ss:$16 sps:$4 sm:$0xff]  }
  0x63   : > { %1176 = vmatprep.subr.bf16.mxu1 %v2002_v4  ;;  %v2093_v4 = vld [vmem:[%s2221_s10 + $0x368] ss:$16 sps:$4 sm:$0xff]  }
  0x65   : > { %1124 = vmatpush2.bf16.msra.mxu0 %v2004_v5  ;;  %v2104_v5 = vld [vmem:[%s2221_s10 + $0x14c] ss:$16 sps:$4 sm:$0xff]  }
  0x66   : > { %1177 = vmatpush2.bf16.msra.mxu1 %v2005_v6  ;;  %1125 = vmatprep.subr.bf16.mxu0 %v2006_v7  ;;  %v2107_v6 = vld [vmem:[%s2221_s10 + $0x34c] ss:$16 sps:$4 sm:$0xff]   ;;  %v2102_v7 = vld [vmem:[%s2221_s10 + $0x148] ss:$16 sps:$4 sm:$0xff]  }
  0x67   : > { %1178 = vmatprep.subr.bf16.mxu1 %v2008_v8  ;;  %v2105_v8 = vld [vmem:[%s2221_s10 + $0x348] ss:$16 sps:$4 sm:$0xff]  }
  0x69   : > { %1126 = vmatpush2.bf16.msra.mxu0 %v2010_v9  ;;  %v2110_v9 = vld [vmem:[%s2221_s10 + $0x12c] ss:$16 sps:$4 sm:$0xff]  }
  0x6a   : > { %1179 = vmatpush2.bf16.msra.mxu1 %v2011_v10  ;;  %1201 = vmatprep.subr.bf16.mxu0 %v2020_v11  ;;  %v2113_v10 = vld [vmem:[%s2221_s10 + $0x32c] ss:$16 sps:$4 sm:$0xff]   ;;  %v2108_v11 = vld [vmem:[%s2221_s10 + $0x128] ss:$16 sps:$4 sm:$0xff]  }
  0x6b   : > { %1254 = vmatprep.subr.bf16.mxu1 %v2023_v12  ;;  %v2111_v12 = vld [vmem:[%s2221_s10 + $0x328] ss:$16 sps:$4 sm:$0xff]  }
  0x6c   : > { %1128 = vmatmul.mubr.bf16.vlgmr.msra.gmra.mxu0 %v2301_v13 }
  0x6d   : > { %1181 = vmatmul.mubr.bf16.vlgmr.msra.gmra.mxu1 %v2304_v14  ;;  %1202 = vmatpush1.bf16.msra.mxu0 %v2018_v15  ;;  %v2116_v15 = vld [vmem:[%s2221_s10 + $0x10c] ss:$16 sps:$4 sm:$0xff]  }
  0x6e   : > { %1255 = vmatpush1.bf16.msra.mxu1 %v2021_v16  ;;  %1203 = vmatprep.subr.bf16.mxu0 %v2026_v17  ;;  %v2119_v16 = vld [vmem:[%s2221_s10 + $0x30c] ss:$16 sps:$4 sm:$0xff]   ;;  %v2114_v17 = vld [vmem:[%s2221_s10 + $0x108] ss:$16 sps:$4 sm:$0xff]  }
  0x6f   : > { %1256 = vmatprep.subr.bf16.mxu1 %v2029_v18  ;;  %1137 = vmatprep.mubr.bf16.mxu0 %v2329_v35  ;;  %v2117_v18 = vld [vmem:[%s2221_s10 + $0x308] ss:$16 sps:$4 sm:$0xff]  }
  0x70   : > { %1190 = vmatprep.mubr.bf16.mxu1 %v2332_v36 }
  0x71   : > { %1204 = vmatpush1.bf16.msra.mxu0 %v2024_v19 }
  0x72   : > { %1257 = vmatpush1.bf16.msra.mxu1 %v2027_v20  ;;  %1205 = vmatprep.subr.bf16.mxu0 %v2032_v21  ;;  %v263_v20 = vld [vmem:[#allocation2 + $0x30] sm:$0xff] }
  0x73   : > { %1258 = vmatprep.subr.bf16.mxu1 %v2035_v22 }
  0x74   : > { %1138 = vmatmul.mubr.bf16.gmra.mxu0 %v2336_v37 }
  0x75   : > { %1206 = vmatpush1.bf16.msra.mxu0 %v2030_v23  ;;  %1191 = vmatmul.mubr.bf16.gmra.mxu1 %v2339_v38 }
  0x76   : > { %1259 = vmatpush1.bf16.msra.mxu1 %v2033_v24  ;;  %1207 = vmatprep.subr.bf16.mxu0 %v2038_v25  ;;  %v264_v24 = vld [vmem:[#allocation2] sm:$0xff] }
  0x77   : > { %1260 = vmatprep.subr.bf16.mxu1 %v2041_v26  ;;  %1233 = vmatprep.mubr.bf16.mxu0 %v2276_v58  ;;  %v2083_v58 = vld [vmem:[%s2221_s10 + $0x3ac] ss:$16 sps:$4 sm:$0xff]  }
  0x78   : > { %1286 = vmatprep.mubr.bf16.mxu1 %v2280_v60  ;;  %v2081_v60 = vld [vmem:[%s2221_s10 + $0x3a8] ss:$16 sps:$4 sm:$0xff]  }
  0x79   : > { %1208 = vmatpush1.bf16.msra.mxu0 %v2036_v27 }
  0x7a   : > { %1261 = vmatpush1.bf16.msra.mxu1 %v2039_v28  ;;  %1209 = vmatprep.subr.bf16.mxu0 %v2044_v29  ;;  %v267_v28 = vld [vmem:[#allocation2 + $0x50] sm:$0xff] }
  0x7b   : > { %1262 = vmatprep.subr.bf16.mxu1 %v2047_v30 }
  0x7d   : > { %1210 = vmatpush1.bf16.msra.mxu0 %v2042_v31 }
  0x7e   : > { %1263 = vmatpush1.bf16.msra.mxu1 %v2045_v32  ;;  %1211 = vmatprep.subr.bf16.mxu0 %v2050_v33  ;;  %v268_v32 = vld [vmem:[#allocation2 + $0x68] sm:$0xff] }
  0x7f   : > { %1264 = vmatprep.subr.bf16.mxu1 %v2053_v34 }
  0x81   : > { %1212 = vmatpush1.bf16.msra.mxu0 %v2048_v39 }
  0x82   : > { %1265 = vmatpush1.bf16.msra.mxu1 %v2051_v40  ;;  %1213 = vmatprep.subr.bf16.mxu0 %v2056_v41 }
  0x83   : > { %1266 = vmatprep.subr.bf16.mxu1 %v2059_v42  ;;  %v272_v42 = vld [vmem:[#allocation2 + $0x20] sm:$0xff] }
  0x85   : > { %1214 = vmatpush1.bf16.msra.mxu0 %v2054_v43 }
  0x86   : > { %1267 = vmatpush1.bf16.msra.mxu1 %v2057_v44  ;;  %1215 = vmatprep.subr.bf16.mxu0 %v2062_v45 }
  0x87   : > { %1268 = vmatprep.subr.bf16.mxu1 %v2065_v46 }
  0x89   : > { %1216 = vmatpush1.bf16.msra.mxu0 %v2060_v47  ;;  %v275_v47 = vld [vmem:[#allocation2 + $0x60] sm:$0xff] }
  0x8a   : > { %1269 = vmatpush1.bf16.msra.mxu1 %v2063_v48  ;;  %1217 = vmatprep.subr.bf16.mxu0 %v2068_v49 }
  0x8b   : > { %1270 = vmatprep.subr.bf16.mxu1 %v2071_v50 }
  0x8d   : > { %1218 = vmatpush2.bf16.msra.mxu0 %v2066_v51 }
  0x8e   : > { %1271 = vmatpush2.bf16.msra.mxu1 %v2069_v52  ;;  %1219 = vmatprep.subr.bf16.mxu0 %v2074_v53  ;;  %v276_v52 = vld [vmem:[#allocation2 + $0x70] sm:$0xff] }
  0x8f   : > { %1272 = vmatprep.subr.bf16.mxu1 %v2077_v54 }
  0x91   : > { %1220 = vmatpush2.bf16.msra.mxu0 %v2072_v55 }
  0x92   : > { %1273 = vmatpush2.bf16.msra.mxu1 %v2075_v56  ;;  %1221 = vmatprep.subr.bf16.mxu0 %v2080_v57 }
  0x93   : > { %1274 = vmatprep.subr.bf16.mxu1 %v2083_v58  ;;  %v265_v58 = vld [vmem:[#allocation2 + $0x58] sm:$0xff] }
  0x95   : > { %1222 = vmatpush2.bf16.msra.mxu0 %v2078_v59 }
  0x96   : > { %1275 = vmatpush2.bf16.msra.mxu1 %v2081_v60  ;;  %1223 = vmatprep.subr.bf16.mxu0 %v2086_v61 }
  0x97   : > { %1276 = vmatprep.subr.bf16.mxu1 %v2089_v62  ;;  %v266_v62 = vld [vmem:[#allocation2 + $0x18] sm:$0xff] }
  0x99   : > { %1224 = vmatpush2.bf16.msra.mxu0 %v2084_v63 }
  0x9a   : > { %1277 = vmatpush2.bf16.msra.mxu1 %v2087_v0  ;;  %1225 = vmatprep.subr.bf16.mxu0 %v2092_v1 }
  0x9b   : > { %1278 = vmatprep.subr.bf16.mxu1 %v2095_v2 }
  0x9d   : > { %1226 = vmatpush2.bf16.msra.mxu0 %v2090_v3  ;;  %v269_v3 = vld [vmem:[#allocation2 + $0x8] sm:$0xff] }
  0x9e   : > { %1279 = vmatpush2.bf16.msra.mxu1 %v2093_v4  ;;  %1227 = vmatprep.subr.bf16.mxu0 %v2104_v5 }
  0x9f   : > { %1280 = vmatprep.subr.bf16.mxu1 %v2107_v6 }
  0xa1   : > { %1228 = vmatpush2.bf16.msra.mxu0 %v2102_v7 }
  0xa2   : > { %1281 = vmatpush2.bf16.msra.mxu1 %v2105_v8  ;;  %1229 = vmatprep.subr.bf16.mxu0 %v2110_v9  ;;  %v270_v8 = vld [vmem:[#allocation2 + $0x48] sm:$0xff] }
  0xa3   : > { %1282 = vmatprep.subr.bf16.mxu1 %v2113_v10 }
  0xa5   : > { %1230 = vmatpush2.bf16.msra.mxu0 %v2108_v11 }
  0xa6   : > { %1283 = vmatpush2.bf16.msra.mxu1 %v2111_v12  ;;  %1231 = vmatprep.subr.bf16.mxu0 %v2116_v15  ;;  %v273_v15 = vld [vmem:[#allocation2 + $0x10] sm:$0xff] }
  0xa7   : > { %1284 = vmatprep.subr.bf16.mxu1 %v2119_v16 }
  0xa9   : > { %1232 = vmatpush2.bf16.msra.mxu0 %v2114_v17 }
  0xaa   : > { %1285 = vmatpush2.bf16.msra.mxu1 %v2117_v18 }
  0xac   : > { %1234 = vmatmul.mubr.bf16.vlgmr.msra.gmra.mxu0 %v2301_v13 }
  0xad   : > { %1287 = vmatmul.mubr.bf16.vlgmr.msra.gmra.mxu1 %v2304_v14  ;;  %1243 = vmatprep.mubr.bf16.mxu0 %v2329_v35 }
  0xae   : > { %1296 = vmatprep.mubr.bf16.mxu1 %v2332_v36 }
  0xb4   : > { %1244 = vmatmul.mubr.bf16.gmra.mxu0 %v2336_v37 }
  0xb5   : > { %1297 = vmatmul.mubr.bf16.gmra.mxu1 %v2339_v38  ;;  %v271_v38 = vld [vmem:[#allocation2 + $0x40] sm:$0xff] }
 0x12c   : > { %v1129_v19 = vpop.f32.mrf.mxu0 }
 0x12d   : > { %v1182_v21 = vpop.f32.mrf.mxu1 }
 0x12e   : > { %v1183_v22 = vadd.f32 %v1182_v21, %v1129_v19  ;;  %v1131_v23 = vpop.f32.mrf.mxu0 }
 0x12f   : > { %v1184_v25 = vpop.f32.mrf.mxu1 }
 0x130   : > { %v1307_v26 = vadd.f32 %v1183_v22, %v263_v20  ;;  %v1185_v27 = vadd.f32 %v1184_v25, %v1131_v23  ;;  %v1133_v13 = vpop.f32.mrf.mxu0  ;;  %v274_v20 = vld [vmem:[#allocation2 + $0x38] sm:$0xff] }
 0x131   : > { %v1186_v14 = vpop.f32.mrf.mxu1  ;;  %v277_v25 = vld [vmem:[#allocation2 + $0x78] sm:$0xff] }
 0x132   : > { %1323 = vst [vmem:[#allocation2 + $0x30] sm:$0xff] %v1307_v26  ;;  %v1308_v29 = vadd.f32 %v1185_v27, %v264_v24  ;;  %v1187_v30 = vadd.f32 %v1186_v14, %v1133_v13  ;;  %v1135_v31 = vpop.f32.mrf.mxu0  ;;  %v278_v14 = vld [vmem:[#allocation2 + $0x28] sm:$0xff] }
 0x133   : > { %v1188_v33 = vpop.f32.mrf.mxu1 }
 0x134   : > { %1324 = vst [vmem:[#allocation2] sm:$0xff] %v1308_v29  ;;  %v1311_v34 = vadd.f32 %v1187_v30, %v267_v28  ;;  %v1189_v35 = vadd.f32 %v1188_v33, %v1135_v31  ;;  %v1139_v37 = vpop.f32.mrf.mxu0 }
 0x135   : > { %v1192_v39 = vpop.f32.mrf.mxu1 }
 0x136   : > { %1327 = vst [vmem:[#allocation2 + $0x50] sm:$0xff] %v1311_v34  ;;  %v1312_v36 = vadd.f32 %v1189_v35, %v268_v32  ;;  %v1193_v40 = vadd.f32 %v1192_v39, %v1139_v37  ;;  %v1141_v41 = vpop.f32.mrf.mxu0 }
 0x137   : > { %v1194_v43 = vpop.f32.mrf.mxu1 }
 0x138   : > { %1328 = vst [vmem:[#allocation2 + $0x68] sm:$0xff] %v1312_v36  ;;  %v1315_v44 = vadd.f32 %v1193_v40, %v271_v38  ;;  %v1195_v45 = vadd.f32 %v1194_v43, %v1141_v41  ;;  %v1143_v46 = vpop.f32.mrf.mxu0 }
 0x139   : > { %v1196_v48 = vpop.f32.mrf.mxu1 }
 0x13a   : > { %1331 = vst [vmem:[#allocation2 + $0x40] sm:$0xff] %v1315_v44  ;;  %v1316_v49 = vadd.f32 %v1195_v45, %v272_v42  ;;  %v1197_v50 = vadd.f32 %v1196_v48, %v1143_v46  ;;  %v1145_v51 = vpop.f32.mrf.mxu0 }
 0x13b   : > { %v1198_v53 = vpop.f32.mrf.mxu1 }
 0x13c   : > { %1332 = vst [vmem:[#allocation2 + $0x20] sm:$0xff] %v1316_v49  ;;  %v1319_v54 = vadd.f32 %v1197_v50, %v275_v47  ;;  %v1199_v55 = vadd.f32 %v1198_v53, %v1145_v51 }
 0x13e   : > { %1335 = vst [vmem:[#allocation2 + $0x60] sm:$0xff] %v1319_v54  ;;  %v1320_v56 = vadd.f32 %v1199_v55, %v276_v52 }
 0x140   : > { %1336 = vst [vmem:[#allocation2 + $0x70] sm:$0xff] %v1320_v56 }
 0x16c   : > { %v1235_v57 = vpop.f32.mrf.mxu0 }
 0x16d   : > { %v1288_v59 = vpop.f32.mrf.mxu1 }
 0x16e   : > { %v1289_v60 = vadd.f32 %v1288_v59, %v1235_v57  ;;  %v1237_v61 = vpop.f32.mrf.mxu0 }
 0x16f   : > { %v1290_v63 = vpop.f32.mrf.mxu1 }
 0x170   : > { %v1309_v0 = vadd.f32 %v1289_v60, %v265_v58  ;;  %v1291_v1 = vadd.f32 %v1290_v63, %v1237_v61  ;;  %v1239_v2 = vpop.f32.mrf.mxu0 }
 0x171   : > { %v1292_v4 = vpop.f32.mrf.mxu1 }
 0x172   : > { %1325 = vst [vmem:[#allocation2 + $0x58] sm:$0xff] %v1309_v0  ;;  %v1310_v5 = vadd.f32 %v1291_v1, %v266_v62  ;;  %v1293_v6 = vadd.f32 %v1292_v4, %v1239_v2  ;;  %v1241_v7 = vpop.f32.mrf.mxu0 }
 0x173   : > { %v1294_v9 = vpop.f32.mrf.mxu1 }
 0x174   : > { %1326 = vst [vmem:[#allocation2 + $0x18] sm:$0xff] %v1310_v5  ;;  %v1313_v10 = vadd.f32 %v1293_v6, %v269_v3  ;;  %v1295_v11 = vadd.f32 %v1294_v9, %v1241_v7  ;;  %v1245_v12 = vpop.f32.mrf.mxu0 }
 0x175   : > { %v1298_v16 = vpop.f32.mrf.mxu1 }
 0x176   : > { %1329 = vst [vmem:[#allocation2 + $0x8] sm:$0xff] %v1313_v10  ;;  %v1314_v17 = vadd.f32 %v1295_v11, %v270_v8  ;;  %v1299_v18 = vadd.f32 %v1298_v16, %v1245_v12  ;;  %v1247_v19 = vpop.f32.mrf.mxu0 }
 0x177   : > { %v1300_v21 = vpop.f32.mrf.mxu1 }
 0x178   : > { %1330 = vst [vmem:[#allocation2 + $0x48] sm:$0xff] %v1314_v17  ;;  %v1317_v22 = vadd.f32 %v1299_v18, %v273_v15  ;;  %v1301_v23 = vadd.f32 %v1300_v21, %v1247_v19  ;;  %v1249_v24 = vpop.f32.mrf.mxu0 }
 0x179   : > { %v1302_v26 = vpop.f32.mrf.mxu1 }
 0x17a   : > { %1333 = vst [vmem:[#allocation2 + $0x10] sm:$0xff] %v1317_v22  ;;  %v1318_v27 = vadd.f32 %v1301_v23, %v274_v20  ;;  %v1303_v13 = vadd.f32 %v1302_v26, %v1249_v24  ;;  %v1251_v28 = vpop.f32.mrf.mxu0 }
 0x17b   : > { %v1304_v29 = vpop.f32.mrf.mxu1 }
 0x17c   : > { %1334 = vst [vmem:[#allocation2 + $0x38] sm:$0xff] %v1318_v27  ;;  %v1321_v30 = vadd.f32 %v1303_v13, %v277_v25  ;;  %v1305_v31 = vadd.f32 %v1304_v29, %v1251_v28  ;;  %1342 = sbr.rel (%p1870_p10) target bundleno = 480 (0x1e0), region = 67 }
 0x17e   : > { %1337 = vst [vmem:[#allocation2 + $0x78] sm:$0xff] %v1321_v30  ;;  %v1322_v32 = vadd.f32 %v1305_v31, %v278_v14 }
 0x180   : > { %1338 = vst [vmem:[#allocation2 + $0x28] sm:$0xff] %v1322_v32 }
 0x181   : > { %v1343_v33 = vld [vmem:[#allocation2 + $0x30] sm:$0xff]  ;;  %v1344_v34 = vld [vmem:[#allocation2] sm:$0xff]  ;;  %v1348_v36 = vld [vmem:[#allocation2 + $0x68] sm:$0xff] }
 0x182   : > { %v1347_v35 = vld [vmem:[#allocation2 + $0x50] sm:$0xff]  ;;  %v1351_v37 = vld [vmem:[#allocation2 + $0x40] sm:$0xff]  ;;  %v1368_v41 = vadd.f32 %v1348_v36, %v1344_v34  ;;  %v2395_v44 = vld [vmem:[#allocation2 + $0x58] sm:$0xff] }
 0x183   : > { %v1352_v38 = vld [vmem:[#allocation2 + $0x20] sm:$0xff]  ;;  %v1359_v39 = vadd.f32 %v1347_v35, %v1343_v33  ;;  %v1356_v42 = vld [vmem:[#allocation2 + $0x70] sm:$0xff]  ;;  %v2397_v45 = vld [vmem:[#allocation2 + $0x18] sm:$0xff] }
 0x184   : > { %v1355_v40 = vld [vmem:[#allocation2 + $0x60] sm:$0xff]  ;;  %v1369_v46 = vadd.f32 %v1368_v41, %v1352_v38  ;;  %v2399_v47 = vld [vmem:[#allocation2 + $0x8] sm:$0xff]  ;;  %v2403_v49 = vld [vmem:[#allocation2 + $0x10] sm:$0xff] }
 0x185   : > { %v1360_v43 = vadd.f32 %v1359_v39, %v1351_v37  ;;  %v2401_v48 = vld [vmem:[#allocation2 + $0x48] sm:$0xff]  ;;  %v2405_v51 = vld [vmem:[#allocation2 + $0x38] sm:$0xff]  ;;  %v1377_v52 = vadd.f32 %v2399_v47, %v2395_v44 }
 0x186   : > { %v1386_v53 = vadd.f32 %v2401_v48, %v2397_v45  ;;  %v1370_v54 = vadd.f32 %v1369_v46, %v1356_v42  ;;  %v2411_v55 = vld [vmem:[#allocation2 + $0x78] sm:$0xff] }
 0x187   : > { %v1361_v50 = vadd.f32 %v1360_v43, %v1355_v40  ;;  %v2413_v56 = vld [vmem:[#allocation2 + $0x28] sm:$0xff]  ;;  %v1378_v58 = vadd.f32 %v1377_v52, %v2403_v49 }
 0x188   : > { %v1387_v59 = vadd.f32 %v1386_v53, %v2405_v51  ;;  %v1371_v60 = vrot.slane %v1370_v54, 4 }
 0x189   : > { %v1362_v57 = vrot.slane %v1361_v50, 4  ;;  %v1379_v62 = vadd.f32 %v1378_v58, %v2411_v55 }
 0x18a   : > { %v1388_v63 = vadd.f32 %v1387_v59, %v2413_v56  ;;  %v1372_v0 = vadd.f32 %v1371_v60, %v1370_v54 }
 0x18b   : > { %v1363_v61 = vadd.f32 %v1362_v57, %v1361_v50  ;;  %v1380_v2 = vrot.slane %v1379_v62, 4 }
 0x18c   : > { %v1389_v3 = vrot.slane %v1388_v63, 4  ;;  %v1373_v4 = vrot.slane %v1372_v0, 2 }
 0x18d   : > { %v1364_v1 = vrot.slane %v1363_v61, 2  ;;  %v1381_v6 = vadd.f32 %v1380_v2, %v1379_v62 }
 0x18e   : > { %v1390_v7 = vadd.f32 %v1389_v3, %v1388_v63  ;;  %v1374_v8 = vadd.f32 %v1373_v4, %v1372_v0 }
 0x18f   : > { %v1365_v5 = vadd.f32 %v1364_v1, %v1363_v61  ;;  %v1382_v10 = vrot.slane %v1381_v6, 2 }
 0x190   : > { %v1391_v11 = vrot.slane %v1390_v7, 2  ;;  %v1375_v12 = vrot.slane %v1374_v8, 1 }
 0x191   : > { %v1366_v9 = vrot.slane %v1365_v5, 1  ;;  %v1383_v16 = vadd.f32 %v1382_v10, %v1381_v6 }
 0x192   : > { %v1392_v17 = vadd.f32 %v1391_v11, %v1390_v7  ;;  %v1376_v18 = vadd.f32 %v1375_v12, %v1374_v8 }
 0x193   : > { %v1367_v15 = vadd.f32 %v1366_v9, %v1365_v5  ;;  %v1384_v21 = vrot.slane %v1383_v16, 1 }
 0x194   : > { %v1397_v20 = vmul.f32 0.03125, %v1376_v18  ;;  %v1393_v22 = vrot.slane %v1392_v17, 1 }
 0x195   : > { %v1396_v19 = vmul.f32 0.03125, %v1367_v15 }
 0x196   : > { %v2427_v27 = vsub.f32 %v1344_v34, %v1397_v20  ;;  %v2429_v13 = vsub.f32 %v1348_v36, %v1397_v20  ;;  %v2431_v28 = vsub.f32 %v1352_v38, %v1397_v20  ;;  %v2433_v14 = vsub.f32 %v1356_v42, %v1397_v20 }
 0x197   : > { %v2419_v23 = vsub.f32 %v1343_v33, %v1396_v19  ;;  %v2421_v24 = vsub.f32 %v1347_v35, %v1396_v19  ;;  %v2423_v25 = vsub.f32 %v1351_v37, %v1396_v19  ;;  %v2425_v26 = vsub.f32 %v1355_v40, %v1396_v19 }
 0x198   : > { %v1417_v32 = vmul.f32 %v2427_v27, %v2427_v27  ;;  %v1421_v33 = vmul.f32 %v2429_v13, %v2429_v13  ;;  %v1425_v34 = vmul.f32 %v2431_v28, %v2431_v28  ;;  %v1385_v37 = vadd.f32 %v1384_v21, %v1383_v16 }
 0x199   : > { %v1416_v29 = vmul.f32 %v2419_v23, %v2419_v23  ;;  %v1420_v30 = vmul.f32 %v2421_v24, %v2421_v24  ;;  %v1424_v31 = vmul.f32 %v2423_v25, %v2423_v25  ;;  %v1428_v35 = vmul.f32 %v2425_v26, %v2425_v26 }
 0x19a   : > { %v1394_v38 = vadd.f32 %v1393_v22, %v1392_v17  ;;  %v1429_v39 = vmul.f32 %v2433_v14, %v2433_v14  ;;  %v1441_v40 = vadd.f32 %v1421_v33, %v1417_v32  ;;  %v1398_v42 = vmul.f32 0.03125, %v1385_v37 }
 0x19b   : > { %v1432_v36 = vadd.f32 %v1420_v30, %v1416_v29  ;;  %v1498_v37 = vlaneseq }
 0x19c   : > { %v1399_v43 = vmul.f32 0.03125, %v1394_v38  ;;  %v1442_v46 = vadd.f32 %v1441_v40, %v1425_v34  ;;  %v2452_v52 = vsub.f32 %v2395_v44, %v1398_v42  ;;  %v2458_v54 = vsub.f32 %v2399_v47, %v1398_v42 }
 0x19d   : > { %v1433_v41 = vadd.f32 %v1432_v36, %v1424_v31  ;;  %v2464_v59 = vsub.f32 %v2403_v49, %v1398_v42  ;;  %v2470_v44 = vsub.f32 %v2411_v55, %v1398_v42  ;;  %v1499_v42 = vshrl.u32 %v1498_v37, 7 }
 0x19e   : > { %v2455_v53 = vsub.f32 %v2397_v45, %v1399_v43  ;;  %v1443_v57 = vadd.f32 %v1442_v46, %v1429_v39  ;;  %v2461_v58 = vsub.f32 %v2401_v48, %v1399_v43  ;;  %v2467_v60 = vsub.f32 %v2405_v51, %v1399_v43 }
 0x19f   : > { %v1434_v50 = vadd.f32 %v1433_v41, %v1428_v35  ;;  %v2473_v45 = vsub.f32 %v2413_v56, %v1399_v43  ;;  %v1418_v47 = vmul.f32 %v2452_v52, %v2452_v52  ;;  %v1422_v49 = vmul.f32 %v2458_v54, %v2458_v54 }
 0x1a0   : > { %v1444_v62 = vrot.slane %v1443_v57, 4  ;;  %v1419_v48 = vmul.f32 %v2455_v53, %v2455_v53  ;;  %v1423_v51 = vmul.f32 %v2461_v58, %v2461_v58  ;;  %v1426_v55 = vmul.f32 %v2464_v59, %v2464_v59 }
 0x1a1   : > { %v1435_v61 = vrot.slane %v1434_v50, 4  ;;  %v1427_v56 = vmul.f32 %v2467_v60, %v2467_v60  ;;  %v1430_v0 = vmul.f32 %v2470_v44, %v2470_v44  ;;  %v1431_v2 = vmul.f32 %v2473_v45, %v2473_v45 }
 0x1a2   : > { %v1445_v1 = vadd.f32 %v1444_v62, %v1443_v57  ;;  %v1450_v3 = vadd.f32 %v1422_v49, %v1418_v47  ;;  %v1459_v4 = vadd.f32 %v1423_v51, %v1419_v48  ;;  %v1504_v47 = vsub.s32 1, %v1499_v42  ;;  %v1496_v62 = vld [vmem:[%s2589_s2] sm:$0xf] }
 0x1a3   : > { %v1436_v63 = vadd.f32 %v1435_v61, %v1434_v50  ;;  %v1500_v61 = vsub.s32 0, %v1499_v42  ;;  %v1534_v48 = vld [vmem:[%s2590_s3] sm:$0xf]  ;;  %v1508_v49 = vsub.s32 2, %v1499_v42  ;;  %v1512_v51 = vsub.s32 3, %v1499_v42 }
 0x1a4   : > { %v1446_v6 = vrot.slane %v1445_v1, 2  ;;  %v1451_v7 = vadd.f32 %v1450_v3, %v1426_v55  ;;  %v1460_v8 = vadd.f32 %v1459_v4, %v1427_v56  ;;  %v1505_v55 = vrot.slane %v1496_v62, %v1504_v47 }
 0x1a5   : > { %v1437_v5 = vrot.slane %v1436_v63, 2  ;;  %v1539_v56 = vrot.slane %v1534_v48, %v1500_v61  ;;  %v2499_v3 = vrot.slane %v1496_v62, %v1512_v51  ;;  %v2501_v4 = vrot.slane %v1534_v48, %v1508_v49 }
 0x1a6   : > { %v1447_v10 = vadd.f32 %v1446_v6, %v1445_v1  ;;  %v1452_v11 = vadd.f32 %v1451_v7, %v1430_v0  ;;  %v1461_v12 = vadd.f32 %v1460_v8, %v1431_v2  ;;  %v1543_v0 = vrot.slane %v1534_v48, %v1504_v47 }
 0x1a7   : > { %v1438_v9 = vadd.f32 %v1437_v5, %v1436_v63  ;;  %v1501_v63 = vrot.slane %v1496_v62, %v1500_v61  ;;  %v2497_v2 = vrot.slane %v1496_v62, %v1508_v49  ;;  %v2503_v5 = vrot.slane %v1534_v48, %v1512_v51 }
 0x1a8   : > { %v1448_v16 = vrot.slane %v1447_v10, 1  ;;  %v1453_v17 = vrot.slane %v1452_v11, 4  ;;  %v1462_v18 = vrot.slane %v1461_v12, 4 }
 0x1a9   : > { %v1439_v15 = vrot.slane %v1438_v9, 1 }
 0x1aa   : > { %v1449_v20 = vadd.f32 %v1448_v16, %v1447_v10  ;;  %v1454_v21 = vadd.f32 %v1453_v17, %v1452_v11  ;;  %v1463_v22 = vadd.f32 %v1462_v18, %v1461_v12 }
 0x1ab   : > { %v1440_v19 = vadd.f32 %v1439_v15, %v1438_v9 }
 0x1ac   : > { %v1469_v30 = vmul.f32 0.03125, %v1449_v20  ;;  %v1455_v31 = vrot.slane %v1454_v21, 2  ;;  %v1464_v32 = vrot.slane %v1463_v22, 2 }
 0x1ad   : > { %v1468_v29 = vmul.f32 0.03125, %v1440_v19 }
 0x1ae   : > { %v1473_v34 = vadd.f32 1e-05, %v1469_v30  ;;  %v1456_v35 = vadd.f32 %v1455_v31, %v1454_v21  ;;  %v1465_v36 = vadd.f32 %v1464_v32, %v1463_v22 }
 0x1af   : > { %v1472_v33 = vadd.f32 1e-05, %v1468_v29 }
 0x1b0   : > { %v1457_v38 = vrot.slane %v1456_v35, 1  ;;  %v1466_v39 = vrot.slane %v1465_v36, 1 }
 0x1b1   : > { %2120 = vrsqrt.f32 %v1472_v33 }
 0x1b2   : > { %2122 = vrsqrt.f32 %v1473_v34  ;;  %v1458_v40 = vadd.f32 %v1457_v38, %v1456_v35  ;;  %v1467_v41 = vadd.f32 %v1466_v39, %v1465_v36 }
 0x1b4   : > { %v1470_v43 = vmul.f32 0.03125, %v1458_v40  ;;  %v1471_v46 = vmul.f32 0.03125, %v1467_v41 }
 0x1b6   : > { %v1474_v50 = vadd.f32 1e-05, %v1470_v43  ;;  %v1475_v57 = vadd.f32 1e-05, %v1471_v46 }
 0x1b8   : > { %2124 = vrsqrt.f32 %v1474_v50 }
 0x1b9   : > { %2126 = vrsqrt.f32 %v1475_v57 }
 0x1be   : > { %v2121_v1 = vpop.eup %2120 }
 0x1bf   : > { %v2123_v6 = vpop.eup %2122  ;;  %v1480_v7 = vmul.f32 %v2121_v1, %v2419_v23  ;;  %v1484_v8 = vmul.f32 %v2121_v1, %v2421_v24  ;;  %v1488_v9 = vmul.f32 %v2121_v1, %v2423_v25  ;;  %v1492_v10 = vmul.f32 %v2121_v1, %v2425_v26 }
 0x1c0   : > { %v1481_v11 = vmul.f32 %v2123_v6, %v2427_v27  ;;  %v1485_v12 = vmul.f32 %v2123_v6, %v2429_v13  ;;  %v1489_v15 = vmul.f32 %v2123_v6, %v2431_v28  ;;  %v1493_v16 = vmul.f32 %v2123_v6, %v2433_v14 }
 0x1c1   : > { %v1518_v17 = vmul.f32 %v1501_v63, %v1480_v7  ;;  %v1522_v18 = vmul.f32 %v1501_v63, %v1484_v8  ;;  %v1526_v19 = vmul.f32 %v1501_v63, %v1488_v9  ;;  %v1530_v20 = vmul.f32 %v1501_v63, %v1492_v10 }
 0x1c2   : > { %v1519_v21 = vmul.f32 %v1505_v55, %v1481_v11  ;;  %v1523_v23 = vmul.f32 %v1505_v55, %v1485_v12  ;;  %v1527_v22 = vmul.f32 %v1505_v55, %v1489_v15  ;;  %v1531_v24 = vmul.f32 %v1505_v55, %v1493_v16 }
 0x1c3   : > { %v1556_v29 = vadd.f32 %v1539_v56, %v1518_v17  ;;  %v1560_v25 = vadd.f32 %v1539_v56, %v1522_v18  ;;  %v1564_v30 = vadd.f32 %v1539_v56, %v1526_v19  ;;  %v2513_v26 = vadd.f32 %v1539_v56, %v1530_v20 }
 0x1c4   : > { %v1557_v27 = vadd.f32 %v1543_v0, %v1519_v21  ;;  %v1561_v31 = vadd.f32 %v1543_v0, %v1523_v23  ;;  %v1565_v13 = vadd.f32 %v1543_v0, %v1527_v22  ;;  %v2515_v32 = vadd.f32 %v1543_v0, %v1531_v24 }
 0x1c5   : > { %vm1572_vm0 = vcmp.ge.f32.partialorder %v1556_v29, 0.0  ;;  %v1588_v28 = vmul.f32 0.2, %v1556_v29  ;;  %vm1576_vm1 = vcmp.ge.f32.partialorder %v1560_v25, 0.0  ;;  %v1592_v14 = vmul.f32 0.2, %v1560_v25  ;;  %v2125_v35 = vpop.eup %2124 }
 0x1c6   : > { %vm1573_vm2 = vcmp.ge.f32.partialorder %v1557_v27, 0.0  ;;  %v1589_v33 = vmul.f32 0.2, %v1557_v27  ;;  %vm1577_vm3 = vcmp.ge.f32.partialorder %v1561_v31, 0.0  ;;  %v1593_v34 = vmul.f32 0.2, %v1561_v31  ;;  %v2127_v38 = vpop.eup %2126 }
 0x1c7   : > { %v1604_v36 = vsel %vm1572_vm0, %v1556_v29, %v1588_v28  ;;  %v1608_v37 = vsel %vm1576_vm1, %v1560_v25, %v1592_v14  ;;  %vm1580_vm4 = vcmp.ge.f32.partialorder %v1564_v30, 0.0  ;;  %vm1581_vm5 = vcmp.ge.f32.partialorder %v1565_v13, 0.0 }
 0x1c8   : > { %v1605_v39 = vsel %vm1573_vm2, %v1557_v27, %v1589_v33  ;;  %v1482_v40 = vmul.f32 %v2125_v35, %v2452_v52  ;;  %v1609_v41 = vsel %vm1577_vm3, %v1561_v31, %v1593_v34  ;;  %v1486_v42 = vmul.f32 %v2125_v35, %v2458_v54 }
 0x1c9   : > { %v1883_v43 = vpack.c.bf16 %v1605_v39, %v1604_v36  ;;  %v1483_v46 = vmul.f32 %v2127_v38, %v2455_v53  ;;  %v1885_v50 = vpack.c.bf16 %v1609_v41, %v1608_v37  ;;  %v1487_v57 = vmul.f32 %v2127_v38, %v2461_v58 }
 0x1ca   : > { %v1520_v61 = vmul.f32 %v2497_v2, %v1482_v40  ;;  %v1524_v47 = vmul.f32 %v2497_v2, %v1486_v42  ;;  %v1596_v62 = vmul.f32 0.2, %v1564_v30  ;;  %v1597_v48 = vmul.f32 0.2, %v1565_v13 }
 0x1cb   : > { %1668 = vst [vmem:[%s2591_s4] sm:$0xff] %v1883_v43  ;;  %v1521_v52 = vmul.f32 %v2499_v3, %v1483_v46  ;;  %1670 = vst [vmem:[%s2591_s4 + $0x10] sm:$0xff] %v1885_v50  ;;  %v1525_v53 = vmul.f32 %v2499_v3, %v1487_v57  ;;  %v1490_v54 = vmul.f32 %v2125_v35, %v2464_v59  ;;  %vm1584_vm10 = vcmp.ge.f32.partialorder %v2513_v26, 0.0 }
 0x1cc   : > { %v1491_v58 = vmul.f32 %v2127_v38, %v2467_v60  ;;  %v1558_v49 = vadd.f32 %v2501_v4, %v1520_v61  ;;  %v1562_v51 = vadd.f32 %v2501_v4, %v1524_v47  ;;  %v1612_v63 = vsel %vm1580_vm4, %v1564_v30, %v1596_v62 }
 0x1cd   : > { %v1613_v55 = vsel %vm1581_vm5, %v1565_v13, %v1597_v48  ;;  %v1559_v56 = vadd.f32 %v2503_v5, %v1521_v52  ;;  %v1563_v0 = vadd.f32 %v2503_v5, %v1525_v53  ;;  %v1528_v6 = vmul.f32 %v2497_v2, %v1490_v54 }
 0x1ce   : > { %v1887_v1 = vpack.c.bf16 %v1613_v55, %v1612_v63  ;;  %vm1574_vm6 = vcmp.ge.f32.partialorder %v1558_v49, 0.0  ;;  %v1590_v7 = vmul.f32 0.2, %v1558_v49  ;;  %vm1578_vm7 = vcmp.ge.f32.partialorder %v1562_v51, 0.0 }
 0x1cf   : > { %v1594_v59 = vmul.f32 0.2, %v1562_v51  ;;  %vm1575_vm8 = vcmp.ge.f32.partialorder %v1559_v56, 0.0  ;;  %v1591_v60 = vmul.f32 0.2, %v1559_v56  ;;  %vm1579_vm9 = vcmp.ge.f32.partialorder %v1563_v0, 0.0 }
 0x1d0   : > { %v1595_v8 = vmul.f32 0.2, %v1563_v0  ;;  %1672 = vst [vmem:[%s2591_s4 + $0x20] sm:$0xff] %v1887_v1  ;;  %v1606_v9 = vsel %vm1574_vm6, %v1558_v49, %v1590_v7  ;;  %v1529_v11 = vmul.f32 %v2499_v3, %v1491_v58  ;;  %v1566_v12 = vadd.f32 %v2501_v4, %v1528_v6 }
 0x1d1   : > { %v1610_v10 = vsel %vm1578_vm7, %v1562_v51, %v1594_v59  ;;  %v1607_v15 = vsel %vm1575_vm8, %v1559_v56, %v1591_v60  ;;  %vm1585_vm11 = vcmp.ge.f32.partialorder %v2515_v32, 0.0  ;;  %v1600_v21 = vmul.f32 0.2, %v2513_v26 }
 0x1d2   : > { %v1611_v16 = vsel %vm1579_vm9, %v1563_v0, %v1595_v8  ;;  %v1884_v17 = vpack.c.bf16 %v1607_v15, %v1606_v9  ;;  %v1567_v19 = vadd.f32 %v2503_v5, %v1529_v11  ;;  %vm1582_vm12 = vcmp.ge.f32.partialorder %v1566_v12, 0.0 }
 0x1d3   : > { %v1886_v18 = vpack.c.bf16 %v1611_v16, %v1610_v10  ;;  %v1598_v20 = vmul.f32 0.2, %v1566_v12  ;;  %v1601_v23 = vmul.f32 0.2, %v2515_v32  ;;  %v1494_v22 = vmul.f32 %v2125_v35, %v2470_v44 }
 0x1d4   : > { %1669 = vst [vmem:[%s2591_s4 + $0x8] sm:$0xff] %v1884_v17  ;;  %vm1583_vm13 = vcmp.ge.f32.partialorder %v1567_v19, 0.0  ;;  %v1599_v24 = vmul.f32 0.2, %v1567_v19  ;;  %v1495_v29 = vmul.f32 %v2127_v38, %v2473_v45  ;;  %v1616_v30 = vsel %vm1584_vm10, %v2513_v26, %v1600_v21 }
 0x1d5   : > { %1671 = vst [vmem:[%s2591_s4 + $0x18] sm:$0xff] %v1886_v18  ;;  %v1614_v25 = vsel %vm1582_vm12, %v1566_v12, %v1598_v20  ;;  %v1617_v44 = vsel %vm1585_vm11, %v2515_v32, %v1601_v23  ;;  %v1532_v27 = vmul.f32 %v2497_v2, %v1494_v22 }
 0x1d6   : > { %v1615_v31 = vsel %vm1583_vm13, %v1567_v19, %v1599_v24  ;;  %v1889_v13 = vpack.c.bf16 %v1617_v44, %v1616_v30  ;;  %v1533_v28 = vmul.f32 %v2499_v3, %v1495_v29 }
 0x1d7   : > { %v1888_v14 = vpack.c.bf16 %v1615_v31, %v1614_v25  ;;  %v1570_v33 = vadd.f32 %v2501_v4, %v1532_v27 }
 0x1d8   : > { %1674 = vst [vmem:[%s2591_s4 + $0x30] sm:$0xff] %v1889_v13  ;;  %v1571_v45 = vadd.f32 %v2503_v5, %v1533_v28 }
 0x1d9   : > { %1673 = vst [vmem:[%s2591_s4 + $0x28] sm:$0xff] %v1888_v14  ;;  %vm1586_vm14 = vcmp.ge.f32.partialorder %v1570_v33, 0.0  ;;  %v1602_v26 = vmul.f32 0.2, %v1570_v33 }
 0x1da   : > { %vm1587_vm15 = vcmp.ge.f32.partialorder %v1571_v45, 0.0  ;;  %v1603_v2 = vmul.f32 0.2, %v1571_v45 }
 0x1db   : > { %v1618_v32 = vsel %vm1586_vm14, %v1570_v33, %v1602_v26 }
 0x1dc   : > { %v1619_v34 = vsel %vm1587_vm15, %v1571_v45, %v1603_v2 }
 0x1dd   : > { %v1890_v3 = vpack.c.bf16 %v1619_v34, %v1618_v32 }
 0x1df   : > { %1675 = vst [vmem:[%s2591_s4 + $0x38] sm:$0xff] %v1890_v3 }
 0x1e0 PF: > { %p11_p11 = scmp.ge.s32.totalorder %s2197_s19, 10   ;;  %s2592_s15 = smov %s2146_s16 }
 0x1e1   : > { %s2593_s16 = smov %s2206_s22  ;;  %s2594_s17 = smov %s2197_s19 }
 0x1e2   :  { %13 = sbr.rel (!%p11_p11) target bundleno = 2 (0x2), region = 101 }

// kernel: discriminator_forward.7
= control target key start
LH: loop header
LB: loop body
LE: loop exit
PB: predicated region body
PF: predicated region fallthrough
CT: control target
= control target key end

     0   :  { %v75_v0 = vlaneseq  ;;  %v1518_v10 = vmov 1983009808   ;;  %vm1371_vm0 = vcmask 1041408   ;;  %vm1507_vm1 = vcmask 1024   ;;  %s2499_s1 = inlined_call_operand.vmem [shape: bf16[1,8192], index: 1, kind: input, shape index: {}]   ;;  %s2500_s0 = inlined_call_operand.vmem [shape: bf16[2,8192], index: 0, kind: input, shape index: {}]   ;;  %s2501_s2 = inlined_call_operand.vmem [shape: f32[2,1], index: 2, kind: output, shape index: {}]  }
   0x1   :  { %v39_v1 = vld [vmem:[%s2499_s1 + $0x20] sm:$0xff]  ;;  %v40_v2 = vld [vmem:[%s2499_s1 + $0x28] sm:$0xff]  ;;  %v41_v4 = vld [vmem:[%s2499_s1 + $0x30] sm:$0xff]  ;;  %v1556_v11 = vunpack.c.l.s4 %v1518_v10 }
   0x2   :  { %v1540_v3 = vshrl.u32 %v75_v0, 7  ;;  %v42_v5 = vld [vmem:[%s2499_s1 + $0x38] sm:$0xff]  ;;  %v1548_v6 = vunpack.c.l.bf16 %v39_v1  ;;  %v1550_v7 = vunpack.c.h.bf16 %v39_v1  ;;  %v1552_v8 = vunpack.c.l.bf16 %v40_v2  ;;  %v1637_v48 = vld [vmem:[%s2500_s0] sm:$0xff]  ;;  %v1642_v49 = vld [vmem:[%s2500_s0 + $0x8] sm:$0xff] }
   0x3   :  { %v1554_v9 = vunpack.c.h.bf16 %v40_v2  ;;  %v1570_v16 = vunpack.c.l.bf16 %v41_v4  ;;  %v1572_v17 = vunpack.c.h.bf16 %v41_v4  ;;  %v1574_v18 = vunpack.c.l.bf16 %v42_v5  ;;  %2522 = vst [vmem:[#allocation4_spill] sm:$0xff] %v1637_v48  ;;  %2523 = vst [vmem:[#allocation5_spill] sm:$0xff] %v1642_v49  ;;  %v1655_v54 = vld [vmem:[%s2500_s0 + $0x20] sm:$0xff]  ;;  %v1663_v56 = vld [vmem:[%s2500_s0 + $0x28] sm:$0xff] }
   0x4   :  { %v1559_v12 = vsub.s32 0, %v1540_v3  ;;  %v1562_v13 = vsub.s32 2, %v1540_v3  ;;  %v1565_v14 = vsub.s32 4, %v1540_v3  ;;  %v1568_v15 = vsub.s32 6, %v1540_v3  ;;  %v35_v55 = vld [vmem:[%s2499_s1] sm:$0xff]  ;;  %v1668_v57 = vld [vmem:[%s2500_s0 + $0x30] sm:$0xff] }
   0x5   :  { %v1576_v19 = vunpack.c.h.bf16 %v42_v5  ;;  %2524 = vst [vmem:[#allocation6_spill] sm:$0xff] %v1668_v57  ;;  %v1673_v58 = vld [vmem:[%s2500_s0 + $0x38] sm:$0xff]  ;;  %v36_v0 = vld [vmem:[%s2499_s1 + $0x8] sm:$0xff]  ;;  %v37_v1 = vld [vmem:[%s2499_s1 + $0x10] sm:$0xff]  ;;  %v1686_v2 = vunpack.c.l.bf16 %v35_v55  ;;  %v719_v4 = vunpack.c.0.s8 %v1556_v11  ;;  %v1701_v11 = vunpack.c.h.bf16 %v35_v55 }
   0x6   :  { %2520 = vst [vmem:[#allocation2_spill] sm:$0xff] %v1562_v13  ;;  %2521 = vst [vmem:[#allocation3_spill] sm:$0xff] %v1565_v14  ;;  %v206_v20 = vrot.slane %v1548_v6, %v1559_v12  ;;  %v210_v21 = vrot.slane %v1548_v6, %v1562_v13  ;;  %v214_v22 = vrot.slane %v1548_v6, %v1565_v14  ;;  %v1696_v60 = vld [vmem:[%s2499_s1 + $0x18] sm:$0xff]  ;;  %v1703_v5 = vunpack.c.l.bf16 %v36_v0 }
   0x7   :  { %v218_v23 = vrot.slane %v1548_v6, %v1568_v15  ;;  %v222_v24 = vrot.slane %v1550_v7, %v1559_v12  ;;  %v226_v25 = vrot.slane %v1550_v7, %v1562_v13  ;;  %v230_v26 = vrot.slane %v1550_v7, %v1565_v14  ;;  %2525 = vst [vmem:[#allocation7_spill] sm:$0xff] %v1673_v58 }
   0x8   :  { %v234_v27 = vrot.slane %v1550_v7, %v1568_v15  ;;  %v238_v28 = vrot.slane %v1552_v8, %v1559_v12  ;;  %v242_v29 = vrot.slane %v1552_v8, %v1562_v13  ;;  %v246_v30 = vrot.slane %v1552_v8, %v1565_v14  ;;  %2526 = vst [vmem:[#allocation8_spill] sm:$0xff] %v1696_v60 }
   0x9   :  { %v250_v31 = vrot.slane %v1552_v8, %v1568_v15  ;;  %v254_v32 = vrot.slane %v1554_v9, %v1559_v12  ;;  %v258_v33 = vrot.slane %v1554_v9, %v1562_v13  ;;  %v262_v34 = vrot.slane %v1554_v9, %v1565_v14 }
   0xa   :  { %v266_v35 = vrot.slane %v1554_v9, %v1568_v15  ;;  %v270_v36 = vrot.slane %v1570_v16, %v1559_v12  ;;  %v274_v37 = vrot.slane %v1570_v16, %v1562_v13  ;;  %v278_v38 = vrot.slane %v1570_v16, %v1565_v14 }
   0xb   :  { %v282_v39 = vrot.slane %v1570_v16, %v1568_v15  ;;  %v286_v40 = vrot.slane %v1572_v17, %v1559_v12  ;;  %v290_v41 = vrot.slane %v1572_v17, %v1562_v13  ;;  %v294_v42 = vrot.slane %v1572_v17, %v1565_v14 }
   0xc   :  { %v298_v43 = vrot.slane %v1572_v17, %v1568_v15  ;;  %v302_v44 = vrot.slane %v1574_v18, %v1559_v12  ;;  %v306_v45 = vrot.slane %v1574_v18, %v1562_v13  ;;  %v310_v46 = vrot.slane %v1574_v18, %v1565_v14 }
   0xd   :  { %v314_v47 = vrot.slane %v1574_v18, %v1568_v15  ;;  %v318_v50 = vrot.slane %v1576_v19, %v1559_v12  ;;  %v322_v51 = vrot.slane %v1576_v19, %v1562_v13  ;;  %v1705_v10 = vunpack.c.h.bf16 %v36_v0 }
   0xe   :  { %v1707_v62 = vunpack.c.l.bf16 %v37_v1  ;;  %v1709_v61 = vunpack.c.h.bf16 %v37_v1  ;;  %v1712_v52 = vunpack.c.l.bf16 %v1696_v60  ;;  %v78_v59 = vrot.slane %v1686_v2, %v1559_v12 }
   0xf   :  { %v82_v63 = vrot.slane %v1686_v2, %v1562_v13  ;;  %v1719_v55 = vsub.s32 %v719_v4, %v1540_v3  ;;  %v1725_v0 = vrot.slane %v206_v20, %v1559_v12  ;;  %v1731_v1 = vrot.slane %v210_v21, %v1559_v12 }
  0x10   :  { %2527 = vst [vmem:[#allocation9_spill] sm:$0xff] %v1709_v61  ;;  %2528 = vst [vmem:[#allocation10_spill] sm:$0xff] %v1712_v52  ;;  %v1737_v53 = vrot.slane %v214_v22, %v1559_v12  ;;  %v1743_v3 = vrot.slane %v218_v23, %v1559_v12  ;;  %v1749_v20 = vrot.slane %v222_v24, %v1559_v12 }
  0x11   :  { %2529 = vst [vmem:[#allocation11_spill] sm:$0xff] %v1719_v55  ;;  %v1755_v21 = vrot.slane %v226_v25, %v1559_v12  ;;  %v1761_v22 = vrot.slane %v230_v26, %v1559_v12  ;;  %v1767_v6 = vrot.slane %v234_v27, %v1559_v12  ;;  %v1773_v23 = vrot.slane %v238_v28, %v1559_v12 }
  0x12   :  { %v1779_v24 = vrot.slane %v242_v29, %v1559_v12  ;;  %v1785_v25 = vrot.slane %v246_v30, %v1559_v12  ;;  %v1791_v7 = vrot.slane %v250_v31, %v1559_v12  ;;  %v1797_v26 = vrot.slane %v254_v32, %v1559_v12 }
  0x13   :  { %v1803_v27 = vrot.slane %v258_v33, %v1559_v12  ;;  %v1809_v28 = vrot.slane %v262_v34, %v1559_v12  ;;  %v1815_v8 = vrot.slane %v266_v35, %v1559_v12  ;;  %v1821_v29 = vrot.slane %v270_v36, %v1559_v12 }
  0x14   :  { %v1827_v30 = vrot.slane %v274_v37, %v1559_v12  ;;  %v1833_v31 = vrot.slane %v278_v38, %v1559_v12  ;;  %v1839_v9 = vrot.slane %v282_v39, %v1559_v12  ;;  %v1845_v32 = vrot.slane %v286_v40, %v1559_v12 }
  0x15   :  { %v1851_v33 = vrot.slane %v290_v41, %v1559_v12  ;;  %v1857_v34 = vrot.slane %v294_v42, %v1559_v12  ;;  %v1863_v16 = vrot.slane %v298_v43, %v1559_v12  ;;  %v1869_v35 = vrot.slane %v302_v44, %v1559_v12 }
  0x16   :  { %v1875_v36 = vrot.slane %v306_v45, %v1559_v12  ;;  %v1881_v37 = vrot.slane %v310_v46, %v1559_v12  ;;  %v1887_v17 = vrot.slane %v314_v47, %v1559_v12  ;;  %v1893_v38 = vrot.slane %v318_v50, %v1559_v12 }
  0x17   :  { %v1899_v39 = vrot.slane %v322_v51, %v1559_v12  ;;  %v2530_v40 = vrot.slane %v1576_v19, %v1565_v14  ;;  %v2531_v18 = vrot.slane %v1576_v19, %v1568_v15  ;;  %v86_v43 = vrot.slane %v1686_v2, %v1565_v14 }
  0x18   :  { %v90_v44 = vrot.slane %v1686_v2, %v1568_v15  ;;  %v94_v45 = vrot.slane %v1701_v11, %v1559_v12  ;;  %v98_v46 = vrot.slane %v1701_v11, %v1562_v13  ;;  %v102_v47 = vrot.slane %v1701_v11, %v1565_v14 }
  0x19   :  { %v1905_v41 = vrot.slane %v2530_v40, %v1559_v12  ;;  %v1911_v42 = vrot.slane %v2531_v18, %v1559_v12  ;;  %v106_v19 = vrot.slane %v1701_v11, %v1568_v15  ;;  %v110_v50 = vrot.slane %v1703_v5, %v1559_v12 }
  0x1a   :  { %v114_v51 = vrot.slane %v1703_v5, %v1562_v13  ;;  %v118_v2 = vrot.slane %v1703_v5, %v1565_v14  ;;  %v122_v4 = vrot.slane %v1703_v5, %v1568_v15  ;;  %v126_v40 = vrot.slane %v1705_v10, %v1559_v12 }
  0x1b   :  { %v130_v18 = vrot.slane %v1705_v10, %v1562_v13  ;;  %v134_v11 = vrot.slane %v1705_v10, %v1565_v14  ;;  %v138_v49 = vrot.slane %v1705_v10, %v1568_v15  ;;  %v142_v48 = vrot.slane %v1707_v62, %v1559_v12 }
  0x1c   :  { %v146_v60 = vrot.slane %v1707_v62, %v1562_v13  ;;  %v150_v5 = vrot.slane %v1707_v62, %v1565_v14  ;;  %v154_v52 = vrot.slane %v1707_v62, %v1568_v15  ;;  %v1950_v61 = vrot.slane %v78_v59, %v1559_v12 }
  0x1d   :  { %v1953_v58 = vrot.slane %v82_v63, %v1559_v12  ;;  %v1956_v10 = vrot.slane %v86_v43, %v1559_v12  ;;  %v1959_v57 = vrot.slane %v90_v44, %v1559_v12  ;;  %v1962_v13 = vrot.slane %v94_v45, %v1559_v12 }
  0x1e   :  { %v1965_v14 = vrot.slane %v98_v46, %v1559_v12  ;;  %v1968_v62 = vrot.slane %v102_v47, %v1559_v12  ;;  %v1971_v59 = vrot.slane %v106_v19, %v1559_v12  ;;  %v1974_v63 = vrot.slane %v110_v50, %v1559_v12 }
  0x1f   :  { %v1977_v43 = vrot.slane %v114_v51, %v1559_v12  ;;  %v1980_v44 = vrot.slane %v118_v2, %v1559_v12  ;;  %v1983_v45 = vrot.slane %v122_v4, %v1559_v12  ;;  %v1986_v46 = vrot.slane %v126_v40, %v1559_v12 }
  0x20   :  { %v1989_v47 = vrot.slane %v130_v18, %v1559_v12  ;;  %v1992_v19 = vrot.slane %v134_v11, %v1559_v12  ;;  %v1995_v50 = vrot.slane %v138_v49, %v1559_v12  ;;  %v1998_v51 = vrot.slane %v142_v48, %v1559_v12 }
  0x21   :  { %v851_v2 = vcombine.low %v1725_v0, %v1731_v1  ;;  %v2003_v4 = vrot.slane %v146_v60, %v1559_v12  ;;  %v2006_v40 = vrot.slane %v150_v5, %v1559_v12  ;;  %v2009_v18 = vrot.slane %v154_v52, %v1559_v12 }
  0x22   :  { %v852_v11 = vcombine.low %v1737_v53, %v1743_v3  ;;  %v715_v49 = vcombine.low %v1950_v61, %v1953_v58  ;;  %v868_v0 = vcombine.low %v1749_v20, %v1755_v21  ;;  %v869_v60 = vcombine.low %v1761_v22, %v1767_v6 }
  0x23   :  { %v859_v48 = vrot.slane %v851_v2, %v1719_v55  ;;  %v716_v1 = vcombine.low %v1956_v10, %v1959_v57  ;;  %v885_v5 = vcombine.low %v1773_v23, %v1779_v24  ;;  %v886_v53 = vcombine.low %v1785_v25, %v1791_v7 }
  0x24   :  { %v866_v52 = vrot.slane %v852_v11, %v1719_v55  ;;  %v876_v58 = vrot.slane %v868_v0, %v1719_v55  ;;  %v883_v61 = vrot.slane %v869_v60, %v1719_v55  ;;  %v902_v3 = vcombine.low %v1797_v26, %v1803_v27 }
  0x25   :  { %v903_v20 = vcombine.low %v1809_v28, %v1815_v8  ;;  %v893_v57 = vrot.slane %v885_v5, %v1719_v55  ;;  %v900_v22 = vrot.slane %v886_v53, %v1719_v55  ;;  %v919_v6 = vcombine.low %v1821_v29, %v1827_v30  ;;  %v2539_v5 = vld [vmem:[#allocation7_spill] sm:$0xff] }
  0x26   :  { %v867_v21 = vcombine.low %v859_v48, %v866_v52  ;;  %v884_v23 = vcombine.low %v876_v58, %v883_v61  ;;  %v910_v24 = vrot.slane %v902_v3, %v1719_v55  ;;  %v920_v7 = vcombine.low %v1833_v31, %v1839_v9 }
  0x27   :  { %v917_v25 = vrot.slane %v903_v20, %v1719_v55  ;;  %v901_v26 = vcombine.low %v893_v57, %v900_v22  ;;  %v927_v27 = vrot.slane %v919_v6, %v1719_v55  ;;  %v936_v28 = vcombine.low %v1845_v32, %v1851_v33  ;;  %v2543_v20 = vld [vmem:[#allocation2_spill] sm:$0xff]  ;;  %v2544_v6 = vld [vmem:[#allocation3_spill] sm:$0xff] }
  0x28   :  { %v937_v8 = vcombine.low %v1857_v34, %v1863_v16  ;;  %v934_v29 = vrot.slane %v920_v7, %v1719_v55  ;;  %v953_v30 = vcombine.low %v1869_v35, %v1875_v36  ;;  %v954_v2 = vcombine.low %v1881_v37, %v1887_v17 }
  0x29   :  { %v918_v10 = vcombine.low %v910_v24, %v917_v25  ;;  %v944_v31 = vrot.slane %v936_v28, %v1719_v55  ;;  %v970_v11 = vcombine.low %v1893_v38, %v1899_v39  ;;  %v971_v32 = vcombine.low %v1905_v41, %v1911_v42 }
  0x2a   :  { %v951_v9 = vrot.slane %v937_v8, %v1719_v55  ;;  %v732_v33 = vcombine.low %v1962_v13, %v1965_v14  ;;  %v935_v34 = vcombine.low %v927_v27, %v934_v29  ;;  %v961_v16 = vrot.slane %v953_v30, %v1719_v55  ;;  %v2124_v29 = vld [vmem:[%s2500_s0 + $0x10] sm:$0xff] }
  0x2b   :  { %v968_v35 = vrot.slane %v954_v2, %v1719_v55  ;;  %v733_v36 = vcombine.low %v1968_v62, %v1971_v59  ;;  %v978_v17 = vrot.slane %v970_v11, %v1719_v55  ;;  %v985_v48 = vrot.slane %v971_v32, %v1719_v55 }
  0x2c   :  { %v952_v37 = vcombine.low %v944_v31, %v951_v9  ;;  %v749_v38 = vcombine.low %v1974_v63, %v1977_v43  ;;  %v750_v39 = vcombine.low %v1980_v44, %v1983_v45  ;;  %v766_v13 = vcombine.low %v1986_v46, %v1989_v47 }
  0x2d   :  { %v969_v14 = vcombine.low %v961_v16, %v968_v35  ;;  %v723_v41 = vrot.slane %v715_v49, %v1719_v55  ;;  %v730_v42 = vrot.slane %v716_v1, %v1719_v55  ;;  %v767_v62 = vcombine.low %v1992_v19, %v1995_v50  ;;  %v2536_v49 = vld [vmem:[#allocation6_spill] sm:$0xff]  ;;  %v2546_v35 = vld [vmem:[#allocation8_spill] sm:$0xff] }
  0x2e   :  { %v986_v59 = vcombine.low %v978_v17, %v985_v48  ;;  %v2532_v0 = vunpack.c.l.bf16 %v1655_v54  ;;  %v2533_v63 = vunpack.c.h.bf16 %v1655_v54  ;;  %v2534_v44 = vunpack.c.l.bf16 %v1663_v56 }
  0x2f   :  { %v2535_v46 = vunpack.c.h.bf16 %v1663_v56  ;;  %v2537_v52 = vunpack.c.l.bf16 %v2536_v49  ;;  %v2538_v19 = vunpack.c.h.bf16 %v2536_v49  ;;  %v2540_v53 = vunpack.c.l.bf16 %v2539_v5  ;;  %v2542_v56 = vld [vmem:[#allocation9_spill] sm:$0xff] }
  0x30   :  { %v1011_v60 = vmul.f32 %v867_v21, %v2532_v0  ;;  %v1012_v43 = vmul.f32 %v884_v23, %v2533_v63  ;;  %v1013_v45 = vmul.f32 %v901_v26, %v2534_v44  ;;  %v2541_v54 = vunpack.c.h.bf16 %v2539_v5  ;;  %v2545_v26 = vld [vmem:[#allocation10_spill] sm:$0xff] }
  0x31   :  { %v2083_v47 = vmul.f32 %v918_v10, %v2535_v46  ;;  %v2087_v1 = vmul.f32 %v935_v34, %v2537_v52  ;;  %v2091_v50 = vmul.f32 %v952_v37, %v2538_v19  ;;  %v2095_v58 = vmul.f32 %v969_v14, %v2540_v53  ;;  %v2551_v19 = vld [vmem:[#allocation5_spill] sm:$0xff] }
  0x32   :  { %v2099_v61 = vmul.f32 %v986_v59, %v2541_v54  ;;  %v158_v3 = vrot.slane %v2542_v56, %v1559_v12  ;;  %v162_v21 = vrot.slane %v2542_v56, %v2543_v20  ;;  %v740_v57 = vrot.slane %v732_v33, %v1719_v55 }
  0x33   :  { %v747_v22 = vrot.slane %v733_v36, %v1719_v55  ;;  %v166_v23 = vrot.slane %v2542_v56, %v2544_v6  ;;  %v170_v24 = vrot.slane %v2542_v56, %v1568_v15  ;;  %v783_v25 = vcombine.low %v1998_v51, %v2003_v4 }
  0x34   :  { %v784_v7 = vcombine.low %v2006_v40, %v2009_v18  ;;  %v174_v27 = vrot.slane %v2545_v26, %v1559_v12  ;;  %v178_v28 = vrot.slane %v2545_v26, %v2543_v20  ;;  %v757_v8 = vrot.slane %v749_v38, %v1719_v55 }
  0x35   :  { %v764_v10 = vrot.slane %v750_v39, %v1719_v55  ;;  %v182_v51 = vrot.slane %v2545_v26, %v2544_v6  ;;  %v731_v4 = vcombine.low %v723_v41, %v730_v42  ;;  %v774_v40 = vrot.slane %v766_v13, %v1719_v55  ;;  %v2547_v13 = vld [vmem:[#allocation4_spill] sm:$0xff] }
  0x36   :  { %v781_v18 = vrot.slane %v767_v62, %v1719_v55  ;;  %v186_v30 = vrot.slane %v2545_v26, %v1568_v15  ;;  %v478_v2 = vrot.slane %v158_v3, %v1559_v12  ;;  %v482_v31 = vrot.slane %v162_v21, %v1559_v12 }
  0x37   :  { %v748_v9 = vcombine.low %v740_v57, %v747_v22  ;;  %v486_v11 = vrot.slane %v166_v23, %v1559_v12  ;;  %v490_v32 = vrot.slane %v170_v24, %v1559_v12  ;;  %v791_v33 = vrot.slane %v783_v25, %v1719_v55 }
  0x38   :  { %v798_v34 = vrot.slane %v784_v7, %v1719_v55  ;;  %v23_v16 = vunpack.c.l.bf16 %v2124_v29  ;;  %v2140_v36 = vunpack.c.h.bf16 %v2546_v35  ;;  %v2143_v37 = vrot.slane %v174_v27, %v1559_v12 }
  0x39   :  { %v765_v17 = vcombine.low %v757_v8, %v764_v10  ;;  %v2146_v48 = vrot.slane %v178_v28, %v1559_v12  ;;  %v2149_v38 = vrot.slane %v182_v51, %v1559_v12  ;;  %v782_v39 = vcombine.low %v774_v40, %v781_v18 }
  0x3a   :  { %v2548_v14 = vunpack.c.l.bf16 %v2547_v13  ;;  %v2154_v42 = vrot.slane %v186_v30, %v1559_v12  ;;  %v800_v62 = vcombine.low %v478_v2, %v482_v31  ;;  %v2549_v59 = vunpack.c.h.bf16 %v2547_v13 }
  0x3b   :  { %v1171_v63 = vcombine.high %v1011_v60, %v1011_v60  ;;  %v799_v44 = vcombine.low %v791_v33, %v798_v34  ;;  %v801_v46 = vcombine.low %v486_v11, %v490_v32  ;;  %v2159_v52 = vrot.slane %v1011_v60, %v1719_v55 }
  0x3c   :  { %v1003_v41 = vmul.f32 %v731_v4, %v2548_v14  ;;  %v1004_v0 = vmul.f32 %v748_v9, %v2549_v59  ;;  %v2552_v5 = vunpack.c.l.bf16 %v2551_v19  ;;  %v1188_v56 = vcombine.high %v1012_v43, %v1012_v43 }
  0x3d   :  { %2550 = vst [vmem:[#allocation6_spill] sm:$0xff] %v2159_v52  ;;  %v2164_v54 = vrot.slane %v1171_v63, %v1719_v55  ;;  %v2167_v3 = vrot.slane %v1012_v43, %v1719_v55  ;;  %v2553_v21 = vunpack.c.h.bf16 %v2551_v19  ;;  %v1205_v23 = vcombine.high %v1013_v45, %v1013_v45 }
  0x3e   :  { %v1035_v49 = vcombine.high %v1003_v41, %v1003_v41  ;;  %v1005_v53 = vmul.f32 %v765_v17, %v2552_v5  ;;  %v1042_v22 = vrot.slane %v1003_v41, %v1719_v55  ;;  %v2173_v24 = vrot.slane %v1013_v45, %v1719_v55 }
  0x3f   :  { %v1006_v57 = vmul.f32 %v782_v39, %v2553_v21  ;;  %v1052_v60 = vcombine.high %v1004_v0, %v1004_v0  ;;  %v1059_v25 = vrot.slane %v1004_v0, %v1719_v55  ;;  %v2177_v7 = vrot.slane %v1188_v56, %v1719_v55 }
  0x40   :  { %v1222_v26 = vcombine.high %v2083_v47, %v2083_v47  ;;  %v1049_v43 = vrot.slane %v1035_v49, %v1719_v55  ;;  %v2183_v27 = vrot.slane %v1205_v23, %v1719_v55  ;;  %v2187_v28 = vrot.slane %v2083_v47, %v1719_v55 }
  0x41   :  { %v1239_v45 = vcombine.high %v2087_v1, %v2087_v1  ;;  %v1069_v8 = vcombine.high %v1005_v53, %v1005_v53  ;;  %v2196_v51 = vrot.slane %v2087_v1, %v1719_v55  ;;  %v1256_v4 = vcombine.high %v2091_v50, %v2091_v50 }
  0x42   :  { %v2192_v10 = vrot.slane %v1222_v26, %v1719_v55  ;;  %v1050_v40 = vcombine.high %v1042_v22, %v1042_v22  ;;  %v1076_v18 = vrot.slane %v1005_v53, %v1719_v55  ;;  %v2206_v30 = vrot.slane %v2091_v50, %v1719_v55 }
  0x43   :  { %v2202_v47 = vrot.slane %v1239_v45, %v1719_v55  ;;  %v1086_v2 = vcombine.high %v1006_v57, %v1006_v57  ;;  %v2209_v31 = vrot.slane %v1006_v57, %v1719_v55  ;;  %v2212_v1 = vrot.slane %v1256_v4, %v1719_v55 }
  0x44   :  { %v1273_v9 = vcombine.high %v2095_v58, %v2095_v58  ;;  %v1051_v11 = vcombine.high %v1049_v43, %v1049_v43  ;;  %v1066_v32 = vrot.slane %v1052_v60, %v1719_v55  ;;  %v2219_v33 = vrot.slane %v2095_v58, %v1719_v55 }
  0x45   :  { %v1290_v50 = vcombine.high %v2099_v61, %v2099_v61  ;;  %v1083_v34 = vrot.slane %v1069_v8, %v1719_v55  ;;  %v2229_v17 = vrot.slane %v2099_v61, %v1719_v55  ;;  %v1372_v39 = vsel %vm1371_vm0, %v1042_v22, 0.0 }
  0x46   :  { %v2225_v35 = vrot.slane %v1273_v9, %v1719_v55  ;;  %v2233_v13 = vrot.slane %v800_v62, %v1719_v55  ;;  %v1373_v14 = vsel %vm1371_vm0, %v1050_v40, 0.0  ;;  %v1375_v41 = vsel %vm1371_vm0, %v1049_v43, 0.0 }
  0x47   :  { %v2236_v58 = vrot.slane %v1290_v50, %v1719_v55  ;;  %v2241_v59 = vrot.slane %v801_v46, %v1719_v55  ;;  %v2243_v0 = vmul.f32 %v799_v44, %v23_v16  ;;  %v1067_v63 = vcombine.high %v1059_v25, %v1059_v25 }
  0x48   :  { %v1374_v61 = vadd.f32 %v1373_v14, %v1372_v39  ;;  %v1084_v49 = vcombine.high %v1076_v18, %v1076_v18  ;;  %v2246_v19 = vrot.slane %v1086_v2, %v1719_v55  ;;  %v1377_v5 = vsel %vm1371_vm0, %v1051_v11, 0.0 }
  0x49   :  { %v1068_v53 = vcombine.high %v1066_v32, %v1066_v32  ;;  %v1085_v56 = vcombine.high %v1083_v34, %v1083_v34  ;;  %v1186_v21 = vcombine.high %v2159_v52, %v2159_v52  ;;  %v1187_v16 = vcombine.high %v2164_v54, %v2164_v54 }
  0x4a   :  { %v1376_v46 = vadd.f32 %v1375_v41, %v1374_v61  ;;  %v1203_v44 = vcombine.high %v2167_v3, %v2167_v3  ;;  %v1220_v57 = vcombine.high %v2173_v24, %v2173_v24  ;;  %v1379_v22 = vsel %vm1371_vm0, %v1059_v25, 0.0 }
  0x4b   :  { %v1204_v23 = vcombine.high %v2177_v7, %v2177_v7  ;;  %v1221_v60 = vcombine.high %v2183_v27, %v2183_v27  ;;  %v1237_v26 = vcombine.high %v2187_v28, %v2187_v28  ;;  %v1238_v45 = vcombine.high %v2192_v10, %v2192_v10 }
  0x4c   :  { %v1378_v43 = vadd.f32 %v1377_v5, %v1376_v46  ;;  %v1254_v8 = vcombine.high %v2196_v51, %v2196_v51  ;;  %v1255_v4 = vcombine.high %v2202_v47, %v2202_v47  ;;  %v1381_v25 = vsel %vm1371_vm0, %v1067_v63, 0.0 }
  0x4d   :  { %v1271_v40 = vcombine.high %v2206_v30, %v2206_v30  ;;  %v1272_v2 = vcombine.high %v2212_v1, %v2212_v1  ;;  %v1288_v9 = vcombine.high %v2219_v33, %v2219_v33  ;;  %v1289_v50 = vcombine.high %v2225_v35, %v2225_v35 }
  0x4e   :  { %v1380_v11 = vadd.f32 %v1379_v22, %v1378_v43  ;;  %v1305_v39 = vcombine.high %v2229_v17, %v2229_v17  ;;  %v1306_v14 = vcombine.high %v2236_v58, %v2236_v58  ;;  %v1383_v41 = vsel %vm1371_vm0, %v1066_v32, 0.0 }
  0x4f   :  { %v1385_v61 = vsel %vm1371_vm0, %v1068_v53, 0.0  ;;  %v1387_v5 = vsel %vm1371_vm0, %v1076_v18, 0.0  ;;  %v1389_v46 = vsel %vm1371_vm0, %v1084_v49, 0.0  ;;  %v1391_v22 = vsel %vm1371_vm0, %v1083_v34, 0.0 }
  0x50   :  { %v1382_v63 = vadd.f32 %v1381_v25, %v1380_v11  ;;  %v1393_v43 = vsel %vm1371_vm0, %v1085_v56, 0.0  ;;  %v2292_v62 = vsel %vm1371_vm0, %v1186_v21, 0.0  ;;  %v2296_v52 = vsel %vm1371_vm0, %v2164_v54, 0.0 }
  0x51   :  { %v2299_v32 = vsel %vm1371_vm0, %v1187_v16, 0.0  ;;  %v2303_v18 = vsel %vm1371_vm0, %v2167_v3, 0.0  ;;  %v2306_v49 = vsel %vm1371_vm0, %v1203_v44, 0.0  ;;  %v2310_v34 = vsel %vm1371_vm0, %v2177_v7, 0.0 }
  0x52   :  { %v1384_v55 = vadd.f32 %v1383_v41, %v1382_v63  ;;  %v2313_v53 = vsel %vm1371_vm0, %v1204_v23, 0.0  ;;  %v2317_v54 = vsel %vm1371_vm0, %v2173_v24, 0.0  ;;  %v2320_v56 = vsel %vm1371_vm0, %v1220_v57, 0.0 }
  0x53   :  { %v2324_v3 = vsel %vm1371_vm0, %v2183_v27, 0.0  ;;  %v2327_v16 = vsel %vm1371_vm0, %v1221_v60, 0.0  ;;  %v2331_v7 = vsel %vm1371_vm0, %v2187_v28, 0.0  ;;  %v2334_v44 = vsel %vm1371_vm0, %v1237_v26, 0.0 }
  0x54   :  { %v1386_v21 = vadd.f32 %v1385_v61, %v1384_v55  ;;  %v2338_v24 = vsel %vm1371_vm0, %v2192_v10, 0.0  ;;  %v2341_v55 = vsel %vm1371_vm0, %v1238_v45, 0.0  ;;  %v2345_v27 = vsel %vm1371_vm0, %v2196_v51, 0.0 }
  0x55   :  { %v2348_v23 = vsel %vm1371_vm0, %v1254_v8, 0.0  ;;  %v2352_v28 = vsel %vm1371_vm0, %v2202_v47, 0.0  ;;  %v2355_v60 = vsel %vm1371_vm0, %v1255_v4, 0.0  ;;  %v2359_v10 = vsel %vm1371_vm0, %v2206_v30, 0.0 }
  0x56   :  { %v1388_v57 = vadd.f32 %v1387_v5, %v1386_v21  ;;  %v2362_v26 = vsel %vm1371_vm0, %v1271_v40, 0.0  ;;  %v2366_v51 = vsel %vm1371_vm0, %v2212_v1, 0.0  ;;  %v2369_v45 = vsel %vm1371_vm0, %v1272_v2, 0.0  ;;  %v14_v5 = vld [vmem:[%s2500_s0 + $0x18] sm:$0xff] }
  0x57   :  { %v2373_v47 = vsel %vm1371_vm0, %v2219_v33, 0.0  ;;  %v2376_v4 = vsel %vm1371_vm0, %v1288_v9, 0.0  ;;  %v2380_v30 = vsel %vm1371_vm0, %v2225_v35, 0.0  ;;  %v2383_v25 = vsel %vm1371_vm0, %v1289_v50, 0.0 }
  0x58   :  { %v1390_v8 = vadd.f32 %v1389_v46, %v1388_v57  ;;  %v2387_v1 = vsel %vm1371_vm0, %v2229_v17, 0.0  ;;  %v2390_v40 = vsel %vm1371_vm0, %v1305_v39, 0.0  ;;  %v2394_v33 = vsel %vm1371_vm0, %v2236_v58, 0.0 }
  0x59   :  { %v24_v2 = vunpack.c.h.bf16 %v2124_v29  ;;  %v190_v35 = vrot.slane %v2140_v36, %v1559_v12  ;;  %v2400_v11 = vsel %vm1371_vm0, %v1306_v14, 0.0  ;;  %v194_v17 = vrot.slane %v2140_v36, %v2543_v20 }
  0x5a   :  { %v1392_v9 = vadd.f32 %v1391_v22, %v1390_v8  ;;  %v198_v50 = vrot.slane %v2140_v36, %v2544_v6  ;;  %v202_v39 = vrot.slane %v2140_v36, %v1568_v15  ;;  %v1395_v58 = vsel %vm1371_vm0, %v2209_v31, 0.0  ;;  %v2554_v15 = vld [vmem:[#allocation11_spill] sm:$0xff] }
  0x5b   :  { %v816_v29 = vcombine.low %v2233_v13, %v2241_v59  ;;  %v817_v41 = vcombine.low %v2143_v37, %v2146_v48  ;;  %v818_v14 = vcombine.low %v2149_v38, %v2154_v42  ;;  %v1102_v20 = vcombine.high %v2246_v19, %v2246_v19 }
  0x5c   :  { %v1394_v63 = vadd.f32 %v1393_v43, %v1392_v9  ;;  %v1103_v6 = vcombine.high %v2243_v0, %v2243_v0  ;;  %v1110_v36 = vrot.slane %v2243_v0, %v2554_v15  ;;  %v2555_v61 = vcombine.high %v2209_v31, %v2209_v31 }
  0x5d   :  { %v510_v37 = vrot.slane %v190_v35, %v1559_v12  ;;  %v514_v48 = vrot.slane %v194_v17, %v1559_v12  ;;  %v518_v38 = vrot.slane %v198_v50, %v1559_v12  ;;  %v1399_v42 = vsel %vm1371_vm0, %v2246_v19, 0.0 }
  0x5e   :  { %v1397_v13 = vsel %vm1371_vm0, %v2555_v61, 0.0  ;;  %v1396_v59 = vadd.f32 %v1395_v58, %v1394_v63  ;;  %v522_v0 = vrot.slane %v202_v39, %v1559_v12  ;;  %v825_v31 = vrot.slane %v817_v41, %v2554_v15 }
  0x5f   :  { %v832_v46 = vrot.slane %v818_v14, %v2554_v15  ;;  %v1008_v43 = vmul.f32 %v816_v29, %v24_v2  ;;  %v1117_v21 = vrot.slane %v1103_v6, %v2554_v15  ;;  %v1118_v57 = vcombine.high %v1110_v36, %v1110_v36 }
  0x60   :  { %v1398_v22 = vadd.f32 %v1397_v13, %v1396_v59  ;;  %v1401_v8 = vsel %vm1371_vm0, %v1102_v20, 0.0  ;;  %v25_v9 = vunpack.c.l.bf16 %v14_v5  ;;  %v1403_v19 = vsel %vm1371_vm0, %v1110_v36, 0.0 }
  0x61   :  { %v833_v17 = vcombine.low %v825_v31, %v832_v46  ;;  %v834_v50 = vcombine.low %v510_v37, %v514_v48  ;;  %v835_v58 = vcombine.low %v518_v38, %v522_v0  ;;  %v1119_v12 = vcombine.high %v1117_v21, %v1117_v21 }
  0x62   :  { %v1400_v35 = vadd.f32 %v1399_v42, %v1398_v22  ;;  %v1120_v39 = vcombine.high %v1008_v43, %v1008_v43  ;;  %v1127_v41 = vrot.slane %v1008_v43, %v2554_v15  ;;  %v1405_v14 = vsel %vm1371_vm0, %v1118_v57, 0.0 }
  0x63   :  { %v1407_v29 = vsel %vm1371_vm0, %v1117_v21, 0.0  ;;  %v842_v6 = vrot.slane %v834_v50, %v2554_v15  ;;  %v849_v20 = vrot.slane %v835_v58, %v2554_v15  ;;  %v1009_v13 = vmul.f32 %v833_v17, %v25_v9 }
  0x64   :  { %v1402_v63 = vadd.f32 %v1401_v8, %v1400_v35  ;;  %v1134_v36 = vrot.slane %v1120_v39, %v2554_v15  ;;  %v1135_v59 = vcombine.high %v1127_v41, %v1127_v41  ;;  %v1409_v37 = vsel %vm1371_vm0, %v1119_v12, 0.0 }
  0x65   :  { %v1411_v38 = vsel %vm1371_vm0, %v1127_v41, 0.0  ;;  %v26_v42 = vunpack.c.h.bf16 %v14_v5  ;;  %v850_v0 = vcombine.low %v842_v6, %v849_v20  ;;  %v1137_v22 = vcombine.high %v1009_v13, %v1009_v13 }
  0x66   :  { %v1404_v2 = vadd.f32 %v1403_v19, %v1402_v63  ;;  %v1136_v46 = vcombine.high %v1134_v36, %v1134_v36  ;;  %v1144_v43 = vrot.slane %v1009_v13, %v2554_v15  ;;  %v1413_v21 = vsel %vm1371_vm0, %v1135_v59, 0.0 }
  0x67   :  { %v1415_v8 = vsel %vm1371_vm0, %v1134_v36, 0.0  ;;  %v1010_v9 = vmul.f32 %v850_v0, %v26_v42  ;;  %v1151_v19 = vrot.slane %v1137_v22, %v2554_v15 }
  0x68   :  { %v1406_v61 = vadd.f32 %v1405_v14, %v1404_v2  ;;  %v1152_v17 = vcombine.high %v1144_v43, %v1144_v43  ;;  %v1417_v50 = vsel %vm1371_vm0, %v1136_v46, 0.0  ;;  %v1419_v5 = vsel %vm1371_vm0, %v1144_v43, 0.0  ;;  %v2556_v43 = vld [vmem:[#allocation6_spill] sm:$0xff] }
  0x69   :  { %v1153_v12 = vcombine.high %v1151_v19, %v1151_v19  ;;  %v1154_v39 = vcombine.high %v1010_v9, %v1010_v9  ;;  %v1161_v41 = vrot.slane %v1010_v9, %v2554_v15 }
  0x6a   :  { %v1408_v48 = vadd.f32 %v1407_v29, %v1406_v61  ;;  %v1421_v14 = vsel %vm1371_vm0, %v1152_v17, 0.0  ;;  %v1423_v29 = vsel %vm1371_vm0, %v1151_v19, 0.0 }
  0x6b   :  { %v1168_v20 = vrot.slane %v1154_v39, %v2554_v15  ;;  %v1169_v61 = vcombine.high %v1161_v41, %v1161_v41  ;;  %v1425_v13 = vsel %vm1371_vm0, %v1153_v12, 0.0  ;;  %v1427_v59 = vsel %vm1371_vm0, %v1161_v41, 0.0 }
  0x6c   :  { %v1410_v31 = vadd.f32 %v1409_v37, %v1408_v48  ;;  %v1435_v15 = vsel %vm1371_vm0, %v2556_v43, 0.0 }
  0x6d   :  { %v1170_v48 = vcombine.high %v1168_v20, %v1168_v20  ;;  %v1431_v0 = vsel %vm1371_vm0, %v1168_v20, 0.0 }
  0x6e   :  { %v1412_v57 = vadd.f32 %v1411_v38, %v1410_v31  ;;  %v1429_v38 = vsel %vm1371_vm0, %v1169_v61, 0.0 }
  0x6f   :  { %v1433_v46 = vsel %vm1371_vm0, %v1170_v48, 0.0 }
  0x70   :  { %v1414_v35 = vadd.f32 %v1413_v21, %v1412_v57 }
  0x72   :  { %v1416_v58 = vadd.f32 %v1415_v8, %v1414_v35 }
  0x74   :  { %v1418_v63 = vadd.f32 %v1417_v50, %v1416_v58 }
  0x76   :  { %v1420_v2 = vadd.f32 %v1419_v5, %v1418_v63 }
  0x78   :  { %v1422_v6 = vadd.f32 %v1421_v14, %v1420_v2 }
  0x7a   :  { %v1424_v36 = vadd.f32 %v1423_v29, %v1422_v6 }
  0x7c   :  { %v1426_v37 = vadd.f32 %v1425_v13, %v1424_v36 }
  0x7e   :  { %v1428_v42 = vadd.f32 %v1427_v59, %v1426_v37 }
  0x80   :  { %v1430_v31 = vadd.f32 %v1429_v38, %v1428_v42 }
  0x82   :  { %v1432_v22 = vadd.f32 %v1431_v0, %v1430_v31 }
  0x84   :  { %v1434_v21 = vadd.f32 %v1433_v46, %v1432_v22 }
  0x86   :  { %v1436_v57 = vadd.f32 %v1435_v15, %v1434_v21 }
  0x88   :  { %v1438_v8 = vadd.f32 %v2292_v62, %v1436_v57 }
  0x8a   :  { %v1440_v35 = vadd.f32 %v2296_v52, %v1438_v8 }
  0x8c   :  { %v1442_v9 = vadd.f32 %v2299_v32, %v1440_v35 }
  0x8e   :  { %v1444_v19 = vadd.f32 %v2303_v18, %v1442_v9 }
  0x90   :  { %v1446_v17 = vadd.f32 %v2306_v49, %v1444_v19 }
  0x92   :  { %v1448_v50 = vadd.f32 %v2310_v34, %v1446_v17 }
  0x94   :  { %v1450_v58 = vadd.f32 %v2313_v53, %v1448_v50 }
  0x96   :  { %v1452_v5 = vadd.f32 %v2317_v54, %v1450_v58 }
  0x98   :  { %v1454_v63 = vadd.f32 %v2320_v56, %v1452_v5 }
  0x9a   :  { %v1456_v12 = vadd.f32 %v2324_v3, %v1454_v63 }
  0x9c   :  { %v1458_v62 = vadd.f32 %v2327_v16, %v1456_v12 }
  0x9e   :  { %v1460_v52 = vadd.f32 %v2331_v7, %v1458_v62 }
  0xa0   :  { %v1462_v32 = vadd.f32 %v2334_v44, %v1460_v52 }
  0xa2   :  { %v1464_v18 = vadd.f32 %v2338_v24, %v1462_v32 }
  0xa4   :  { %v1466_v49 = vadd.f32 %v2341_v55, %v1464_v18 }
  0xa6   :  { %v1468_v34 = vadd.f32 %v2345_v27, %v1466_v49 }
  0xa8   :  { %v1470_v53 = vadd.f32 %v2348_v23, %v1468_v34 }
  0xaa   :  { %v1472_v54 = vadd.f32 %v2352_v28, %v1470_v53 }
  0xac   :  { %v1474_v56 = vadd.f32 %v2355_v60, %v1472_v54 }
  0xae   :  { %v1476_v3 = vadd.f32 %v2359_v10, %v1474_v56 }
  0xb0   :  { %v1478_v16 = vadd.f32 %v2362_v26, %v1476_v3 }
  0xb2   :  { %v1480_v7 = vadd.f32 %v2366_v51, %v1478_v16 }
  0xb4   :  { %v1482_v44 = vadd.f32 %v2369_v45, %v1480_v7 }
  0xb6   :  { %v1484_v24 = vadd.f32 %v2373_v47, %v1482_v44 }
  0xb8   :  { %v1486_v55 = vadd.f32 %v2376_v4, %v1484_v24 }
  0xba   :  { %v1488_v27 = vadd.f32 %v2380_v30, %v1486_v55 }
  0xbc   :  { %v1490_v23 = vadd.f32 %v2383_v25, %v1488_v27 }
  0xbe   :  { %v1492_v28 = vadd.f32 %v2387_v1, %v1490_v23 }
  0xc0   :  { %v1494_v60 = vadd.f32 %v2390_v40, %v1492_v28 }
  0xc2   :  { %v1496_v10 = vadd.f32 %v2394_v33, %v1494_v60 }
  0xc4   :  { %v1498_v26 = vadd.f32 %v2400_v11, %v1496_v10 }
  0xc6   :  { %1499 = vadd.xlane.f32.xlu0 %v1498_v26 }
 0x14f   :  { %v1500_v51 = vpop.xlane.xlu0 %1499 }
 0x150   :  { %v1501_v39 = vsub.f32 0.0, %v1500_v51 }
 0x152   :  { %v1502_v45 = vmul.f32 1.442695, %v1501_v39 }
 0x154   :  { %1514 = vpow2.f32 %v1502_v45 }
 0x161   :  { %v1515_v47 = vpop.eup %1514 }
 0x162   :  { %v1504_v41 = vadd.f32 1.0, %v1515_v47 }
 0x164   :  { %1516 = vrcp.f32 %v1504_v41 }
 0x171   :  { %v1517_v4 = vpop.eup %1516 }
 0x172   :  { %1508 = vst.msk [vmem:[%s2501_s2] sm:$0x3] %vm1507_vm1, %v1517_v4 }

</bundles_post_ra>
